<compile_context>
chip_gen: v7x
topology: tpu7x:2x2x1
jax: 0.10.0
libtpu: 0.0.40
codegen_flags: <defaults>
</compile_context>

<pallas_src>
import math
import numpy as np
import jax
import jax.numpy as jnp
from jax.experimental import pallas as pl
from jax.experimental.pallas import tpu as pltpu

ADCBITNUMBER = 5
BITNUM_SIG = ADCBITNUMBER
POINTNUMS = 2 ** BITNUM_SIG            # 32
BITNUM_TANH = ADCBITNUMBER
POINTNUMT = 2 ** (BITNUM_TANH - 1)     # 16
N_THR = POINTNUMS - 1                  # 31 thresholds used by the ADC forward
NOISE_STD = 5.0
LSTM_WANDBIAS_MAX = 2.0
G_RATIO_LSTM = 150.0 / LSTM_WANDBIAS_MAX
DROPOUT_P = 0.01


# ----------------------------------------------------------------------------
# Ramp (ADC threshold) generation — host-side, deterministic (plain glue).
# ----------------------------------------------------------------------------
def _round3(x):
    return np.round(x * 1000.0) / 1000.0


def ramp_sigmoid_generation_noise(rng):
    P = POINTNUMS
    t = np.arange(1, P + 2, dtype=np.float64) / (P + 2)       # 33 values k/(P+2)
    v = np.log(t / (1.0 - t))
    dV = np.diff(v)                                            # 32 deltas
    dV_r = _round3(dV)
    cell = dV_r / np.min(dV_r)
    g = 150.0 / np.max(cell) * cell
    # TODO(synk): `g_Δg_s` is an undefined global in the source module; use
    # deterministic gaussian conductance noise of std=noise_std instead.
    dg = rng.normal(0.0, NOISE_STD, size=g.shape)
    dV_act = (g + dg) * (np.max(dV) / 150.0)
    middle = len(dV) // 2
    V = np.zeros(len(v))
    V[0] = -np.sum(dV_act[:middle])
    V[1:] = V[0] + np.cumsum(dV_act)
    return V.astype(np.float32)                                # 33 thresholds


def ramp_tanh_generation_noise(rng):
    PT = POINTNUMT
    t = np.arange(-PT, PT + 1, dtype=np.float64) / (PT + 1)    # 33 values k/(PT+1)
    v = 0.5 * np.log((1.0 + t) / (1.0 - t))
    dV = np.diff(v)
    dV_r = _round3(dV)
    cell = dV_r / np.min(dV_r)
    g = 150.0 / np.max(cell) * cell
    # TODO(synk): `g_Δg_t` is an undefined global in the source module.
    dg = rng.normal(0.0, NOISE_STD, size=g.shape)
    dV_act = (g + dg) * (np.max(dV) / 150.0)
    middle = len(dV) // 2
    V = np.zeros(len(v))
    V[0] = -np.sum(dV_act[:middle])
    V[1:] = V[0] + np.cumsum(dV_act)
    return V.astype(np.float32)


# ----------------------------------------------------------------------------
# ADC lookup tables for the fused (bs, 4*HS) gate slab.
#   thr[k, :]  : threshold k per lane (sigmoid on i/f/o lanes, tanh on g lanes)
#   scale[:, :]: 1/(P+2) on i/f/o lanes, 2/(P+2) on g lanes
#   off[:, :]  : 0 on i/f/o lanes, -1 on g lanes
# ----------------------------------------------------------------------------
def build_adc_tables(sramp, tramp, hidden_size):
    HS = hidden_size
    HS4 = 4 * HS
    s_thr = np.asarray(sramp[:N_THR], np.float32)
    t_thr = np.asarray(tramp[:N_THR], np.float32)

    n_thr_pad = ((N_THR + 7) // 8) * 8                          # pad sublanes -> 32
    thr = np.full((n_thr_pad, HS4), 1e30, np.float32)           # padded rows unused
    thr[:N_THR, 0 * HS:2 * HS] = s_thr[:, None]                 # i, f gates
    thr[:N_THR, 2 * HS:3 * HS] = t_thr[:, None]                 # g gate (tanh)
    thr[:N_THR, 3 * HS:4 * HS] = s_thr[:, None]                 # o gate

    scale = np.empty((1, HS4), np.float32)
    scale[:, :] = 1.0 / (POINTNUMS + 2)
    scale[:, 2 * HS:3 * HS] = 1.0 / ((POINTNUMS + 2) / 2)

    off = np.zeros((1, HS4), np.float32)
    off[:, 2 * HS:3 * HS] = -1.0
    return jnp.asarray(thr), jnp.asarray(scale), jnp.asarray(off)


# ----------------------------------------------------------------------------
# Pallas kernel: T_BLK LSTM time steps per grid iteration.
# ----------------------------------------------------------------------------
def make_lstm_kernel(hidden_size, t_blk):
    HS = hidden_size

    def kernel(xw_ref, u_ref, pw_ref, pb_ref, thr_ref, scale_ref, off_ref,
               hseq_ref, c_out_ref, h_scr, c_scr):
        blk = pl.program_id(0)

        @pl.when(blk == 0)
        def _():
            h_scr[...] = jnp.zeros_like(h_scr)
            c_scr[...] = jnp.zeros_like(c_scr)

        # Resident operands, loaded once per grid step.
        u_bf = u_ref[...]                      # (proj_pad, 4HS)  bf16
        pw_bf = pw_ref[...]                    # (HS, proj_pad)   bf16
        pb = pb_ref[...]                       # (1, proj_pad)    f32
        thrs = thr_ref[...]                    # (32, 4HS)        f32
        scale = scale_ref[...]                 # (1, 4HS)
        off = off_ref[...]                     # (1, 4HS)

        # Fully unrolled short time loop (T_BLK small) — LLO sees everything.
        for tt in range(t_blk):
            # Recurrent path only: x@W + bias was precomputed outside the kernel.
            h_bf = h_scr[...].astype(jnp.bfloat16)
            gates = xw_ref[tt] + jnp.dot(h_bf, u_bf,
                                         preferred_element_type=jnp.float32)

            # One 31-pass compare over the lane-dense (bs_pad, 4HS) slab.
            cnt = jnp.zeros_like(gates)
            for k in range(N_THR):
                cnt = cnt + (gates >= thrs[k:k + 1, :]).astype(jnp.float32)
            acts = cnt * scale + off           # ADC sigmoid / tanh per lane

            i_t = acts[:, 0 * HS:1 * HS]
            f_t = acts[:, 1 * HS:2 * HS]
            g_t = acts[:, 2 * HS:3 * HS]
            o_t = acts[:, 3 * HS:4 * HS]

            c_new = f_t * c_scr[...] + i_t * g_t
            h_full = o_t * jnp.tanh(c_new)                       # exact tanh, as in torch
            h_proj = jnp.dot(h_full.astype(jnp.bfloat16), pw_bf,
                             preferred_element_type=jnp.float32) + pb

            c_scr[...] = c_new
            h_scr[...] = h_proj
            hseq_ref[tt] = h_proj.astype(hseq_ref.dtype)          # lane-dense store

        # c_t writeback only once, at the end of the whole sequence.
        @pl.when(blk == pl.num_programs(0) - 1)
        def _():
            c_out_ref[...] = c_scr[...]

    return kernel


def _pick_time_block(seq, t_blk_max):
    for cand in range(min(t_blk_max, seq), 0, -1):
        if seq % cand == 0:
            return cand
    return 1


def lstm_adc_noise_forward(x, W_mu, U_mu, bias_mu, proj_w_t, proj_b,
                           sramp, tramp, t_blk_max=8):
    """x: (batch, seq, input_size).  Returns (hidden_seq, (h_t, c_t)) like the module."""
    bs, seq, in_sz = x.shape
    HS4 = W_mu.shape[1]
    HS = HS4 // 4
    proj = proj_w_t.shape[1]

    bs_p = ((bs + 7) // 8) * 8                 # sublane-pad batch
    proj_p = ((proj + 127) // 128) * 128       # lane-pad projection size
    t_blk = _pick_time_block(seq, t_blk_max)

    x_tm = jnp.transpose(x, (1, 0, 2)).astype(jnp.float32)      # (seq, bs, in)
    if bs_p != bs:
        x_tm = jnp.pad(x_tm, ((0, 0), (0, bs_p - bs), (0, 0)))

    # Hoisted input projection: one big lane-dense matmul over all timesteps.
    xw = (jnp.einsum('sbi,ih->sbh', x_tm, W_mu.astype(jnp.float32),
                     preferred_element_type=jnp.float32)
          + bias_mu.reshape(1, 1, HS4).astype(jnp.float32))     # (seq, bs_p, 4HS)

    # Zero-pad recurrent / projection weights so padded h lanes stay exactly 0.
    U_p = jnp.zeros((proj_p, HS4), jnp.float32).at[:proj].set(U_mu.astype(jnp.float32))
    pw_p = jnp.zeros((HS, proj_p), jnp.float32).at[:, :proj].set(proj_w_t.astype(jnp.float32))
    pb_p = jnp.zeros((1, proj_p), jnp.float32).at[0, :proj].set(proj_b.astype(jnp.float32))

    # bf16 MXU operands (f32 accumulation); ADC compare math stays f32.
    U_bf = U_p.astype(jnp.bfloat16)
    pw_bf = pw_p.astype(jnp.bfloat16)

    thr_j, scale_j, off_j = build_adc_tables(sramp, tramp, HS)
    n_thr_pad = thr_j.shape[0]

    kernel = make_lstm_kernel(HS, t_blk)

    hseq_tm, c_last = pl.pallas_call(
        kernel,
        out_shape=(jax.ShapeDtypeStruct((seq, bs_p, proj_p), jnp.float32),
                   jax.ShapeDtypeStruct((bs_p, HS), jnp.float32)),
        grid_spec=pltpu.PrefetchScalarGridSpec(
            num_scalar_prefetch=0,
            grid=(seq // t_blk,),
            in_specs=[
                pl.BlockSpec((t_blk, bs_p, HS4), lambda b: (b, 0, 0)),   # gate preacts
                pl.BlockSpec((proj_p, HS4), lambda b: (0, 0)),           # U (bf16, resident)
                pl.BlockSpec((HS, proj_p), lambda b: (0, 0)),            # proj W^T (bf16)
                pl.BlockSpec((1, proj_p), lambda b: (0, 0)),             # proj bias
                pl.BlockSpec((n_thr_pad, HS4), lambda b: (0, 0)),        # ADC thresholds
                pl.BlockSpec((1, HS4), lambda b: (0, 0)),                # ADC scale
                pl.BlockSpec((1, HS4), lambda b: (0, 0)),                # ADC offset
            ],
            out_specs=[
                pl.BlockSpec((t_blk, bs_p, proj_p), lambda b: (b, 0, 0)),  # hidden_seq blk
                pl.BlockSpec((bs_p, HS), lambda b: (0, 0)),                # final c_t
            ],
            scratch_shapes=[
                pltpu.VMEM((bs_p, proj_p), jnp.float32),                 # carried h_t
                pltpu.VMEM((bs_p, HS), jnp.float32),                     # carried c_t
            ]),
        compiler_params=pltpu.CompilerParams(
            dimension_semantics=("arbitrary",)),                         # serial recurrence
    )(xw, U_bf, pw_bf, pb_p, thr_j, scale_j, off_j)

    hidden_seq = jnp.transpose(hseq_tm[:, :bs, :proj], (1, 0, 2))        # (batch, seq, proj)
    h_last = hseq_tm[-1, :bs, :proj]                                     # (batch, proj)
    c_last = c_last[:bs]                                                 # (batch, HS)
    return hidden_seq, (h_last, c_last)


# ----------------------------------------------------------------------------
# Deterministic parameter setup (glue, plain JAX): mimics __init__ + the
# weight clamping / conductance-noise / dropout done at the top of forward().
# ----------------------------------------------------------------------------
def init_params(key, input_size, hidden_size, proj_size):
    stdv = 1.0 / math.sqrt(hidden_size)
    HS4 = hidden_size * 4
    k = jax.random.split(key, 10)

    W = jax.random.uniform(k[0], (input_size, HS4), jnp.float32, -stdv, stdv)
    U = jax.random.uniform(k[1], (proj_size, HS4), jnp.float32, -stdv, stdv)
    bias = jax.random.uniform(k[2], (HS4,), jnp.float32, -stdv, stdv)
    proj_w = jax.random.uniform(k[3], (proj_size, hidden_size), jnp.float32, -stdv, stdv)
    proj_b = jax.random.uniform(k[4], (proj_size,), jnp.float32, -stdv, stdv)

    # |w| >= LSTM_Wandbias_max  ->  LSTM_Wandbias_max * sign(w)   (== clip)
    W = jnp.clip(W, -LSTM_WANDBIAS_MAX, LSTM_WANDBIAS_MAX)
    U = jnp.clip(U, -LSTM_WANDBIAS_MAX, LSTM_WANDBIAS_MAX)
    bias = jnp.clip(bias, -LSTM_WANDBIAS_MAX, LSTM_WANDBIAS_MAX)

    # LSTM_delg analogue, sized (input + proj + 1, 4H); N(0, noise_std)
    delg = NOISE_STD * jax.random.normal(
        k[5], (input_size + proj_size + 1, HS4), jnp.float32)

    def dropout(v, dkey):
        keep = jax.random.bernoulli(dkey, 1.0 - DROPOUT_P, v.shape)
        return jnp.where(keep, v / (1.0 - DROPOUT_P), 0.0)

    W_mu = dropout(delg[:input_size] / G_RATIO_LSTM + W, k[6])
    U_mu = dropout(delg[input_size:input_size + proj_size] / G_RATIO_LSTM + U, k[7])
    bias_mu = dropout(delg[input_size + proj_size:] / G_RATIO_LSTM + bias, k[8])  # (1, 4H)

    proj_w_t = proj_w.T                                              # (hidden, proj)
    return W_mu, U_mu, bias_mu, proj_w_t, proj_b


if __name__ == "__main__":
    input_size, hidden_size, proj_size = 16, 32, 8
    batch, seq = 4, 16                            # seq=16, T_BLK=8 -> grid=(2,)

    key = jax.random.PRNGKey(0)
    kx, kp = jax.random.split(key)
    x = jax.random.normal(kx, (batch, seq, input_size), jnp.float32)

    rng = np.random.default_rng(0)
    sramp = ramp_sigmoid_generation_noise(rng)
    tramp = ramp_tanh_generation_noise(rng)

    params = init_params(kp, input_size, hidden_size, proj_size)

    hidden_seq, (h_t, c_t) = lstm_adc_noise_forward(x, *params, sramp, tramp)
    jax.block_until_ready((hidden_seq, h_t, c_t))

    assert hidden_seq.shape == (batch, seq, proj_size)
    assert h_t.shape == (batch, proj_size)
    assert c_t.shape == (batch, hidden_size)
    assert bool(jnp.all(jnp.isfinite(hidden_seq)))
    assert bool(jnp.all(jnp.isfinite(c_t)))
    assert bool(jnp.allclose(hidden_seq[:, -1, :], h_t))
    print("KERNEL_OK")
</pallas_src>

<mosaic_0001>
module attributes {stable_mosaic.version = 11 : i64} {
  func.func @kernel(%arg0: i32, %arg1: memref<8x8x128xf32, #tpu.memory_space<vmem>>, %arg2: memref<128x128xbf16, #tpu.memory_space<vmem>>, %arg3: memref<32x128xbf16, #tpu.memory_space<vmem>>, %arg4: memref<1x128xf32, #tpu.memory_space<vmem>>, %arg5: memref<32x128xf32, #tpu.memory_space<vmem>>, %arg6: memref<1x128xf32, #tpu.memory_space<vmem>>, %arg7: memref<1x128xf32, #tpu.memory_space<vmem>>, %arg8: memref<8x8x128xf32, #tpu.memory_space<vmem>>, %arg9: memref<8x32xf32, #tpu.memory_space<vmem>>, %arg10: memref<8x128xf32, #tpu.memory_space<vmem>>, %arg11: memref<8x32xf32, #tpu.memory_space<vmem>>) attributes {dimension_semantics = [#tpu.dimension_semantics<arbitrary>], iteration_bounds = array<i64: 2>, scalar_prefetch = 0 : i64, scratch_operands = 2 : i64, tpu.core_type = #tpu.core_type<tc>, window_params = [{transform_indices = @transform_0, window_bounds = array<i64: 8, 8, 128>}, {pipeline_mode = #tpu.pipeline_mode<synchronous>, transform_indices = @transform_1, window_bounds = array<i64: 128, 128>}, {pipeline_mode = #tpu.pipeline_mode<synchronous>, transform_indices = @transform_2, window_bounds = array<i64: 32, 128>}, {pipeline_mode = #tpu.pipeline_mode<synchronous>, transform_indices = @transform_3, window_bounds = array<i64: 1, 128>}, {pipeline_mode = #tpu.pipeline_mode<synchronous>, transform_indices = @transform_4, window_bounds = array<i64: 32, 128>}, {pipeline_mode = #tpu.pipeline_mode<synchronous>, transform_indices = @transform_5, window_bounds = array<i64: 1, 128>}, {pipeline_mode = #tpu.pipeline_mode<synchronous>, transform_indices = @transform_6, window_bounds = array<i64: 1, 128>}, {transform_indices = @transform_7, window_bounds = array<i64: 8, 8, 128>}, {pipeline_mode = #tpu.pipeline_mode<synchronous>, transform_indices = @transform_8, window_bounds = array<i64: 8, 32>}]} {
    %c0_i32 = arith.constant 0 : i32
    %0 = arith.cmpi eq, %arg0, %c0_i32 : i32
    %1 = arith.extui %0 : i1 to i32
    %c0_i32_0 = arith.constant 0 : i32
    %2 = arith.cmpi ne, %1, %c0_i32_0 : i32
    scf.if %2 {
      %cst_141 = arith.constant 0.000000e+00 : f32
      %1740 = vector.broadcast %cst_141 : f32 to vector<8x128xf32>
      %c0_142 = arith.constant 0 : index
      %c0_143 = arith.constant 0 : index
      %1741 = vector.load %arg10[%c0_142, %c0_143] : memref<8x128xf32, #tpu.memory_space<vmem>>, vector<8x128xf32>
      tpu.vector_store %arg10[%c0_142, %c0_143], %1740 {strides = array<i32>} : memref<8x128xf32, #tpu.memory_space<vmem>>, vector<8x128xf32>,
      %cst_144 = arith.constant 0.000000e+00 : f32
      %1742 = vector.broadcast %cst_144 : f32 to vector<8x32xf32>
      %c0_145 = arith.constant 0 : index
      %c0_146 = arith.constant 0 : index
      %1743 = vector.load %arg11[%c0_145, %c0_146] : memref<8x32xf32, #tpu.memory_space<vmem>>, vector<8x32xf32>
      tpu.vector_store %arg11[%c0_145, %c0_146], %1742 {strides = array<i32>} : memref<8x32xf32, #tpu.memory_space<vmem>>, vector<8x32xf32>,
    } else {
    }
    %c0 = arith.constant 0 : index
    %c0_1 = arith.constant 0 : index
    %3 = vector.load %arg2[%c0, %c0_1] : memref<128x128xbf16, #tpu.memory_space<vmem>>, vector<128x128xbf16>
    %c0_2 = arith.constant 0 : index
    %c0_3 = arith.constant 0 : index
    %4 = vector.load %arg3[%c0_2, %c0_3] : memref<32x128xbf16, #tpu.memory_space<vmem>>, vector<32x128xbf16>
    %c0_4 = arith.constant 0 : index
    %c0_5 = arith.constant 0 : index
    %5 = vector.load %arg4[%c0_4, %c0_5] : memref<1x128xf32, #tpu.memory_space<vmem>>, vector<1x128xf32>
    %c0_6 = arith.constant 0 : index
    %c0_7 = arith.constant 0 : index
    %6 = vector.load %arg5[%c0_6, %c0_7] : memref<32x128xf32, #tpu.memory_space<vmem>>, vector<32x128xf32>
    %c0_8 = arith.constant 0 : index
    %c0_9 = arith.constant 0 : index
    %7 = vector.load %arg6[%c0_8, %c0_9] : memref<1x128xf32, #tpu.memory_space<vmem>>, vector<1x128xf32>
    %c0_10 = arith.constant 0 : index
    %c0_11 = arith.constant 0 : index
    %8 = vector.load %arg7[%c0_10, %c0_11] : memref<1x128xf32, #tpu.memory_space<vmem>>, vector<1x128xf32>
    %c0_12 = arith.constant 0 : index
    %c0_13 = arith.constant 0 : index
    %9 = vector.load %arg10[%c0_12, %c0_13] : memref<8x128xf32, #tpu.memory_space<vmem>>, vector<8x128xf32>
    %10 = arith.truncf %9 : vector<8x128xf32> to vector<8x128xbf16>
    %c0_14 = arith.constant 0 : index
    %c0_15 = arith.constant 0 : index
    %c0_16 = arith.constant 0 : index
    %11 = vector.load %arg1[%c0_14, %c0_15, %c0_16] : memref<8x8x128xf32, #tpu.memory_space<vmem>>, vector<1x8x128xf32>
    %12 = vector.shape_cast %11 : vector<1x8x128xf32> to vector<8x128xf32>
    %cst = arith.constant dense<0.000000e+00> : vector<8x128xf32>
    %13 = tpu.matmul %10, %3, %cst {dimension_numbers = #tpu.dot_dimension_numbers<[1], [0], [0], [1], [0, 0, 1, 1], [], []>} : vector<8x128xbf16>, vector<128x128xbf16>, vector<8x128xf32> -> vector<8x128xf32>
    %14 = arith.addf %12, %13 : vector<8x128xf32>
    %cst_17 = arith.constant 0.000000e+00 : f32
    %15 = vector.broadcast %cst_17 : f32 to vector<8x128xf32>
    %16 = vector.extract_strided_slice %6 {offsets = [0, 0], sizes = [1, 128], strides = [1, 1]} : vector<32x128xf32> to vector<1x128xf32>
    %17 = vector.broadcast %16 : vector<1x128xf32> to vector<8x128xf32>
    %18 = arith.cmpf oge, %14, %17 : vector<8x128xf32>
    %19 = arith.extui %18 : vector<8x128xi1> to vector<8x128xi32>
    %20 = arith.sitofp %19 : vector<8x128xi32> to vector<8x128xf32>
    %21 = arith.addf %15, %20 : vector<8x128xf32>
    %22 = vector.extract_strided_slice %6 {offsets = [1, 0], sizes = [1, 128], strides = [1, 1]} : vector<32x128xf32> to vector<1x128xf32>
    %23 = vector.broadcast %22 : vector<1x128xf32> to vector<8x128xf32>
    %24 = arith.cmpf oge, %14, %23 : vector<8x128xf32>
    %25 = arith.extui %24 : vector<8x128xi1> to vector<8x128xi32>
    %26 = arith.sitofp %25 : vector<8x128xi32> to vector<8x128xf32>
    %27 = arith.addf %21, %26 : vector<8x128xf32>
    %28 = vector.extract_strided_slice %6 {offsets = [2, 0], sizes = [1, 128], strides = [1, 1]} : vector<32x128xf32> to vector<1x128xf32>
    %29 = vector.broadcast %28 : vector<1x128xf32> to vector<8x128xf32>
    %30 = arith.cmpf oge, %14, %29 : vector<8x128xf32>
    %31 = arith.extui %30 : vector<8x128xi1> to vector<8x128xi32>
    %32 = arith.sitofp %31 : vector<8x128xi32> to vector<8x128xf32>
    %33 = arith.addf %27, %32 : vector<8x128xf32>
    %34 = vector.extract_strided_slice %6 {offsets = [3, 0], sizes = [1, 128], strides = [1, 1]} : vector<32x128xf32> to vector<1x128xf32>
    %35 = vector.broadcast %34 : vector<1x128xf32> to vector<8x128xf32>
    %36 = arith.cmpf oge, %14, %35 : vector<8x128xf32>
    %37 = arith.extui %36 : vector<8x128xi1> to vector<8x128xi32>
    %38 = arith.sitofp %37 : vector<8x128xi32> to vector<8x128xf32>
    %39 = arith.addf %33, %38 : vector<8x128xf32>
    %40 = vector.extract_strided_slice %6 {offsets = [4, 0], sizes = [1, 128], strides = [1, 1]} : vector<32x128xf32> to vector<1x128xf32>
    %41 = vector.broadcast %40 : vector<1x128xf32> to vector<8x128xf32>
    %42 = arith.cmpf oge, %14, %41 : vector<8x128xf32>
    %43 = arith.extui %42 : vector<8x128xi1> to vector<8x128xi32>
    %44 = arith.sitofp %43 : vector<8x128xi32> to vector<8x128xf32>
    %45 = arith.addf %39, %44 : vector<8x128xf32>
    %46 = vector.extract_strided_slice %6 {offsets = [5, 0], sizes = [1, 128], strides = [1, 1]} : vector<32x128xf32> to vector<1x128xf32>
    %47 = vector.broadcast %46 : vector<1x128xf32> to vector<8x128xf32>
    %48 = arith.cmpf oge, %14, %47 : vector<8x128xf32>
    %49 = arith.extui %48 : vector<8x128xi1> to vector<8x128xi32>
    %50 = arith.sitofp %49 : vector<8x128xi32> to vector<8x128xf32>
    %51 = arith.addf %45, %50 : vector<8x128xf32>
    %52 = vector.extract_strided_slice %6 {offsets = [6, 0], sizes = [1, 128], strides = [1, 1]} : vector<32x128xf32> to vector<1x128xf32>
    %53 = vector.broadcast %52 : vector<1x128xf32> to vector<8x128xf32>
    %54 = arith.cmpf oge, %14, %53 : vector<8x128xf32>
    %55 = arith.extui %54 : vector<8x128xi1> to vector<8x128xi32>
    %56 = arith.sitofp %55 : vector<8x128xi32> to vector<8x128xf32>
    %57 = arith.addf %51, %56 : vector<8x128xf32>
    %58 = vector.extract_strided_slice %6 {offsets = [7, 0], sizes = [1, 128], strides = [1, 1]} : vector<32x128xf32> to vector<1x128xf32>
    %59 = vector.broadcast %58 : vector<1x128xf32> to vector<8x128xf32>
    %60 = arith.cmpf oge, %14, %59 : vector<8x128xf32>
    %61 = arith.extui %60 : vector<8x128xi1> to vector<8x128xi32>
    %62 = arith.sitofp %61 : vector<8x128xi32> to vector<8x128xf32>
    %63 = arith.addf %57, %62 : vector<8x128xf32>
    %64 = vector.extract_strided_slice %6 {offsets = [8, 0], sizes = [1, 128], strides = [1, 1]} : vector<32x128xf32> to vector<1x128xf32>
    %65 = vector.broadcast %64 : vector<1x128xf32> to vector<8x128xf32>
    %66 = arith.cmpf oge, %14, %65 : vector<8x128xf32>
    %67 = arith.extui %66 : vector<8x128xi1> to vector<8x128xi32>
    %68 = arith.sitofp %67 : vector<8x128xi32> to vector<8x128xf32>
    %69 = arith.addf %63, %68 : vector<8x128xf32>
    %70 = vector.extract_strided_slice %6 {offsets = [9, 0], sizes = [1, 128], strides = [1, 1]} : vector<32x128xf32> to vector<1x128xf32>
    %71 = vector.broadcast %70 : vector<1x128xf32> to vector<8x128xf32>
    %72 = arith.cmpf oge, %14, %71 : vector<8x128xf32>
    %73 = arith.extui %72 : vector<8x128xi1> to vector<8x128xi32>
    %74 = arith.sitofp %73 : vector<8x128xi32> to vector<8x128xf32>
    %75 = arith.addf %69, %74 : vector<8x128xf32>
    %76 = vector.extract_strided_slice %6 {offsets = [10, 0], sizes = [1, 128], strides = [1, 1]} : vector<32x128xf32> to vector<1x128xf32>
    %77 = vector.broadcast %76 : vector<1x128xf32> to vector<8x128xf32>
    %78 = arith.cmpf oge, %14, %77 : vector<8x128xf32>
    %79 = arith.extui %78 : vector<8x128xi1> to vector<8x128xi32>
    %80 = arith.sitofp %79 : vector<8x128xi32> to vector<8x128xf32>
    %81 = arith.addf %75, %80 : vector<8x128xf32>
    %82 = vector.extract_strided_slice %6 {offsets = [11, 0], sizes = [1, 128], strides = [1, 1]} : vector<32x128xf32> to vector<1x128xf32>
    %83 = vector.broadcast %82 : vector<1x128xf32> to vector<8x128xf32>
    %84 = arith.cmpf oge, %14, %83 : vector<8x128xf32>
    %85 = arith.extui %84 : vector<8x128xi1> to vector<8x128xi32>
    %86 = arith.sitofp %85 : vector<8x128xi32> to vector<8x128xf32>
    %87 = arith.addf %81, %86 : vector<8x128xf32>
    %88 = vector.extract_strided_slice %6 {offsets = [12, 0], sizes = [1, 128], strides = [1, 1]} : vector<32x128xf32> to vector<1x128xf32>
    %89 = vector.broadcast %88 : vector<1x128xf32> to vector<8x128xf32>
    %90 = arith.cmpf oge, %14, %89 : vector<8x128xf32>
    %91 = arith.extui %90 : vector<8x128xi1> to vector<8x128xi32>
    %92 = arith.sitofp %91 : vector<8x128xi32> to vector<8x128xf32>
    %93 = arith.addf %87, %92 : vector<8x128xf32>
    %94 = vector.extract_strided_slice %6 {offsets = [13, 0], sizes = [1, 128], strides = [1, 1]} : vector<32x128xf32> to vector<1x128xf32>
    %95 = vector.broadcast %94 : vector<1x128xf32> to vector<8x128xf32>
    %96 = arith.cmpf oge, %14, %95 : vector<8x128xf32>
    %97 = arith.extui %96 : vector<8x128xi1> to vector<8x128xi32>
    %98 = arith.sitofp %97 : vector<8x128xi32> to vector<8x128xf32>
    %99 = arith.addf %93, %98 : vector<8x128xf32>
    %100 = vector.extract_strided_slice %6 {offsets = [14, 0], sizes = [1, 128], strides = [1, 1]} : vector<32x128xf32> to vector<1x128xf32>
    %101 = vector.broadcast %100 : vector<1x128xf32> to vector<8x128xf32>
    %102 = arith.cmpf oge, %14, %101 : vector<8x128xf32>
    %103 = arith.extui %102 : vector<8x128xi1> to vector<8x128xi32>
    %104 = arith.sitofp %103 : vector<8x128xi32> to vector<8x128xf32>
    %105 = arith.addf %99, %104 : vector<8x128xf32>
    %106 = vector.extract_strided_slice %6 {offsets = [15, 0], sizes = [1, 128], strides = [1, 1]} : vector<32x128xf32> to vector<1x128xf32>
    %107 = vector.broadcast %106 : vector<1x128xf32> to vector<8x128xf32>
    %108 = arith.cmpf oge, %14, %107 : vector<8x128xf32>
    %109 = arith.extui %108 : vector<8x128xi1> to vector<8x128xi32>
    %110 = arith.sitofp %109 : vector<8x128xi32> to vector<8x128xf32>
    %111 = arith.addf %105, %110 : vector<8x128xf32>
    %112 = vector.extract_strided_slice %6 {offsets = [16, 0], sizes = [1, 128], strides = [1, 1]} : vector<32x128xf32> to vector<1x128xf32>
    %113 = vector.broadcast %112 : vector<1x128xf32> to vector<8x128xf32>
    %114 = arith.cmpf oge, %14, %113 : vector<8x128xf32>
    %115 = arith.extui %114 : vector<8x128xi1> to vector<8x128xi32>
    %116 = arith.sitofp %115 : vector<8x128xi32> to vector<8x128xf32>
    %117 = arith.addf %111, %116 : vector<8x128xf32>
    %118 = vector.extract_strided_slice %6 {offsets = [17, 0], sizes = [1, 128], strides = [1, 1]} : vector<32x128xf32> to vector<1x128xf32>
    %119 = vector.broadcast %118 : vector<1x128xf32> to vector<8x128xf32>
    %120 = arith.cmpf oge, %14, %119 : vector<8x128xf32>
    %121 = arith.extui %120 : vector<8x128xi1> to vector<8x128xi32>
    %122 = arith.sitofp %121 : vector<8x128xi32> to vector<8x128xf32>
    %123 = arith.addf %117, %122 : vector<8x128xf32>
    %124 = vector.extract_strided_slice %6 {offsets = [18, 0], sizes = [1, 128], strides = [1, 1]} : vector<32x128xf32> to vector<1x128xf32>
    %125 = vector.broadcast %124 : vector<1x128xf32> to vector<8x128xf32>
    %126 = arith.cmpf oge, %14, %125 : vector<8x128xf32>
    %127 = arith.extui %126 : vector<8x128xi1> to vector<8x128xi32>
    %128 = arith.sitofp %127 : vector<8x128xi32> to vector<8x128xf32>
    %129 = arith.addf %123, %128 : vector<8x128xf32>
    %130 = vector.extract_strided_slice %6 {offsets = [19, 0], sizes = [1, 128], strides = [1, 1]} : vector<32x128xf32> to vector<1x128xf32>
    %131 = vector.broadcast %130 : vector<1x128xf32> to vector<8x128xf32>
    %132 = arith.cmpf oge, %14, %131 : vector<8x128xf32>
    %133 = arith.extui %132 : vector<8x128xi1> to vector<8x128xi32>
    %134 = arith.sitofp %133 : vector<8x128xi32> to vector<8x128xf32>
    %135 = arith.addf %129, %134 : vector<8x128xf32>
    %136 = vector.extract_strided_slice %6 {offsets = [20, 0], sizes = [1, 128], strides = [1, 1]} : vector<32x128xf32> to vector<1x128xf32>
    %137 = vector.broadcast %136 : vector<1x128xf32> to vector<8x128xf32>
    %138 = arith.cmpf oge, %14, %137 : vector<8x128xf32>
    %139 = arith.extui %138 : vector<8x128xi1> to vector<8x128xi32>
    %140 = arith.sitofp %139 : vector<8x128xi32> to vector<8x128xf32>
    %141 = arith.addf %135, %140 : vector<8x128xf32>
    %142 = vector.extract_strided_slice %6 {offsets = [21, 0], sizes = [1, 128], strides = [1, 1]} : vector<32x128xf32> to vector<1x128xf32>
    %143 = vector.broadcast %142 : vector<1x128xf32> to vector<8x128xf32>
    %144 = arith.cmpf oge, %14, %143 : vector<8x128xf32>
    %145 = arith.extui %144 : vector<8x128xi1> to vector<8x128xi32>
    %146 = arith.sitofp %145 : vector<8x128xi32> to vector<8x128xf32>
    %147 = arith.addf %141, %146 : vector<8x128xf32>
    %148 = vector.extract_strided_slice %6 {offsets = [22, 0], sizes = [1, 128], strides = [1, 1]} : vector<32x128xf32> to vector<1x128xf32>
    %149 = vector.broadcast %148 : vector<1x128xf32> to vector<8x128xf32>
    %150 = arith.cmpf oge, %14, %149 : vector<8x128xf32>
    %151 = arith.extui %150 : vector<8x128xi1> to vector<8x128xi32>
    %152 = arith.sitofp %151 : vector<8x128xi32> to vector<8x128xf32>
    %153 = arith.addf %147, %152 : vector<8x128xf32>
    %154 = vector.extract_strided_slice %6 {offsets = [23, 0], sizes = [1, 128], strides = [1, 1]} : vector<32x128xf32> to vector<1x128xf32>
    %155 = vector.broadcast %154 : vector<1x128xf32> to vector<8x128xf32>
    %156 = arith.cmpf oge, %14, %155 : vector<8x128xf32>
    %157 = arith.extui %156 : vector<8x128xi1> to vector<8x128xi32>
    %158 = arith.sitofp %157 : vector<8x128xi32> to vector<8x128xf32>
    %159 = arith.addf %153, %158 : vector<8x128xf32>
    %160 = vector.extract_strided_slice %6 {offsets = [24, 0], sizes = [1, 128], strides = [1, 1]} : vector<32x128xf32> to vector<1x128xf32>
    %161 = vector.broadcast %160 : vector<1x128xf32> to vector<8x128xf32>
    %162 = arith.cmpf oge, %14, %161 : vector<8x128xf32>
    %163 = arith.extui %162 : vector<8x128xi1> to vector<8x128xi32>
    %164 = arith.sitofp %163 : vector<8x128xi32> to vector<8x128xf32>
    %165 = arith.addf %159, %164 : vector<8x128xf32>
    %166 = vector.extract_strided_slice %6 {offsets = [25, 0], sizes = [1, 128], strides = [1, 1]} : vector<32x128xf32> to vector<1x128xf32>
    %167 = vector.broadcast %166 : vector<1x128xf32> to vector<8x128xf32>
    %168 = arith.cmpf oge, %14, %167 : vector<8x128xf32>
    %169 = arith.extui %168 : vector<8x128xi1> to vector<8x128xi32>
    %170 = arith.sitofp %169 : vector<8x128xi32> to vector<8x128xf32>
    %171 = arith.addf %165, %170 : vector<8x128xf32>
    %172 = vector.extract_strided_slice %6 {offsets = [26, 0], sizes = [1, 128], strides = [1, 1]} : vector<32x128xf32> to vector<1x128xf32>
    %173 = vector.broadcast %172 : vector<1x128xf32> to vector<8x128xf32>
    %174 = arith.cmpf oge, %14, %173 : vector<8x128xf32>
    %175 = arith.extui %174 : vector<8x128xi1> to vector<8x128xi32>
    %176 = arith.sitofp %175 : vector<8x128xi32> to vector<8x128xf32>
    %177 = arith.addf %171, %176 : vector<8x128xf32>
    %178 = vector.extract_strided_slice %6 {offsets = [27, 0], sizes = [1, 128], strides = [1, 1]} : vector<32x128xf32> to vector<1x128xf32>
    %179 = vector.broadcast %178 : vector<1x128xf32> to vector<8x128xf32>
    %180 = arith.cmpf oge, %14, %179 : vector<8x128xf32>
    %181 = arith.extui %180 : vector<8x128xi1> to vector<8x128xi32>
    %182 = arith.sitofp %181 : vector<8x128xi32> to vector<8x128xf32>
    %183 = arith.addf %177, %182 : vector<8x128xf32>
    %184 = vector.extract_strided_slice %6 {offsets = [28, 0], sizes = [1, 128], strides = [1, 1]} : vector<32x128xf32> to vector<1x128xf32>
    %185 = vector.broadcast %184 : vector<1x128xf32> to vector<8x128xf32>
    %186 = arith.cmpf oge, %14, %185 : vector<8x128xf32>
    %187 = arith.extui %186 : vector<8x128xi1> to vector<8x128xi32>
    %188 = arith.sitofp %187 : vector<8x128xi32> to vector<8x128xf32>
    %189 = arith.addf %183, %188 : vector<8x128xf32>
    %190 = vector.extract_strided_slice %6 {offsets = [29, 0], sizes = [1, 128], strides = [1, 1]} : vector<32x128xf32> to vector<1x128xf32>
    %191 = vector.broadcast %190 : vector<1x128xf32> to vector<8x128xf32>
    %192 = arith.cmpf oge, %14, %191 : vector<8x128xf32>
    %193 = arith.extui %192 : vector<8x128xi1> to vector<8x128xi32>
    %194 = arith.sitofp %193 : vector<8x128xi32> to vector<8x128xf32>
    %195 = arith.addf %189, %194 : vector<8x128xf32>
    %196 = vector.extract_strided_slice %6 {offsets = [30, 0], sizes = [1, 128], strides = [1, 1]} : vector<32x128xf32> to vector<1x128xf32>
    %197 = vector.broadcast %196 : vector<1x128xf32> to vector<8x128xf32>
    %198 = arith.cmpf oge, %14, %197 : vector<8x128xf32>
    %199 = arith.extui %198 : vector<8x128xi1> to vector<8x128xi32>
    %200 = arith.sitofp %199 : vector<8x128xi32> to vector<8x128xf32>
    %201 = arith.addf %195, %200 : vector<8x128xf32>
    %202 = vector.broadcast %7 : vector<1x128xf32> to vector<8x128xf32>
    %203 = arith.mulf %201, %202 : vector<8x128xf32>
    %204 = vector.broadcast %8 : vector<1x128xf32> to vector<8x128xf32>
    %205 = arith.addf %203, %204 : vector<8x128xf32>
    %206 = vector.extract_strided_slice %205 {offsets = [0, 0], sizes = [8, 32], strides = [1, 1]} : vector<8x128xf32> to vector<8x32xf32>
    %207 = vector.extract_strided_slice %205 {offsets = [0, 32], sizes = [8, 32], strides = [1, 1]} : vector<8x128xf32> to vector<8x32xf32>
    %208 = vector.extract_strided_slice %205 {offsets = [0, 64], sizes = [8, 32], strides = [1, 1]} : vector<8x128xf32> to vector<8x32xf32>
    %209 = vector.extract_strided_slice %205 {offsets = [0, 96], sizes = [8, 32], strides = [1, 1]} : vector<8x128xf32> to vector<8x32xf32>
    %c0_18 = arith.constant 0 : index
    %c0_19 = arith.constant 0 : index
    %210 = vector.load %arg11[%c0_18, %c0_19] : memref<8x32xf32, #tpu.memory_space<vmem>>, vector<8x32xf32>
    %211 = arith.mulf %207, %210 : vector<8x32xf32>
    %212 = arith.mulf %206, %208 : vector<8x32xf32>
    %213 = arith.addf %211, %212 : vector<8x32xf32>
    %214 = math.tanh %213 : vector<8x32xf32>
    %215 = arith.mulf %209, %214 : vector<8x32xf32>
    %216 = arith.truncf %215 : vector<8x32xf32> to vector<8x32xbf16>
    %cst_20 = arith.constant dense<0.000000e+00> : vector<8x128xf32>
    %217 = tpu.matmul %216, %4, %cst_20 {dimension_numbers = #tpu.dot_dimension_numbers<[1], [0], [0], [1], [0, 0, 1, 1], [], []>} : vector<8x32xbf16>, vector<32x128xbf16>, vector<8x128xf32> -> vector<8x128xf32>
    %218 = vector.broadcast %5 : vector<1x128xf32> to vector<8x128xf32>
    %219 = arith.addf %217, %218 : vector<8x128xf32>
    %c0_21 = arith.constant 0 : index
    %c0_22 = arith.constant 0 : index
    %220 = vector.load %arg11[%c0_21, %c0_22] : memref<8x32xf32, #tpu.memory_space<vmem>>, vector<8x32xf32>
    tpu.vector_store %arg11[%c0_21, %c0_22], %213 {strides = array<i32>} : memref<8x32xf32, #tpu.memory_space<vmem>>, vector<8x32xf32>,
    %c0_23 = arith.constant 0 : index
    %c0_24 = arith.constant 0 : index
    %221 = vector.load %arg10[%c0_23, %c0_24] : memref<8x128xf32, #tpu.memory_space<vmem>>, vector<8x128xf32>
    tpu.vector_store %arg10[%c0_23, %c0_24], %219 {strides = array<i32>} : memref<8x128xf32, #tpu.memory_space<vmem>>, vector<8x128xf32>,
    %c0_25 = arith.constant 0 : index
    %c0_26 = arith.constant 0 : index
    %c0_27 = arith.constant 0 : index
    %222 = vector.load %arg8[%c0_25, %c0_26, %c0_27] : memref<8x8x128xf32, #tpu.memory_space<vmem>>, vector<1x8x128xf32>
    %223 = vector.shape_cast %222 : vector<1x8x128xf32> to vector<8x128xf32>
    %224 = vector.shape_cast %219 : vector<8x128xf32> to vector<1x8x128xf32>
    tpu.vector_store %arg8[%c0_25, %c0_26, %c0_27], %224 {strides = array<i32>} : memref<8x8x128xf32, #tpu.memory_space<vmem>>, vector<1x8x128xf32>,
    %c0_28 = arith.constant 0 : index
    %c0_29 = arith.constant 0 : index
    %225 = vector.load %arg10[%c0_28, %c0_29] : memref<8x128xf32, #tpu.memory_space<vmem>>, vector<8x128xf32>
    %226 = arith.truncf %225 : vector<8x128xf32> to vector<8x128xbf16>
    %c1 = arith.constant 1 : index
    %c0_30 = arith.constant 0 : index
    %c0_31 = arith.constant 0 : index
    %227 = vector.load %arg1[%c1, %c0_30, %c0_31] : memref<8x8x128xf32, #tpu.memory_space<vmem>>, vector<1x8x128xf32>
    %228 = vector.shape_cast %227 : vector<1x8x128xf32> to vector<8x128xf32>
    %cst_32 = arith.constant dense<0.000000e+00> : vector<8x128xf32>
    %229 = tpu.matmul %226, %3, %cst_32 {dimension_numbers = #tpu.dot_dimension_numbers<[1], [0], [0], [1], [0, 0, 1, 1], [], []>} : vector<8x128xbf16>, vector<128x128xbf16>, vector<8x128xf32> -> vector<8x128xf32>
    %230 = arith.addf %228, %229 : vector<8x128xf32>
    %cst_33 = arith.constant 0.000000e+00 : f32
    %231 = vector.broadcast %cst_33 : f32 to vector<8x128xf32>
    %232 = vector.extract_strided_slice %6 {offsets = [0, 0], sizes = [1, 128], strides = [1, 1]} : vector<32x128xf32> to vector<1x128xf32>
    %233 = vector.broadcast %232 : vector<1x128xf32> to vector<8x128xf32>
    %234 = arith.cmpf oge, %230, %233 : vector<8x128xf32>
    %235 = arith.extui %234 : vector<8x128xi1> to vector<8x128xi32>
    %236 = arith.sitofp %235 : vector<8x128xi32> to vector<8x128xf32>
    %237 = arith.addf %231, %236 : vector<8x128xf32>
    %238 = vector.extract_strided_slice %6 {offsets = [1, 0], sizes = [1, 128], strides = [1, 1]} : vector<32x128xf32> to vector<1x128xf32>
    %239 = vector.broadcast %238 : vector<1x128xf32> to vector<8x128xf32>
    %240 = arith.cmpf oge, %230, %239 : vector<8x128xf32>
    %241 = arith.extui %240 : vector<8x128xi1> to vector<8x128xi32>
    %242 = arith.sitofp %241 : vector<8x128xi32> to vector<8x128xf32>
    %243 = arith.addf %237, %242 : vector<8x128xf32>
    %244 = vector.extract_strided_slice %6 {offsets = [2, 0], sizes = [1, 128], strides = [1, 1]} : vector<32x128xf32> to vector<1x128xf32>
    %245 = vector.broadcast %244 : vector<1x128xf32> to vector<8x128xf32>
    %246 = arith.cmpf oge, %230, %245 : vector<8x128xf32>
    %247 = arith.extui %246 : vector<8x128xi1> to vector<8x128xi32>
    %248 = arith.sitofp %247 : vector<8x128xi32> to vector<8x128xf32>
    %249 = arith.addf %243, %248 : vector<8x128xf32>
    %250 = vector.extract_strided_slice %6 {offsets = [3, 0], sizes = [1, 128], strides = [1, 1]} : vector<32x128xf32> to vector<1x128xf32>
    %251 = vector.broadcast %250 : vector<1x128xf32> to vector<8x128xf32>
    %252 = arith.cmpf oge, %230, %251 : vector<8x128xf32>
    %253 = arith.extui %252 : vector<8x128xi1> to vector<8x128xi32>
    %254 = arith.sitofp %253 : vector<8x128xi32> to vector<8x128xf32>
    %255 = arith.addf %249, %254 : vector<8x128xf32>
    %256 = vector.extract_strided_slice %6 {offsets = [4, 0], sizes = [1, 128], strides = [1, 1]} : vector<32x128xf32> to vector<1x128xf32>
    %257 = vector.broadcast %256 : vector<1x128xf32> to vector<8x128xf32>
    %258 = arith.cmpf oge, %230, %257 : vector<8x128xf32>
    %259 = arith.extui %258 : vector<8x128xi1> to vector<8x128xi32>
    %260 = arith.sitofp %259 : vector<8x128xi32> to vector<8x128xf32>
    %261 = arith.addf %255, %260 : vector<8x128xf32>
    %262 = vector.extract_strided_slice %6 {offsets = [5, 0], sizes = [1, 128], strides = [1, 1]} : vector<32x128xf32> to vector<1x128xf32>
    %263 = vector.broadcast %262 : vector<1x128xf32> to vector<8x128xf32>
    %264 = arith.cmpf oge, %230, %263 : vector<8x128xf32>
    %265 = arith.extui %264 : vector<8x128xi1> to vector<8x128xi32>
    %266 = arith.sitofp %265 : vector<8x128xi32> to vector<8x128xf32>
    %267 = arith.addf %261, %266 : vector<8x128xf32>
    %268 = vector.extract_strided_slice %6 {offsets = [6, 0], sizes = [1, 128], strides = [1, 1]} : vector<32x128xf32> to vector<1x128xf32>
    %269 = vector.broadcast %268 : vector<1x128xf32> to vector<8x128xf32>
    %270 = arith.cmpf oge, %230, %269 : vector<8x128xf32>
    %271 = arith.extui %270 : vector<8x128xi1> to vector<8x128xi32>
    %272 = arith.sitofp %271 : vector<8x128xi32> to vector<8x128xf32>
    %273 = arith.addf %267, %272 : vector<8x128xf32>
    %274 = vector.extract_strided_slice %6 {offsets = [7, 0], sizes = [1, 128], strides = [1, 1]} : vector<32x128xf32> to vector<1x128xf32>
    %275 = vector.broadcast %274 : vector<1x128xf32> to vector<8x128xf32>
    %276 = arith.cmpf oge, %230, %275 : vector<8x128xf32>
    %277 = arith.extui %276 : vector<8x128xi1> to vector<8x128xi32>
    %278 = arith.sitofp %277 : vector<8x128xi32> to vector<8x128xf32>
    %279 = arith.addf %273, %278 : vector<8x128xf32>
    %280 = vector.extract_strided_slice %6 {offsets = [8, 0], sizes = [1, 128], strides = [1, 1]} : vector<32x128xf32> to vector<1x128xf32>
    %281 = vector.broadcast %280 : vector<1x128xf32> to vector<8x128xf32>
    %282 = arith.cmpf oge, %230, %281 : vector<8x128xf32>
    %283 = arith.extui %282 : vector<8x128xi1> to vector<8x128xi32>
    %284 = arith.sitofp %283 : vector<8x128xi32> to vector<8x128xf32>
    %285 = arith.addf %279, %284 : vector<8x128xf32>
    %286 = vector.extract_strided_slice %6 {offsets = [9, 0], sizes = [1, 128], strides = [1, 1]} : vector<32x128xf32> to vector<1x128xf32>
    %287 = vector.broadcast %286 : vector<1x128xf32> to vector<8x128xf32>
    %288 = arith.cmpf oge, %230, %287 : vector<8x128xf32>
    %289 = arith.extui %288 : vector<8x128xi1> to vector<8x128xi32>
    %290 = arith.sitofp %289 : vector<8x128xi32> to vector<8x128xf32>
    %291 = arith.addf %285, %290 : vector<8x128xf32>
    %292 = vector.extract_strided_slice %6 {offsets = [10, 0], sizes = [1, 128], strides = [1, 1]} : vector<32x128xf32> to vector<1x128xf32>
    %293 = vector.broadcast %292 : vector<1x128xf32> to vector<8x128xf32>
    %294 = arith.cmpf oge, %230, %293 : vector<8x128xf32>
    %295 = arith.extui %294 : vector<8x128xi1> to vector<8x128xi32>
    %296 = arith.sitofp %295 : vector<8x128xi32> to vector<8x128xf32>
    %297 = arith.addf %291, %296 : vector<8x128xf32>
    %298 = vector.extract_strided_slice %6 {offsets = [11, 0], sizes = [1, 128], strides = [1, 1]} : vector<32x128xf32> to vector<1x128xf32>
    %299 = vector.broadcast %298 : vector<1x128xf32> to vector<8x128xf32>
    %300 = arith.cmpf oge, %230, %299 : vector<8x128xf32>
    %301 = arith.extui %300 : vector<8x128xi1> to vector<8x128xi32>
    %302 = arith.sitofp %301 : vector<8x128xi32> to vector<8x128xf32>
    %303 = arith.addf %297, %302 : vector<8x128xf32>
    %304 = vector.extract_strided_slice %6 {offsets = [12, 0], sizes = [1, 128], strides = [1, 1]} : vector<32x128xf32> to vector<1x128xf32>
    %305 = vector.broadcast %304 : vector<1x128xf32> to vector<8x128xf32>
    %306 = arith.cmpf oge, %230, %305 : vector<8x128xf32>
    %307 = arith.extui %306 : vector<8x128xi1> to vector<8x128xi32>
    %308 = arith.sitofp %307 : vector<8x128xi32> to vector<8x128xf32>
    %309 = arith.addf %303, %308 : vector<8x128xf32>
    %310 = vector.extract_strided_slice %6 {offsets = [13, 0], sizes = [1, 128], strides = [1, 1]} : vector<32x128xf32> to vector<1x128xf32>
    %311 = vector.broadcast %310 : vector<1x128xf32> to vector<8x128xf32>
    %312 = arith.cmpf oge, %230, %311 : vector<8x128xf32>
    %313 = arith.extui %312 : vector<8x128xi1> to vector<8x128xi32>
    %314 = arith.sitofp %313 : vector<8x128xi32> to vector<8x128xf32>
    %315 = arith.addf %309, %314 : vector<8x128xf32>
    %316 = vector.extract_strided_slice %6 {offsets = [14, 0], sizes = [1, 128], strides = [1, 1]} : vector<32x128xf32> to vector<1x128xf32>
    %317 = vector.broadcast %316 : vector<1x128xf32> to vector<8x128xf32>
    %318 = arith.cmpf oge, %230, %317 : vector<8x128xf32>
    %319 = arith.extui %318 : vector<8x128xi1> to vector<8x128xi32>
    %320 = arith.sitofp %319 : vector<8x128xi32> to vector<8x128xf32>
    %321 = arith.addf %315, %320 : vector<8x128xf32>
    %322 = vector.extract_strided_slice %6 {offsets = [15, 0], sizes = [1, 128], strides = [1, 1]} : vector<32x128xf32> to vector<1x128xf32>
    %323 = vector.broadcast %322 : vector<1x128xf32> to vector<8x128xf32>
    %324 = arith.cmpf oge, %230, %323 : vector<8x128xf32>
    %325 = arith.extui %324 : vector<8x128xi1> to vector<8x128xi32>
    %326 = arith.sitofp %325 : vector<8x128xi32> to vector<8x128xf32>
    %327 = arith.addf %321, %326 : vector<8x128xf32>
    %328 = vector.extract_strided_slice %6 {offsets = [16, 0], sizes = [1, 128], strides = [1, 1]} : vector<32x128xf32> to vector<1x128xf32>
    %329 = vector.broadcast %328 : vector<1x128xf32> to vector<8x128xf32>
    %330 = arith.cmpf oge, %230, %329 : vector<8x128xf32>
    %331 = arith.extui %330 : vector<8x128xi1> to vector<8x128xi32>
    %332 = arith.sitofp %331 : vector<8x128xi32> to vector<8x128xf32>
    %333 = arith.addf %327, %332 : vector<8x128xf32>
    %334 = vector.extract_strided_slice %6 {offsets = [17, 0], sizes = [1, 128], strides = [1, 1]} : vector<32x128xf32> to vector<1x128xf32>
    %335 = vector.broadcast %334 : vector<1x128xf32> to vector<8x128xf32>
    %336 = arith.cmpf oge, %230, %335 : vector<8x128xf32>
    %337 = arith.extui %336 : vector<8x128xi1> to vector<8x128xi32>
    %338 = arith.sitofp %337 : vector<8x128xi32> to vector<8x128xf32>
    %339 = arith.addf %333, %338 : vector<8x128xf32>
    %340 = vector.extract_strided_slice %6 {offsets = [18, 0], sizes = [1, 128], strides = [1, 1]} : vector<32x128xf32> to vector<1x128xf32>
    %341 = vector.broadcast %340 : vector<1x128xf32> to vector<8x128xf32>
    %342 = arith.cmpf oge, %230, %341 : vector<8x128xf32>
    %343 = arith.extui %342 : vector<8x128xi1> to vector<8x128xi32>
    %344 = arith.sitofp %343 : vector<8x128xi32> to vector<8x128xf32>
    %345 = arith.addf %339, %344 : vector<8x128xf32>
    %346 = vector.extract_strided_slice %6 {offsets = [19, 0], sizes = [1, 128], strides = [1, 1]} : vector<32x128xf32> to vector<1x128xf32>
    %347 = vector.broadcast %346 : vector<1x128xf32> to vector<8x128xf32>
    %348 = arith.cmpf oge, %230, %347 : vector<8x128xf32>
    %349 = arith.extui %348 : vector<8x128xi1> to vector<8x128xi32>
    %350 = arith.sitofp %349 : vector<8x128xi32> to vector<8x128xf32>
    %351 = arith.addf %345, %350 : vector<8x128xf32>
    %352 = vector.extract_strided_slice %6 {offsets = [20, 0], sizes = [1, 128], strides = [1, 1]} : vector<32x128xf32> to vector<1x128xf32>
    %353 = vector.broadcast %352 : vector<1x128xf32> to vector<8x128xf32>
    %354 = arith.cmpf oge, %230, %353 : vector<8x128xf32>
    %355 = arith.extui %354 : vector<8x128xi1> to vector<8x128xi32>
    %356 = arith.sitofp %355 : vector<8x128xi32> to vector<8x128xf32>
    %357 = arith.addf %351, %356 : vector<8x128xf32>
    %358 = vector.extract_strided_slice %6 {offsets = [21, 0], sizes = [1, 128], strides = [1, 1]} : vector<32x128xf32> to vector<1x128xf32>
    %359 = vector.broadcast %358 : vector<1x128xf32> to vector<8x128xf32>
    %360 = arith.cmpf oge, %230, %359 : vector<8x128xf32>
    %361 = arith.extui %360 : vector<8x128xi1> to vector<8x128xi32>
    %362 = arith.sitofp %361 : vector<8x128xi32> to vector<8x128xf32>
    %363 = arith.addf %357, %362 : vector<8x128xf32>
    %364 = vector.extract_strided_slice %6 {offsets = [22, 0], sizes = [1, 128], strides = [1, 1]} : vector<32x128xf32> to vector<1x128xf32>
    %365 = vector.broadcast %364 : vector<1x128xf32> to vector<8x128xf32>
    %366 = arith.cmpf oge, %230, %365 : vector<8x128xf32>
    %367 = arith.extui %366 : vector<8x128xi1> to vector<8x128xi32>
    %368 = arith.sitofp %367 : vector<8x128xi32> to vector<8x128xf32>
    %369 = arith.addf %363, %368 : vector<8x128xf32>
    %370 = vector.extract_strided_slice %6 {offsets = [23, 0], sizes = [1, 128], strides = [1, 1]} : vector<32x128xf32> to vector<1x128xf32>
    %371 = vector.broadcast %370 : vector<1x128xf32> to vector<8x128xf32>
    %372 = arith.cmpf oge, %230, %371 : vector<8x128xf32>
    %373 = arith.extui %372 : vector<8x128xi1> to vector<8x128xi32>
    %374 = arith.sitofp %373 : vector<8x128xi32> to vector<8x128xf32>
    %375 = arith.addf %369, %374 : vector<8x128xf32>
    %376 = vector.extract_strided_slice %6 {offsets = [24, 0], sizes = [1, 128], strides = [1, 1]} : vector<32x128xf32> to vector<1x128xf32>
    %377 = vector.broadcast %376 : vector<1x128xf32> to vector<8x128xf32>
    %378 = arith.cmpf oge, %230, %377 : vector<8x128xf32>
    %379 = arith.extui %378 : vector<8x128xi1> to vector<8x128xi32>
    %380 = arith.sitofp %379 : vector<8x128xi32> to vector<8x128xf32>
    %381 = arith.addf %375, %380 : vector<8x128xf32>
    %382 = vector.extract_strided_slice %6 {offsets = [25, 0], sizes = [1, 128], strides = [1, 1]} : vector<32x128xf32> to vector<1x128xf32>
    %383 = vector.broadcast %382 : vector<1x128xf32> to vector<8x128xf32>
    %384 = arith.cmpf oge, %230, %383 : vector<8x128xf32>
    %385 = arith.extui %384 : vector<8x128xi1> to vector<8x128xi32>
    %386 = arith.sitofp %385 : vector<8x128xi32> to vector<8x128xf32>
    %387 = arith.addf %381, %386 : vector<8x128xf32>
    %388 = vector.extract_strided_slice %6 {offsets = [26, 0], sizes = [1, 128], strides = [1, 1]} : vector<32x128xf32> to vector<1x128xf32>
    %389 = vector.broadcast %388 : vector<1x128xf32> to vector<8x128xf32>
    %390 = arith.cmpf oge, %230, %389 : vector<8x128xf32>
    %391 = arith.extui %390 : vector<8x128xi1> to vector<8x128xi32>
    %392 = arith.sitofp %391 : vector<8x128xi32> to vector<8x128xf32>
    %393 = arith.addf %387, %392 : vector<8x128xf32>
    %394 = vector.extract_strided_slice %6 {offsets = [27, 0], sizes = [1, 128], strides = [1, 1]} : vector<32x128xf32> to vector<1x128xf32>
    %395 = vector.broadcast %394 : vector<1x128xf32> to vector<8x128xf32>
    %396 = arith.cmpf oge, %230, %395 : vector<8x128xf32>
    %397 = arith.extui %396 : vector<8x128xi1> to vector<8x128xi32>
    %398 = arith.sitofp %397 : vector<8x128xi32> to vector<8x128xf32>
    %399 = arith.addf %393, %398 : vector<8x128xf32>
    %400 = vector.extract_strided_slice %6 {offsets = [28, 0], sizes = [1, 128], strides = [1, 1]} : vector<32x128xf32> to vector<1x128xf32>
    %401 = vector.broadcast %400 : vector<1x128xf32> to vector<8x128xf32>
    %402 = arith.cmpf oge, %230, %401 : vector<8x128xf32>
    %403 = arith.extui %402 : vector<8x128xi1> to vector<8x128xi32>
    %404 = arith.sitofp %403 : vector<8x128xi32> to vector<8x128xf32>
    %405 = arith.addf %399, %404 : vector<8x128xf32>
    %406 = vector.extract_strided_slice %6 {offsets = [29, 0], sizes = [1, 128], strides = [1, 1]} : vector<32x128xf32> to vector<1x128xf32>
    %407 = vector.broadcast %406 : vector<1x128xf32> to vector<8x128xf32>
    %408 = arith.cmpf oge, %230, %407 : vector<8x128xf32>
    %409 = arith.extui %408 : vector<8x128xi1> to vector<8x128xi32>
    %410 = arith.sitofp %409 : vector<8x128xi32> to vector<8x128xf32>
    %411 = arith.addf %405, %410 : vector<8x128xf32>
    %412 = vector.extract_strided_slice %6 {offsets = [30, 0], sizes = [1, 128], strides = [1, 1]} : vector<32x128xf32> to vector<1x128xf32>
    %413 = vector.broadcast %412 : vector<1x128xf32> to vector<8x128xf32>
    %414 = arith.cmpf oge, %230, %413 : vector<8x128xf32>
    %415 = arith.extui %414 : vector<8x128xi1> to vector<8x128xi32>
    %416 = arith.sitofp %415 : vector<8x128xi32> to vector<8x128xf32>
    %417 = arith.addf %411, %416 : vector<8x128xf32>
    %418 = vector.broadcast %7 : vector<1x128xf32> to vector<8x128xf32>
    %419 = arith.mulf %417, %418 : vector<8x128xf32>
    %420 = vector.broadcast %8 : vector<1x128xf32> to vector<8x128xf32>
    %421 = arith.addf %419, %420 : vector<8x128xf32>
    %422 = vector.extract_strided_slice %421 {offsets = [0, 0], sizes = [8, 32], strides = [1, 1]} : vector<8x128xf32> to vector<8x32xf32>
    %423 = vector.extract_strided_slice %421 {offsets = [0, 32], sizes = [8, 32], strides = [1, 1]} : vector<8x128xf32> to vector<8x32xf32>
    %424 = vector.extract_strided_slice %421 {offsets = [0, 64], sizes = [8, 32], strides = [1, 1]} : vector<8x128xf32> to vector<8x32xf32>
    %425 = vector.extract_strided_slice %421 {offsets = [0, 96], sizes = [8, 32], strides = [1, 1]} : vector<8x128xf32> to vector<8x32xf32>
    %c0_34 = arith.constant 0 : index
    %c0_35 = arith.constant 0 : index
    %426 = vector.load %arg11[%c0_34, %c0_35] : memref<8x32xf32, #tpu.memory_space<vmem>>, vector<8x32xf32>
    %427 = arith.mulf %423, %426 : vector<8x32xf32>
    %428 = arith.mulf %422, %424 : vector<8x32xf32>
    %429 = arith.addf %427, %428 : vector<8x32xf32>
    %430 = math.tanh %429 : vector<8x32xf32>
    %431 = arith.mulf %425, %430 : vector<8x32xf32>
    %432 = arith.truncf %431 : vector<8x32xf32> to vector<8x32xbf16>
    %cst_36 = arith.constant dense<0.000000e+00> : vector<8x128xf32>
    %433 = tpu.matmul %432, %4, %cst_36 {dimension_numbers = #tpu.dot_dimension_numbers<[1], [0], [0], [1], [0, 0, 1, 1], [], []>} : vector<8x32xbf16>, vector<32x128xbf16>, vector<8x128xf32> -> vector<8x128xf32>
    %434 = vector.broadcast %5 : vector<1x128xf32> to vector<8x128xf32>
    %435 = arith.addf %433, %434 : vector<8x128xf32>
    %c0_37 = arith.constant 0 : index
    %c0_38 = arith.constant 0 : index
    %436 = vector.load %arg11[%c0_37, %c0_38] : memref<8x32xf32, #tpu.memory_space<vmem>>, vector<8x32xf32>
    tpu.vector_store %arg11[%c0_37, %c0_38], %429 {strides = array<i32>} : memref<8x32xf32, #tpu.memory_space<vmem>>, vector<8x32xf32>,
    %c0_39 = arith.constant 0 : index
    %c0_40 = arith.constant 0 : index
    %437 = vector.load %arg10[%c0_39, %c0_40] : memref<8x128xf32, #tpu.memory_space<vmem>>, vector<8x128xf32>
    tpu.vector_store %arg10[%c0_39, %c0_40], %435 {strides = array<i32>} : memref<8x128xf32, #tpu.memory_space<vmem>>, vector<8x128xf32>,
    %c1_41 = arith.constant 1 : index
    %c0_42 = arith.constant 0 : index
    %c0_43 = arith.constant 0 : index
    %438 = vector.load %arg8[%c1_41, %c0_42, %c0_43] : memref<8x8x128xf32, #tpu.memory_space<vmem>>, vector<1x8x128xf32>
    %439 = vector.shape_cast %438 : vector<1x8x128xf32> to vector<8x128xf32>
    %440 = vector.shape_cast %435 : vector<8x128xf32> to vector<1x8x128xf32>
    tpu.vector_store %arg8[%c1_41, %c0_42, %c0_43], %440 {strides = array<i32>} : memref<8x8x128xf32, #tpu.memory_space<vmem>>, vector<1x8x128xf32>,
    %c0_44 = arith.constant 0 : index
    %c0_45 = arith.constant 0 : index
    %441 = vector.load %arg10[%c0_44, %c0_45] : memref<8x128xf32, #tpu.memory_space<vmem>>, vector<8x128xf32>
    %442 = arith.truncf %441 : vector<8x128xf32> to vector<8x128xbf16>
    %c2 = arith.constant 2 : index
    %c0_46 = arith.constant 0 : index
    %c0_47 = arith.constant 0 : index
    %443 = vector.load %arg1[%c2, %c0_46, %c0_47] : memref<8x8x128xf32, #tpu.memory_space<vmem>>, vector<1x8x128xf32>
    %444 = vector.shape_cast %443 : vector<1x8x128xf32> to vector<8x128xf32>
    %cst_48 = arith.constant dense<0.000000e+00> : vector<8x128xf32>
    %445 = tpu.matmul %442, %3, %cst_48 {dimension_numbers = #tpu.dot_dimension_numbers<[1], [0], [0], [1], [0, 0, 1, 1], [], []>} : vector<8x128xbf16>, vector<128x128xbf16>, vector<8x128xf32> -> vector<8x128xf32>
    %446 = arith.addf %444, %445 : vector<8x128xf32>
    %cst_49 = arith.constant 0.000000e+00 : f32
    %447 = vector.broadcast %cst_49 : f32 to vector<8x128xf32>
    %448 = vector.extract_strided_slice %6 {offsets = [0, 0], sizes = [1, 128], strides = [1, 1]} : vector<32x128xf32> to vector<1x128xf32>
    %449 = vector.broadcast %448 : vector<1x128xf32> to vector<8x128xf32>
    %450 = arith.cmpf oge, %446, %449 : vector<8x128xf32>
    %451 = arith.extui %450 : vector<8x128xi1> to vector<8x128xi32>
    %452 = arith.sitofp %451 : vector<8x128xi32> to vector<8x128xf32>
    %453 = arith.addf %447, %452 : vector<8x128xf32>
    %454 = vector.extract_strided_slice %6 {offsets = [1, 0], sizes = [1, 128], strides = [1, 1]} : vector<32x128xf32> to vector<1x128xf32>
    %455 = vector.broadcast %454 : vector<1x128xf32> to vector<8x128xf32>
    %456 = arith.cmpf oge, %446, %455 : vector<8x128xf32>
    %457 = arith.extui %456 : vector<8x128xi1> to vector<8x128xi32>
    %458 = arith.sitofp %457 : vector<8x128xi32> to vector<8x128xf32>
    %459 = arith.addf %453, %458 : vector<8x128xf32>
    %460 = vector.extract_strided_slice %6 {offsets = [2, 0], sizes = [1, 128], strides = [1, 1]} : vector<32x128xf32> to vector<1x128xf32>
    %461 = vector.broadcast %460 : vector<1x128xf32> to vector<8x128xf32>
    %462 = arith.cmpf oge, %446, %461 : vector<8x128xf32>
    %463 = arith.extui %462 : vector<8x128xi1> to vector<8x128xi32>
    %464 = arith.sitofp %463 : vector<8x128xi32> to vector<8x128xf32>
    %465 = arith.addf %459, %464 : vector<8x128xf32>
    %466 = vector.extract_strided_slice %6 {offsets = [3, 0], sizes = [1, 128], strides = [1, 1]} : vector<32x128xf32> to vector<1x128xf32>
    %467 = vector.broadcast %466 : vector<1x128xf32> to vector<8x128xf32>
    %468 = arith.cmpf oge, %446, %467 : vector<8x128xf32>
    %469 = arith.extui %468 : vector<8x128xi1> to vector<8x128xi32>
    %470 = arith.sitofp %469 : vector<8x128xi32> to vector<8x128xf32>
    %471 = arith.addf %465, %470 : vector<8x128xf32>
    %472 = vector.extract_strided_slice %6 {offsets = [4, 0], sizes = [1, 128], strides = [1, 1]} : vector<32x128xf32> to vector<1x128xf32>
    %473 = vector.broadcast %472 : vector<1x128xf32> to vector<8x128xf32>
    %474 = arith.cmpf oge, %446, %473 : vector<8x128xf32>
    %475 = arith.extui %474 : vector<8x128xi1> to vector<8x128xi32>
    %476 = arith.sitofp %475 : vector<8x128xi32> to vector<8x128xf32>
    %477 = arith.addf %471, %476 : vector<8x128xf32>
    %478 = vector.extract_strided_slice %6 {offsets = [5, 0], sizes = [1, 128], strides = [1, 1]} : vector<32x128xf32> to vector<1x128xf32>
    %479 = vector.broadcast %478 : vector<1x128xf32> to vector<8x128xf32>
    %480 = arith.cmpf oge, %446, %479 : vector<8x128xf32>
    %481 = arith.extui %480 : vector<8x128xi1> to vector<8x128xi32>
    %482 = arith.sitofp %481 : vector<8x128xi32> to vector<8x128xf32>
    %483 = arith.addf %477, %482 : vector<8x128xf32>
    %484 = vector.extract_strided_slice %6 {offsets = [6, 0], sizes = [1, 128], strides = [1, 1]} : vector<32x128xf32> to vector<1x128xf32>
    %485 = vector.broadcast %484 : vector<1x128xf32> to vector<8x128xf32>
    %486 = arith.cmpf oge, %446, %485 : vector<8x128xf32>
    %487 = arith.extui %486 : vector<8x128xi1> to vector<8x128xi32>
    %488 = arith.sitofp %487 : vector<8x128xi32> to vector<8x128xf32>
    %489 = arith.addf %483, %488 : vector<8x128xf32>
    %490 = vector.extract_strided_slice %6 {offsets = [7, 0], sizes = [1, 128], strides = [1, 1]} : vector<32x128xf32> to vector<1x128xf32>
    %491 = vector.broadcast %490 : vector<1x128xf32> to vector<8x128xf32>
    %492 = arith.cmpf oge, %446, %491 : vector<8x128xf32>
    %493 = arith.extui %492 : vector<8x128xi1> to vector<8x128xi32>
    %494 = arith.sitofp %493 : vector<8x128xi32> to vector<8x128xf32>
    %495 = arith.addf %489, %494 : vector<8x128xf32>
    %496 = vector.extract_strided_slice %6 {offsets = [8, 0], sizes = [1, 128], strides = [1, 1]} : vector<32x128xf32> to vector<1x128xf32>
    %497 = vector.broadcast %496 : vector<1x128xf32> to vector<8x128xf32>
    %498 = arith.cmpf oge, %446, %497 : vector<8x128xf32>
    %499 = arith.extui %498 : vector<8x128xi1> to vector<8x128xi32>
    %500 = arith.sitofp %499 : vector<8x128xi32> to vector<8x128xf32>
    %501 = arith.addf %495, %500 : vector<8x128xf32>
    %502 = vector.extract_strided_slice %6 {offsets = [9, 0], sizes = [1, 128], strides = [1, 1]} : vector<32x128xf32> to vector<1x128xf32>
    %503 = vector.broadcast %502 : vector<1x128xf32> to vector<8x128xf32>
    %504 = arith.cmpf oge, %446, %503 : vector<8x128xf32>
    %505 = arith.extui %504 : vector<8x128xi1> to vector<8x128xi32>
    %506 = arith.sitofp %505 : vector<8x128xi32> to vector<8x128xf32>
    %507 = arith.addf %501, %506 : vector<8x128xf32>
    %508 = vector.extract_strided_slice %6 {offsets = [10, 0], sizes = [1, 128], strides = [1, 1]} : vector<32x128xf32> to vector<1x128xf32>
    %509 = vector.broadcast %508 : vector<1x128xf32> to vector<8x128xf32>
    %510 = arith.cmpf oge, %446, %509 : vector<8x128xf32>
    %511 = arith.extui %510 : vector<8x128xi1> to vector<8x128xi32>
    %512 = arith.sitofp %511 : vector<8x128xi32> to vector<8x128xf32>
    %513 = arith.addf %507, %512 : vector<8x128xf32>
    %514 = vector.extract_strided_slice %6 {offsets = [11, 0], sizes = [1, 128], strides = [1, 1]} : vector<32x128xf32> to vector<1x128xf32>
    %515 = vector.broadcast %514 : vector<1x128xf32> to vector<8x128xf32>
    %516 = arith.cmpf oge, %446, %515 : vector<8x128xf32>
    %517 = arith.extui %516 : vector<8x128xi1> to vector<8x128xi32>
    %518 = arith.sitofp %517 : vector<8x128xi32> to vector<8x128xf32>
    %519 = arith.addf %513, %518 : vector<8x128xf32>
    %520 = vector.extract_strided_slice %6 {offsets = [12, 0], sizes = [1, 128], strides = [1, 1]} : vector<32x128xf32> to vector<1x128xf32>
    %521 = vector.broadcast %520 : vector<1x128xf32> to vector<8x128xf32>
    %522 = arith.cmpf oge, %446, %521 : vector<8x128xf32>
    %523 = arith.extui %522 : vector<8x128xi1> to vector<8x128xi32>
    %524 = arith.sitofp %523 : vector<8x128xi32> to vector<8x128xf32>
    %525 = arith.addf %519, %524 : vector<8x128xf32>
    %526 = vector.extract_strided_slice %6 {offsets = [13, 0], sizes = [1, 128], strides = [1, 1]} : vector<32x128xf32> to vector<1x128xf32>
    %527 = vector.broadcast %526 : vector<1x128xf32> to vector<8x128xf32>
    %528 = arith.cmpf oge, %446, %527 : vector<8x128xf32>
    %529 = arith.extui %528 : vector<8x128xi1> to vector<8x128xi32>
    %530 = arith.sitofp %529 : vector<8x128xi32> to vector<8x128xf32>
    %531 = arith.addf %525, %530 : vector<8x128xf32>
    %532 = vector.extract_strided_slice %6 {offsets = [14, 0], sizes = [1, 128], strides = [1, 1]} : vector<32x128xf32> to vector<1x128xf32>
    %533 = vector.broadcast %532 : vector<1x128xf32> to vector<8x128xf32>
    %534 = arith.cmpf oge, %446, %533 : vector<8x128xf32>
    %535 = arith.extui %534 : vector<8x128xi1> to vector<8x128xi32>
    %536 = arith.sitofp %535 : vector<8x128xi32> to vector<8x128xf32>
    %537 = arith.addf %531, %536 : vector<8x128xf32>
    %538 = vector.extract_strided_slice %6 {offsets = [15, 0], sizes = [1, 128], strides = [1, 1]} : vector<32x128xf32> to vector<1x128xf32>
    %539 = vector.broadcast %538 : vector<1x128xf32> to vector<8x128xf32>
    %540 = arith.cmpf oge, %446, %539 : vector<8x128xf32>
    %541 = arith.extui %540 : vector<8x128xi1> to vector<8x128xi32>
    %542 = arith.sitofp %541 : vector<8x128xi32> to vector<8x128xf32>
    %543 = arith.addf %537, %542 : vector<8x128xf32>
    %544 = vector.extract_strided_slice %6 {offsets = [16, 0], sizes = [1, 128], strides = [1, 1]} : vector<32x128xf32> to vector<1x128xf32>
    %545 = vector.broadcast %544 : vector<1x128xf32> to vector<8x128xf32>
    %546 = arith.cmpf oge, %446, %545 : vector<8x128xf32>
    %547 = arith.extui %546 : vector<8x128xi1> to vector<8x128xi32>
    %548 = arith.sitofp %547 : vector<8x128xi32> to vector<8x128xf32>
    %549 = arith.addf %543, %548 : vector<8x128xf32>
    %550 = vector.extract_strided_slice %6 {offsets = [17, 0], sizes = [1, 128], strides = [1, 1]} : vector<32x128xf32> to vector<1x128xf32>
    %551 = vector.broadcast %550 : vector<1x128xf32> to vector<8x128xf32>
    %552 = arith.cmpf oge, %446, %551 : vector<8x128xf32>
    %553 = arith.extui %552 : vector<8x128xi1> to vector<8x128xi32>
    %554 = arith.sitofp %553 : vector<8x128xi32> to vector<8x128xf32>
    %555 = arith.addf %549, %554 : vector<8x128xf32>
    %556 = vector.extract_strided_slice %6 {offsets = [18, 0], sizes = [1, 128], strides = [1, 1]} : vector<32x128xf32> to vector<1x128xf32>
    %557 = vector.broadcast %556 : vector<1x128xf32> to vector<8x128xf32>
    %558 = arith.cmpf oge, %446, %557 : vector<8x128xf32>
    %559 = arith.extui %558 : vector<8x128xi1> to vector<8x128xi32>
    %560 = arith.sitofp %559 : vector<8x128xi32> to vector<8x128xf32>
    %561 = arith.addf %555, %560 : vector<8x128xf32>
    %562 = vector.extract_strided_slice %6 {offsets = [19, 0], sizes = [1, 128], strides = [1, 1]} : vector<32x128xf32> to vector<1x128xf32>
    %563 = vector.broadcast %562 : vector<1x128xf32> to vector<8x128xf32>
    %564 = arith.cmpf oge, %446, %563 : vector<8x128xf32>
    %565 = arith.extui %564 : vector<8x128xi1> to vector<8x128xi32>
    %566 = arith.sitofp %565 : vector<8x128xi32> to vector<8x128xf32>
    %567 = arith.addf %561, %566 : vector<8x128xf32>
    %568 = vector.extract_strided_slice %6 {offsets = [20, 0], sizes = [1, 128], strides = [1, 1]} : vector<32x128xf32> to vector<1x128xf32>
    %569 = vector.broadcast %568 : vector<1x128xf32> to vector<8x128xf32>
    %570 = arith.cmpf oge, %446, %569 : vector<8x128xf32>
    %571 = arith.extui %570 : vector<8x128xi1> to vector<8x128xi32>
    %572 = arith.sitofp %571 : vector<8x128xi32> to vector<8x128xf32>
    %573 = arith.addf %567, %572 : vector<8x128xf32>
    %574 = vector.extract_strided_slice %6 {offsets = [21, 0], sizes = [1, 128], strides = [1, 1]} : vector<32x128xf32> to vector<1x128xf32>
    %575 = vector.broadcast %574 : vector<1x128xf32> to vector<8x128xf32>
    %576 = arith.cmpf oge, %446, %575 : vector<8x128xf32>
    %577 = arith.extui %576 : vector<8x128xi1> to vector<8x128xi32>
    %578 = arith.sitofp %577 : vector<8x128xi32> to vector<8x128xf32>
    %579 = arith.addf %573, %578 : vector<8x128xf32>
    %580 = vector.extract_strided_slice %6 {offsets = [22, 0], sizes = [1, 128], strides = [1, 1]} : vector<32x128xf32> to vector<1x128xf32>
    %581 = vector.broadcast %580 : vector<1x128xf32> to vector<8x128xf32>
    %582 = arith.cmpf oge, %446, %581 : vector<8x128xf32>
    %583 = arith.extui %582 : vector<8x128xi1> to vector<8x128xi32>
    %584 = arith.sitofp %583 : vector<8x128xi32> to vector<8x128xf32>
    %585 = arith.addf %579, %584 : vector<8x128xf32>
    %586 = vector.extract_strided_slice %6 {offsets = [23, 0], sizes = [1, 128], strides = [1, 1]} : vector<32x128xf32> to vector<1x128xf32>
    %587 = vector.broadcast %586 : vector<1x128xf32> to vector<8x128xf32>
    %588 = arith.cmpf oge, %446, %587 : vector<8x128xf32>
    %589 = arith.extui %588 : vector<8x128xi1> to vector<8x128xi32>
    %590 = arith.sitofp %589 : vector<8x128xi32> to vector<8x128xf32>
    %591 = arith.addf %585, %590 : vector<8x128xf32>
    %592 = vector.extract_strided_slice %6 {offsets = [24, 0], sizes = [1, 128], strides = [1, 1]} : vector<32x128xf32> to vector<1x128xf32>
    %593 = vector.broadcast %592 : vector<1x128xf32> to vector<8x128xf32>
    %594 = arith.cmpf oge, %446, %593 : vector<8x128xf32>
    %595 = arith.extui %594 : vector<8x128xi1> to vector<8x128xi32>
    %596 = arith.sitofp %595 : vector<8x128xi32> to vector<8x128xf32>
    %597 = arith.addf %591, %596 : vector<8x128xf32>
    %598 = vector.extract_strided_slice %6 {offsets = [25, 0], sizes = [1, 128], strides = [1, 1]} : vector<32x128xf32> to vector<1x128xf32>
    %599 = vector.broadcast %598 : vector<1x128xf32> to vector<8x128xf32>
    %600 = arith.cmpf oge, %446, %599 : vector<8x128xf32>
    %601 = arith.extui %600 : vector<8x128xi1> to vector<8x128xi32>
    %602 = arith.sitofp %601 : vector<8x128xi32> to vector<8x128xf32>
    %603 = arith.addf %597, %602 : vector<8x128xf32>
    %604 = vector.extract_strided_slice %6 {offsets = [26, 0], sizes = [1, 128], strides = [1, 1]} : vector<32x128xf32> to vector<1x128xf32>
    %605 = vector.broadcast %604 : vector<1x128xf32> to vector<8x128xf32>
    %606 = arith.cmpf oge, %446, %605 : vector<8x128xf32>
    %607 = arith.extui %606 : vector<8x128xi1> to vector<8x128xi32>
    %608 = arith.sitofp %607 : vector<8x128xi32> to vector<8x128xf32>
    %609 = arith.addf %603, %608 : vector<8x128xf32>
    %610 = vector.extract_strided_slice %6 {offsets = [27, 0], sizes = [1, 128], strides = [1, 1]} : vector<32x128xf32> to vector<1x128xf32>
    %611 = vector.broadcast %610 : vector<1x128xf32> to vector<8x128xf32>
    %612 = arith.cmpf oge, %446, %611 : vector<8x128xf32>
    %613 = arith.extui %612 : vector<8x128xi1> to vector<8x128xi32>
    %614 = arith.sitofp %613 : vector<8x128xi32> to vector<8x128xf32>
    %615 = arith.addf %609, %614 : vector<8x128xf32>
    %616 = vector.extract_strided_slice %6 {offsets = [28, 0], sizes = [1, 128], strides = [1, 1]} : vector<32x128xf32> to vector<1x128xf32>
    %617 = vector.broadcast %616 : vector<1x128xf32> to vector<8x128xf32>
    %618 = arith.cmpf oge, %446, %617 : vector<8x128xf32>
    %619 = arith.extui %618 : vector<8x128xi1> to vector<8x128xi32>
    %620 = arith.sitofp %619 : vector<8x128xi32> to vector<8x128xf32>
    %621 = arith.addf %615, %620 : vector<8x128xf32>
    %622 = vector.extract_strided_slice %6 {offsets = [29, 0], sizes = [1, 128], strides = [1, 1]} : vector<32x128xf32> to vector<1x128xf32>
    %623 = vector.broadcast %622 : vector<1x128xf32> to vector<8x128xf32>
    %624 = arith.cmpf oge, %446, %623 : vector<8x128xf32>
    %625 = arith.extui %624 : vector<8x128xi1> to vector<8x128xi32>
    %626 = arith.sitofp %625 : vector<8x128xi32> to vector<8x128xf32>
    %627 = arith.addf %621, %626 : vector<8x128xf32>
    %628 = vector.extract_strided_slice %6 {offsets = [30, 0], sizes = [1, 128], strides = [1, 1]} : vector<32x128xf32> to vector<1x128xf32>
    %629 = vector.broadcast %628 : vector<1x128xf32> to vector<8x128xf32>
    %630 = arith.cmpf oge, %446, %629 : vector<8x128xf32>
    %631 = arith.extui %630 : vector<8x128xi1> to vector<8x128xi32>
    %632 = arith.sitofp %631 : vector<8x128xi32> to vector<8x128xf32>
    %633 = arith.addf %627, %632 : vector<8x128xf32>
    %634 = vector.broadcast %7 : vector<1x128xf32> to vector<8x128xf32>
    %635 = arith.mulf %633, %634 : vector<8x128xf32>
    %636 = vector.broadcast %8 : vector<1x128xf32> to vector<8x128xf32>
    %637 = arith.addf %635, %636 : vector<8x128xf32>
    %638 = vector.extract_strided_slice %637 {offsets = [0, 0], sizes = [8, 32], strides = [1, 1]} : vector<8x128xf32> to vector<8x32xf32>
    %639 = vector.extract_strided_slice %637 {offsets = [0, 32], sizes = [8, 32], strides = [1, 1]} : vector<8x128xf32> to vector<8x32xf32>
    %640 = vector.extract_strided_slice %637 {offsets = [0, 64], sizes = [8, 32], strides = [1, 1]} : vector<8x128xf32> to vector<8x32xf32>
    %641 = vector.extract_strided_slice %637 {offsets = [0, 96], sizes = [8, 32], strides = [1, 1]} : vector<8x128xf32> to vector<8x32xf32>
    %c0_50 = arith.constant 0 : index
    %c0_51 = arith.constant 0 : index
    %642 = vector.load %arg11[%c0_50, %c0_51] : memref<8x32xf32, #tpu.memory_space<vmem>>, vector<8x32xf32>
    %643 = arith.mulf %639, %642 : vector<8x32xf32>
    %644 = arith.mulf %638, %640 : vector<8x32xf32>
    %645 = arith.addf %643, %644 : vector<8x32xf32>
    %646 = math.tanh %645 : vector<8x32xf32>
    %647 = arith.mulf %641, %646 : vector<8x32xf32>
    %648 = arith.truncf %647 : vector<8x32xf32> to vector<8x32xbf16>
    %cst_52 = arith.constant dense<0.000000e+00> : vector<8x128xf32>
    %649 = tpu.matmul %648, %4, %cst_52 {dimension_numbers = #tpu.dot_dimension_numbers<[1], [0], [0], [1], [0, 0, 1, 1], [], []>} : vector<8x32xbf16>, vector<32x128xbf16>, vector<8x128xf32> -> vector<8x128xf32>
    %650 = vector.broadcast %5 : vector<1x128xf32> to vector<8x128xf32>
    %651 = arith.addf %649, %650 : vector<8x128xf32>
    %c0_53 = arith.constant 0 : index
    %c0_54 = arith.constant 0 : index
    %652 = vector.load %arg11[%c0_53, %c0_54] : memref<8x32xf32, #tpu.memory_space<vmem>>, vector<8x32xf32>
    tpu.vector_store %arg11[%c0_53, %c0_54], %645 {strides = array<i32>} : memref<8x32xf32, #tpu.memory_space<vmem>>, vector<8x32xf32>,
    %c0_55 = arith.constant 0 : index
    %c0_56 = arith.constant 0 : index
    %653 = vector.load %arg10[%c0_55, %c0_56] : memref<8x128xf32, #tpu.memory_space<vmem>>, vector<8x128xf32>
    tpu.vector_store %arg10[%c0_55, %c0_56], %651 {strides = array<i32>} : memref<8x128xf32, #tpu.memory_space<vmem>>, vector<8x128xf32>,
    %c2_57 = arith.constant 2 : index
    %c0_58 = arith.constant 0 : index
    %c0_59 = arith.constant 0 : index
    %654 = vector.load %arg8[%c2_57, %c0_58, %c0_59] : memref<8x8x128xf32, #tpu.memory_space<vmem>>, vector<1x8x128xf32>
    %655 = vector.shape_cast %654 : vector<1x8x128xf32> to vector<8x128xf32>
    %656 = vector.shape_cast %651 : vector<8x128xf32> to vector<1x8x128xf32>
    tpu.vector_store %arg8[%c2_57, %c0_58, %c0_59], %656 {strides = array<i32>} : memref<8x8x128xf32, #tpu.memory_space<vmem>>, vector<1x8x128xf32>,
    %c0_60 = arith.constant 0 : index
    %c0_61 = arith.constant 0 : index
    %657 = vector.load %arg10[%c0_60, %c0_61] : memref<8x128xf32, #tpu.memory_space<vmem>>, vector<8x128xf32>
    %658 = arith.truncf %657 : vector<8x128xf32> to vector<8x128xbf16>
    %c3 = arith.constant 3 : index
    %c0_62 = arith.constant 0 : index
    %c0_63 = arith.constant 0 : index
    %659 = vector.load %arg1[%c3, %c0_62, %c0_63] : memref<8x8x128xf32, #tpu.memory_space<vmem>>, vector<1x8x128xf32>
    %660 = vector.shape_cast %659 : vector<1x8x128xf32> to vector<8x128xf32>
    %cst_64 = arith.constant dense<0.000000e+00> : vector<8x128xf32>
    %661 = tpu.matmul %658, %3, %cst_64 {dimension_numbers = #tpu.dot_dimension_numbers<[1], [0], [0], [1], [0, 0, 1, 1], [], []>} : vector<8x128xbf16>, vector<128x128xbf16>, vector<8x128xf32> -> vector<8x128xf32>
    %662 = arith.addf %660, %661 : vector<8x128xf32>
    %cst_65 = arith.constant 0.000000e+00 : f32
    %663 = vector.broadcast %cst_65 : f32 to vector<8x128xf32>
    %664 = vector.extract_strided_slice %6 {offsets = [0, 0], sizes = [1, 128], strides = [1, 1]} : vector<32x128xf32> to vector<1x128xf32>
    %665 = vector.broadcast %664 : vector<1x128xf32> to vector<8x128xf32>
    %666 = arith.cmpf oge, %662, %665 : vector<8x128xf32>
    %667 = arith.extui %666 : vector<8x128xi1> to vector<8x128xi32>
    %668 = arith.sitofp %667 : vector<8x128xi32> to vector<8x128xf32>
    %669 = arith.addf %663, %668 : vector<8x128xf32>
    %670 = vector.extract_strided_slice %6 {offsets = [1, 0], sizes = [1, 128], strides = [1, 1]} : vector<32x128xf32> to vector<1x128xf32>
    %671 = vector.broadcast %670 : vector<1x128xf32> to vector<8x128xf32>
    %672 = arith.cmpf oge, %662, %671 : vector<8x128xf32>
    %673 = arith.extui %672 : vector<8x128xi1> to vector<8x128xi32>
    %674 = arith.sitofp %673 : vector<8x128xi32> to vector<8x128xf32>
    %675 = arith.addf %669, %674 : vector<8x128xf32>
    %676 = vector.extract_strided_slice %6 {offsets = [2, 0], sizes = [1, 128], strides = [1, 1]} : vector<32x128xf32> to vector<1x128xf32>
    %677 = vector.broadcast %676 : vector<1x128xf32> to vector<8x128xf32>
    %678 = arith.cmpf oge, %662, %677 : vector<8x128xf32>
    %679 = arith.extui %678 : vector<8x128xi1> to vector<8x128xi32>
    %680 = arith.sitofp %679 : vector<8x128xi32> to vector<8x128xf32>
    %681 = arith.addf %675, %680 : vector<8x128xf32>
    %682 = vector.extract_strided_slice %6 {offsets = [3, 0], sizes = [1, 128], strides = [1, 1]} : vector<32x128xf32> to vector<1x128xf32>
    %683 = vector.broadcast %682 : vector<1x128xf32> to vector<8x128xf32>
    %684 = arith.cmpf oge, %662, %683 : vector<8x128xf32>
    %685 = arith.extui %684 : vector<8x128xi1> to vector<8x128xi32>
    %686 = arith.sitofp %685 : vector<8x128xi32> to vector<8x128xf32>
    %687 = arith.addf %681, %686 : vector<8x128xf32>
    %688 = vector.extract_strided_slice %6 {offsets = [4, 0], sizes = [1, 128], strides = [1, 1]} : vector<32x128xf32> to vector<1x128xf32>
    %689 = vector.broadcast %688 : vector<1x128xf32> to vector<8x128xf32>
    %690 = arith.cmpf oge, %662, %689 : vector<8x128xf32>
    %691 = arith.extui %690 : vector<8x128xi1> to vector<8x128xi32>
    %692 = arith.sitofp %691 : vector<8x128xi32> to vector<8x128xf32>
    %693 = arith.addf %687, %692 : vector<8x128xf32>
    %694 = vector.extract_strided_slice %6 {offsets = [5, 0], sizes = [1, 128], strides = [1, 1]} : vector<32x128xf32> to vector<1x128xf32>
    %695 = vector.broadcast %694 : vector<1x128xf32> to vector<8x128xf32>
    %696 = arith.cmpf oge, %662, %695 : vector<8x128xf32>
    %697 = arith.extui %696 : vector<8x128xi1> to vector<8x128xi32>
    %698 = arith.sitofp %697 : vector<8x128xi32> to vector<8x128xf32>
    %699 = arith.addf %693, %698 : vector<8x128xf32>
    %700 = vector.extract_strided_slice %6 {offsets = [6, 0], sizes = [1, 128], strides = [1, 1]} : vector<32x128xf32> to vector<1x128xf32>
    %701 = vector.broadcast %700 : vector<1x128xf32> to vector<8x128xf32>
    %702 = arith.cmpf oge, %662, %701 : vector<8x128xf32>
    %703 = arith.extui %702 : vector<8x128xi1> to vector<8x128xi32>
    %704 = arith.sitofp %703 : vector<8x128xi32> to vector<8x128xf32>
    %705 = arith.addf %699, %704 : vector<8x128xf32>
    %706 = vector.extract_strided_slice %6 {offsets = [7, 0], sizes = [1, 128], strides = [1, 1]} : vector<32x128xf32> to vector<1x128xf32>
    %707 = vector.broadcast %706 : vector<1x128xf32> to vector<8x128xf32>
    %708 = arith.cmpf oge, %662, %707 : vector<8x128xf32>
    %709 = arith.extui %708 : vector<8x128xi1> to vector<8x128xi32>
    %710 = arith.sitofp %709 : vector<8x128xi32> to vector<8x128xf32>
    %711 = arith.addf %705, %710 : vector<8x128xf32>
    %712 = vector.extract_strided_slice %6 {offsets = [8, 0], sizes = [1, 128], strides = [1, 1]} : vector<32x128xf32> to vector<1x128xf32>
    %713 = vector.broadcast %712 : vector<1x128xf32> to vector<8x128xf32>
    %714 = arith.cmpf oge, %662, %713 : vector<8x128xf32>
    %715 = arith.extui %714 : vector<8x128xi1> to vector<8x128xi32>
    %716 = arith.sitofp %715 : vector<8x128xi32> to vector<8x128xf32>
    %717 = arith.addf %711, %716 : vector<8x128xf32>
    %718 = vector.extract_strided_slice %6 {offsets = [9, 0], sizes = [1, 128], strides = [1, 1]} : vector<32x128xf32> to vector<1x128xf32>
    %719 = vector.broadcast %718 : vector<1x128xf32> to vector<8x128xf32>
    %720 = arith.cmpf oge, %662, %719 : vector<8x128xf32>
    %721 = arith.extui %720 : vector<8x128xi1> to vector<8x128xi32>
    %722 = arith.sitofp %721 : vector<8x128xi32> to vector<8x128xf32>
    %723 = arith.addf %717, %722 : vector<8x128xf32>
    %724 = vector.extract_strided_slice %6 {offsets = [10, 0], sizes = [1, 128], strides = [1, 1]} : vector<32x128xf32> to vector<1x128xf32>
    %725 = vector.broadcast %724 : vector<1x128xf32> to vector<8x128xf32>
    %726 = arith.cmpf oge, %662, %725 : vector<8x128xf32>
    %727 = arith.extui %726 : vector<8x128xi1> to vector<8x128xi32>
    %728 = arith.sitofp %727 : vector<8x128xi32> to vector<8x128xf32>
    %729 = arith.addf %723, %728 : vector<8x128xf32>
    %730 = vector.extract_strided_slice %6 {offsets = [11, 0], sizes = [1, 128], strides = [1, 1]} : vector<32x128xf32> to vector<1x128xf32>
    %731 = vector.broadcast %730 : vector<1x128xf32> to vector<8x128xf32>
    %732 = arith.cmpf oge, %662, %731 : vector<8x128xf32>
    %733 = arith.extui %732 : vector<8x128xi1> to vector<8x128xi32>
    %734 = arith.sitofp %733 : vector<8x128xi32> to vector<8x128xf32>
    %735 = arith.addf %729, %734 : vector<8x128xf32>
    %736 = vector.extract_strided_slice %6 {offsets = [12, 0], sizes = [1, 128], strides = [1, 1]} : vector<32x128xf32> to vector<1x128xf32>
    %737 = vector.broadcast %736 : vector<1x128xf32> to vector<8x128xf32>
    %738 = arith.cmpf oge, %662, %737 : vector<8x128xf32>
    %739 = arith.extui %738 : vector<8x128xi1> to vector<8x128xi32>
    %740 = arith.sitofp %739 : vector<8x128xi32> to vector<8x128xf32>
    %741 = arith.addf %735, %740 : vector<8x128xf32>
    %742 = vector.extract_strided_slice %6 {offsets = [13, 0], sizes = [1, 128], strides = [1, 1]} : vector<32x128xf32> to vector<1x128xf32>
    %743 = vector.broadcast %742 : vector<1x128xf32> to vector<8x128xf32>
    %744 = arith.cmpf oge, %662, %743 : vector<8x128xf32>
    %745 = arith.extui %744 : vector<8x128xi1> to vector<8x128xi32>
    %746 = arith.sitofp %745 : vector<8x128xi32> to vector<8x128xf32>
    %747 = arith.addf %741, %746 : vector<8x128xf32>
    %748 = vector.extract_strided_slice %6 {offsets = [14, 0], sizes = [1, 128], strides = [1, 1]} : vector<32x128xf32> to vector<1x128xf32>
    %749 = vector.broadcast %748 : vector<1x128xf32> to vector<8x128xf32>
    %750 = arith.cmpf oge, %662, %749 : vector<8x128xf32>
    %751 = arith.extui %750 : vector<8x128xi1> to vector<8x128xi32>
    %752 = arith.sitofp %751 : vector<8x128xi32> to vector<8x128xf32>
    %753 = arith.addf %747, %752 : vector<8x128xf32>
    %754 = vector.extract_strided_slice %6 {offsets = [15, 0], sizes = [1, 128], strides = [1, 1]} : vector<32x128xf32> to vector<1x128xf32>
    %755 = vector.broadcast %754 : vector<1x128xf32> to vector<8x128xf32>
    %756 = arith.cmpf oge, %662, %755 : vector<8x128xf32>
    %757 = arith.extui %756 : vector<8x128xi1> to vector<8x128xi32>
    %758 = arith.sitofp %757 : vector<8x128xi32> to vector<8x128xf32>
    %759 = arith.addf %753, %758 : vector<8x128xf32>
    %760 = vector.extract_strided_slice %6 {offsets = [16, 0], sizes = [1, 128], strides = [1, 1]} : vector<32x128xf32> to vector<1x128xf32>
    %761 = vector.broadcast %760 : vector<1x128xf32> to vector<8x128xf32>
    %762 = arith.cmpf oge, %662, %761 : vector<8x128xf32>
    %763 = arith.extui %762 : vector<8x128xi1> to vector<8x128xi32>
    %764 = arith.sitofp %763 : vector<8x128xi32> to vector<8x128xf32>
    %765 = arith.addf %759, %764 : vector<8x128xf32>
    %766 = vector.extract_strided_slice %6 {offsets = [17, 0], sizes = [1, 128], strides = [1, 1]} : vector<32x128xf32> to vector<1x128xf32>
    %767 = vector.broadcast %766 : vector<1x128xf32> to vector<8x128xf32>
    %768 = arith.cmpf oge, %662, %767 : vector<8x128xf32>
    %769 = arith.extui %768 : vector<8x128xi1> to vector<8x128xi32>
    %770 = arith.sitofp %769 : vector<8x128xi32> to vector<8x128xf32>
    %771 = arith.addf %765, %770 : vector<8x128xf32>
    %772 = vector.extract_strided_slice %6 {offsets = [18, 0], sizes = [1, 128], strides = [1, 1]} : vector<32x128xf32> to vector<1x128xf32>
    %773 = vector.broadcast %772 : vector<1x128xf32> to vector<8x128xf32>
    %774 = arith.cmpf oge, %662, %773 : vector<8x128xf32>
    %775 = arith.extui %774 : vector<8x128xi1> to vector<8x128xi32>
    %776 = arith.sitofp %775 : vector<8x128xi32> to vector<8x128xf32>
    %777 = arith.addf %771, %776 : vector<8x128xf32>
    %778 = vector.extract_strided_slice %6 {offsets = [19, 0], sizes = [1, 128], strides = [1, 1]} : vector<32x128xf32> to vector<1x128xf32>
    %779 = vector.broadcast %778 : vector<1x128xf32> to vector<8x128xf32>
    %780 = arith.cmpf oge, %662, %779 : vector<8x128xf32>
    %781 = arith.extui %780 : vector<8x128xi1> to vector<8x128xi32>
    %782 = arith.sitofp %781 : vector<8x128xi32> to vector<8x128xf32>
    %783 = arith.addf %777, %782 : vector<8x128xf32>
    %784 = vector.extract_strided_slice %6 {offsets = [20, 0], sizes = [1, 128], strides = [1, 1]} : vector<32x128xf32> to vector<1x128xf32>
    %785 = vector.broadcast %784 : vector<1x128xf32> to vector<8x128xf32>
    %786 = arith.cmpf oge, %662, %785 : vector<8x128xf32>
    %787 = arith.extui %786 : vector<8x128xi1> to vector<8x128xi32>
    %788 = arith.sitofp %787 : vector<8x128xi32> to vector<8x128xf32>
    %789 = arith.addf %783, %788 : vector<8x128xf32>
    %790 = vector.extract_strided_slice %6 {offsets = [21, 0], sizes = [1, 128], strides = [1, 1]} : vector<32x128xf32> to vector<1x128xf32>
    %791 = vector.broadcast %790 : vector<1x128xf32> to vector<8x128xf32>
    %792 = arith.cmpf oge, %662, %791 : vector<8x128xf32>
    %793 = arith.extui %792 : vector<8x128xi1> to vector<8x128xi32>
    %794 = arith.sitofp %793 : vector<8x128xi32> to vector<8x128xf32>
    %795 = arith.addf %789, %794 : vector<8x128xf32>
    %796 = vector.extract_strided_slice %6 {offsets = [22, 0], sizes = [1, 128], strides = [1, 1]} : vector<32x128xf32> to vector<1x128xf32>
    %797 = vector.broadcast %796 : vector<1x128xf32> to vector<8x128xf32>
    %798 = arith.cmpf oge, %662, %797 : vector<8x128xf32>
    %799 = arith.extui %798 : vector<8x128xi1> to vector<8x128xi32>
    %800 = arith.sitofp %799 : vector<8x128xi32> to vector<8x128xf32>
    %801 = arith.addf %795, %800 : vector<8x128xf32>
    %802 = vector.extract_strided_slice %6 {offsets = [23, 0], sizes = [1, 128], strides = [1, 1]} : vector<32x128xf32> to vector<1x128xf32>
    %803 = vector.broadcast %802 : vector<1x128xf32> to vector<8x128xf32>
    %804 = arith.cmpf oge, %662, %803 : vector<8x128xf32>
    %805 = arith.extui %804 : vector<8x128xi1> to vector<8x128xi32>
    %806 = arith.sitofp %805 : vector<8x128xi32> to vector<8x128xf32>
    %807 = arith.addf %801, %806 : vector<8x128xf32>
    %808 = vector.extract_strided_slice %6 {offsets = [24, 0], sizes = [1, 128], strides = [1, 1]} : vector<32x128xf32> to vector<1x128xf32>
    %809 = vector.broadcast %808 : vector<1x128xf32> to vector<8x128xf32>
    %810 = arith.cmpf oge, %662, %809 : vector<8x128xf32>
    %811 = arith.extui %810 : vector<8x128xi1> to vector<8x128xi32>
    %812 = arith.sitofp %811 : vector<8x128xi32> to vector<8x128xf32>
    %813 = arith.addf %807, %812 : vector<8x128xf32>
    %814 = vector.extract_strided_slice %6 {offsets = [25, 0], sizes = [1, 128], strides = [1, 1]} : vector<32x128xf32> to vector<1x128xf32>
    %815 = vector.broadcast %814 : vector<1x128xf32> to vector<8x128xf32>
    %816 = arith.cmpf oge, %662, %815 : vector<8x128xf32>
    %817 = arith.extui %816 : vector<8x128xi1> to vector<8x128xi32>
    %818 = arith.sitofp %817 : vector<8x128xi32> to vector<8x128xf32>
    %819 = arith.addf %813, %818 : vector<8x128xf32>
    %820 = vector.extract_strided_slice %6 {offsets = [26, 0], sizes = [1, 128], strides = [1, 1]} : vector<32x128xf32> to vector<1x128xf32>
    %821 = vector.broadcast %820 : vector<1x128xf32> to vector<8x128xf32>
    %822 = arith.cmpf oge, %662, %821 : vector<8x128xf32>
    %823 = arith.extui %822 : vector<8x128xi1> to vector<8x128xi32>
    %824 = arith.sitofp %823 : vector<8x128xi32> to vector<8x128xf32>
    %825 = arith.addf %819, %824 : vector<8x128xf32>
    %826 = vector.extract_strided_slice %6 {offsets = [27, 0], sizes = [1, 128], strides = [1, 1]} : vector<32x128xf32> to vector<1x128xf32>
    %827 = vector.broadcast %826 : vector<1x128xf32> to vector<8x128xf32>
    %828 = arith.cmpf oge, %662, %827 : vector<8x128xf32>
    %829 = arith.extui %828 : vector<8x128xi1> to vector<8x128xi32>
    %830 = arith.sitofp %829 : vector<8x128xi32> to vector<8x128xf32>
    %831 = arith.addf %825, %830 : vector<8x128xf32>
    %832 = vector.extract_strided_slice %6 {offsets = [28, 0], sizes = [1, 128], strides = [1, 1]} : vector<32x128xf32> to vector<1x128xf32>
    %833 = vector.broadcast %832 : vector<1x128xf32> to vector<8x128xf32>
    %834 = arith.cmpf oge, %662, %833 : vector<8x128xf32>
    %835 = arith.extui %834 : vector<8x128xi1> to vector<8x128xi32>
    %836 = arith.sitofp %835 : vector<8x128xi32> to vector<8x128xf32>
    %837 = arith.addf %831, %836 : vector<8x128xf32>
    %838 = vector.extract_strided_slice %6 {offsets = [29, 0], sizes = [1, 128], strides = [1, 1]} : vector<32x128xf32> to vector<1x128xf32>
    %839 = vector.broadcast %838 : vector<1x128xf32> to vector<8x128xf32>
    %840 = arith.cmpf oge, %662, %839 : vector<8x128xf32>
    %841 = arith.extui %840 : vector<8x128xi1> to vector<8x128xi32>
    %842 = arith.sitofp %841 : vector<8x128xi32> to vector<8x128xf32>
    %843 = arith.addf %837, %842 : vector<8x128xf32>
    %844 = vector.extract_strided_slice %6 {offsets = [30, 0], sizes = [1, 128], strides = [1, 1]} : vector<32x128xf32> to vector<1x128xf32>
    %845 = vector.broadcast %844 : vector<1x128xf32> to vector<8x128xf32>
    %846 = arith.cmpf oge, %662, %845 : vector<8x128xf32>
    %847 = arith.extui %846 : vector<8x128xi1> to vector<8x128xi32>
    %848 = arith.sitofp %847 : vector<8x128xi32> to vector<8x128xf32>
    %849 = arith.addf %843, %848 : vector<8x128xf32>
    %850 = vector.broadcast %7 : vector<1x128xf32> to vector<8x128xf32>
    %851 = arith.mulf %849, %850 : vector<8x128xf32>
    %852 = vector.broadcast %8 : vector<1x128xf32> to vector<8x128xf32>
    %853 = arith.addf %851, %852 : vector<8x128xf32>
    %854 = vector.extract_strided_slice %853 {offsets = [0, 0], sizes = [8, 32], strides = [1, 1]} : vector<8x128xf32> to vector<8x32xf32>
    %855 = vector.extract_strided_slice %853 {offsets = [0, 32], sizes = [8, 32], strides = [1, 1]} : vector<8x128xf32> to vector<8x32xf32>
    %856 = vector.extract_strided_slice %853 {offsets = [0, 64], sizes = [8, 32], strides = [1, 1]} : vector<8x128xf32> to vector<8x32xf32>
    %857 = vector.extract_strided_slice %853 {offsets = [0, 96], sizes = [8, 32], strides = [1, 1]} : vector<8x128xf32> to vector<8x32xf32>
    %c0_66 = arith.constant 0 : index
    %c0_67 = arith.constant 0 : index
    %858 = vector.load %arg11[%c0_66, %c0_67] : memref<8x32xf32, #tpu.memory_space<vmem>>, vector<8x32xf32>
    %859 = arith.mulf %855, %858 : vector<8x32xf32>
    %860 = arith.mulf %854, %856 : vector<8x32xf32>
    %861 = arith.addf %859, %860 : vector<8x32xf32>
    %862 = math.tanh %861 : vector<8x32xf32>
    %863 = arith.mulf %857, %862 : vector<8x32xf32>
    %864 = arith.truncf %863 : vector<8x32xf32> to vector<8x32xbf16>
    %cst_68 = arith.constant dense<0.000000e+00> : vector<8x128xf32>
    %865 = tpu.matmul %864, %4, %cst_68 {dimension_numbers = #tpu.dot_dimension_numbers<[1], [0], [0], [1], [0, 0, 1, 1], [], []>} : vector<8x32xbf16>, vector<32x128xbf16>, vector<8x128xf32> -> vector<8x128xf32>
    %866 = vector.broadcast %5 : vector<1x128xf32> to vector<8x128xf32>
    %867 = arith.addf %865, %866 : vector<8x128xf32>
    %c0_69 = arith.constant 0 : index
    %c0_70 = arith.constant 0 : index
    %868 = vector.load %arg11[%c0_69, %c0_70] : memref<8x32xf32, #tpu.memory_space<vmem>>, vector<8x32xf32>
    tpu.vector_store %arg11[%c0_69, %c0_70], %861 {strides = array<i32>} : memref<8x32xf32, #tpu.memory_space<vmem>>, vector<8x32xf32>,
    %c0_71 = arith.constant 0 : index
    %c0_72 = arith.constant 0 : index
    %869 = vector.load %arg10[%c0_71, %c0_72] : memref<8x128xf32, #tpu.memory_space<vmem>>, vector<8x128xf32>
    tpu.vector_store %arg10[%c0_71, %c0_72], %867 {strides = array<i32>} : memref<8x128xf32, #tpu.memory_space<vmem>>, vector<8x128xf32>,
    %c3_73 = arith.constant 3 : index
    %c0_74 = arith.constant 0 : index
    %c0_75 = arith.constant 0 : index
    %870 = vector.load %arg8[%c3_73, %c0_74, %c0_75] : memref<8x8x128xf32, #tpu.memory_space<vmem>>, vector<1x8x128xf32>
    %871 = vector.shape_cast %870 : vector<1x8x128xf32> to vector<8x128xf32>
    %872 = vector.shape_cast %867 : vector<8x128xf32> to vector<1x8x128xf32>
    tpu.vector_store %arg8[%c3_73, %c0_74, %c0_75], %872 {strides = array<i32>} : memref<8x8x128xf32, #tpu.memory_space<vmem>>, vector<1x8x128xf32>,
    %c0_76 = arith.constant 0 : index
    %c0_77 = arith.constant 0 : index
    %873 = vector.load %arg10[%c0_76, %c0_77] : memref<8x128xf32, #tpu.memory_space<vmem>>, vector<8x128xf32>
    %874 = arith.truncf %873 : vector<8x128xf32> to vector<8x128xbf16>
    %c4 = arith.constant 4 : index
    %c0_78 = arith.constant 0 : index
    %c0_79 = arith.constant 0 : index
    %875 = vector.load %arg1[%c4, %c0_78, %c0_79] : memref<8x8x128xf32, #tpu.memory_space<vmem>>, vector<1x8x128xf32>
    %876 = vector.shape_cast %875 : vector<1x8x128xf32> to vector<8x128xf32>
    %cst_80 = arith.constant dense<0.000000e+00> : vector<8x128xf32>
    %877 = tpu.matmul %874, %3, %cst_80 {dimension_numbers = #tpu.dot_dimension_numbers<[1], [0], [0], [1], [0, 0, 1, 1], [], []>} : vector<8x128xbf16>, vector<128x128xbf16>, vector<8x128xf32> -> vector<8x128xf32>
    %878 = arith.addf %876, %877 : vector<8x128xf32>
    %cst_81 = arith.constant 0.000000e+00 : f32
    %879 = vector.broadcast %cst_81 : f32 to vector<8x128xf32>
    %880 = vector.extract_strided_slice %6 {offsets = [0, 0], sizes = [1, 128], strides = [1, 1]} : vector<32x128xf32> to vector<1x128xf32>
    %881 = vector.broadcast %880 : vector<1x128xf32> to vector<8x128xf32>
    %882 = arith.cmpf oge, %878, %881 : vector<8x128xf32>
    %883 = arith.extui %882 : vector<8x128xi1> to vector<8x128xi32>
    %884 = arith.sitofp %883 : vector<8x128xi32> to vector<8x128xf32>
    %885 = arith.addf %879, %884 : vector<8x128xf32>
    %886 = vector.extract_strided_slice %6 {offsets = [1, 0], sizes = [1, 128], strides = [1, 1]} : vector<32x128xf32> to vector<1x128xf32>
    %887 = vector.broadcast %886 : vector<1x128xf32> to vector<8x128xf32>
    %888 = arith.cmpf oge, %878, %887 : vector<8x128xf32>
    %889 = arith.extui %888 : vector<8x128xi1> to vector<8x128xi32>
    %890 = arith.sitofp %889 : vector<8x128xi32> to vector<8x128xf32>
    %891 = arith.addf %885, %890 : vector<8x128xf32>
    %892 = vector.extract_strided_slice %6 {offsets = [2, 0], sizes = [1, 128], strides = [1, 1]} : vector<32x128xf32> to vector<1x128xf32>
    %893 = vector.broadcast %892 : vector<1x128xf32> to vector<8x128xf32>
    %894 = arith.cmpf oge, %878, %893 : vector<8x128xf32>
    %895 = arith.extui %894 : vector<8x128xi1> to vector<8x128xi32>
    %896 = arith.sitofp %895 : vector<8x128xi32> to vector<8x128xf32>
    %897 = arith.addf %891, %896 : vector<8x128xf32>
    %898 = vector.extract_strided_slice %6 {offsets = [3, 0], sizes = [1, 128], strides = [1, 1]} : vector<32x128xf32> to vector<1x128xf32>
    %899 = vector.broadcast %898 : vector<1x128xf32> to vector<8x128xf32>
    %900 = arith.cmpf oge, %878, %899 : vector<8x128xf32>
    %901 = arith.extui %900 : vector<8x128xi1> to vector<8x128xi32>
    %902 = arith.sitofp %901 : vector<8x128xi32> to vector<8x128xf32>
    %903 = arith.addf %897, %902 : vector<8x128xf32>
    %904 = vector.extract_strided_slice %6 {offsets = [4, 0], sizes = [1, 128], strides = [1, 1]} : vector<32x128xf32> to vector<1x128xf32>
    %905 = vector.broadcast %904 : vector<1x128xf32> to vector<8x128xf32>
    %906 = arith.cmpf oge, %878, %905 : vector<8x128xf32>
    %907 = arith.extui %906 : vector<8x128xi1> to vector<8x128xi32>
    %908 = arith.sitofp %907 : vector<8x128xi32> to vector<8x128xf32>
    %909 = arith.addf %903, %908 : vector<8x128xf32>
    %910 = vector.extract_strided_slice %6 {offsets = [5, 0], sizes = [1, 128], strides = [1, 1]} : vector<32x128xf32> to vector<1x128xf32>
    %911 = vector.broadcast %910 : vector<1x128xf32> to vector<8x128xf32>
    %912 = arith.cmpf oge, %878, %911 : vector<8x128xf32>
    %913 = arith.extui %912 : vector<8x128xi1> to vector<8x128xi32>
    %914 = arith.sitofp %913 : vector<8x128xi32> to vector<8x128xf32>
    %915 = arith.addf %909, %914 : vector<8x128xf32>
    %916 = vector.extract_strided_slice %6 {offsets = [6, 0], sizes = [1, 128], strides = [1, 1]} : vector<32x128xf32> to vector<1x128xf32>
    %917 = vector.broadcast %916 : vector<1x128xf32> to vector<8x128xf32>
    %918 = arith.cmpf oge, %878, %917 : vector<8x128xf32>
    %919 = arith.extui %918 : vector<8x128xi1> to vector<8x128xi32>
    %920 = arith.sitofp %919 : vector<8x128xi32> to vector<8x128xf32>
    %921 = arith.addf %915, %920 : vector<8x128xf32>
    %922 = vector.extract_strided_slice %6 {offsets = [7, 0], sizes = [1, 128], strides = [1, 1]} : vector<32x128xf32> to vector<1x128xf32>
    %923 = vector.broadcast %922 : vector<1x128xf32> to vector<8x128xf32>
    %924 = arith.cmpf oge, %878, %923 : vector<8x128xf32>
    %925 = arith.extui %924 : vector<8x128xi1> to vector<8x128xi32>
    %926 = arith.sitofp %925 : vector<8x128xi32> to vector<8x128xf32>
    %927 = arith.addf %921, %926 : vector<8x128xf32>
    %928 = vector.extract_strided_slice %6 {offsets = [8, 0], sizes = [1, 128], strides = [1, 1]} : vector<32x128xf32> to vector<1x128xf32>
    %929 = vector.broadcast %928 : vector<1x128xf32> to vector<8x128xf32>
    %930 = arith.cmpf oge, %878, %929 : vector<8x128xf32>
    %931 = arith.extui %930 : vector<8x128xi1> to vector<8x128xi32>
    %932 = arith.sitofp %931 : vector<8x128xi32> to vector<8x128xf32>
    %933 = arith.addf %927, %932 : vector<8x128xf32>
    %934 = vector.extract_strided_slice %6 {offsets = [9, 0], sizes = [1, 128], strides = [1, 1]} : vector<32x128xf32> to vector<1x128xf32>
    %935 = vector.broadcast %934 : vector<1x128xf32> to vector<8x128xf32>
    %936 = arith.cmpf oge, %878, %935 : vector<8x128xf32>
    %937 = arith.extui %936 : vector<8x128xi1> to vector<8x128xi32>
    %938 = arith.sitofp %937 : vector<8x128xi32> to vector<8x128xf32>
    %939 = arith.addf %933, %938 : vector<8x128xf32>
    %940 = vector.extract_strided_slice %6 {offsets = [10, 0], sizes = [1, 128], strides = [1, 1]} : vector<32x128xf32> to vector<1x128xf32>
    %941 = vector.broadcast %940 : vector<1x128xf32> to vector<8x128xf32>
    %942 = arith.cmpf oge, %878, %941 : vector<8x128xf32>
    %943 = arith.extui %942 : vector<8x128xi1> to vector<8x128xi32>
    %944 = arith.sitofp %943 : vector<8x128xi32> to vector<8x128xf32>
    %945 = arith.addf %939, %944 : vector<8x128xf32>
    %946 = vector.extract_strided_slice %6 {offsets = [11, 0], sizes = [1, 128], strides = [1, 1]} : vector<32x128xf32> to vector<1x128xf32>
    %947 = vector.broadcast %946 : vector<1x128xf32> to vector<8x128xf32>
    %948 = arith.cmpf oge, %878, %947 : vector<8x128xf32>
    %949 = arith.extui %948 : vector<8x128xi1> to vector<8x128xi32>
    %950 = arith.sitofp %949 : vector<8x128xi32> to vector<8x128xf32>
    %951 = arith.addf %945, %950 : vector<8x128xf32>
    %952 = vector.extract_strided_slice %6 {offsets = [12, 0], sizes = [1, 128], strides = [1, 1]} : vector<32x128xf32> to vector<1x128xf32>
    %953 = vector.broadcast %952 : vector<1x128xf32> to vector<8x128xf32>
    %954 = arith.cmpf oge, %878, %953 : vector<8x128xf32>
    %955 = arith.extui %954 : vector<8x128xi1> to vector<8x128xi32>
    %956 = arith.sitofp %955 : vector<8x128xi32> to vector<8x128xf32>
    %957 = arith.addf %951, %956 : vector<8x128xf32>
    %958 = vector.extract_strided_slice %6 {offsets = [13, 0], sizes = [1, 128], strides = [1, 1]} : vector<32x128xf32> to vector<1x128xf32>
    %959 = vector.broadcast %958 : vector<1x128xf32> to vector<8x128xf32>
    %960 = arith.cmpf oge, %878, %959 : vector<8x128xf32>
    %961 = arith.extui %960 : vector<8x128xi1> to vector<8x128xi32>
    %962 = arith.sitofp %961 : vector<8x128xi32> to vector<8x128xf32>
    %963 = arith.addf %957, %962 : vector<8x128xf32>
    %964 = vector.extract_strided_slice %6 {offsets = [14, 0], sizes = [1, 128], strides = [1, 1]} : vector<32x128xf32> to vector<1x128xf32>
    %965 = vector.broadcast %964 : vector<1x128xf32> to vector<8x128xf32>
    %966 = arith.cmpf oge, %878, %965 : vector<8x128xf32>
    %967 = arith.extui %966 : vector<8x128xi1> to vector<8x128xi32>
    %968 = arith.sitofp %967 : vector<8x128xi32> to vector<8x128xf32>
    %969 = arith.addf %963, %968 : vector<8x128xf32>
    %970 = vector.extract_strided_slice %6 {offsets = [15, 0], sizes = [1, 128], strides = [1, 1]} : vector<32x128xf32> to vector<1x128xf32>
    %971 = vector.broadcast %970 : vector<1x128xf32> to vector<8x128xf32>
    %972 = arith.cmpf oge, %878, %971 : vector<8x128xf32>
    %973 = arith.extui %972 : vector<8x128xi1> to vector<8x128xi32>
    %974 = arith.sitofp %973 : vector<8x128xi32> to vector<8x128xf32>
    %975 = arith.addf %969, %974 : vector<8x128xf32>
    %976 = vector.extract_strided_slice %6 {offsets = [16, 0], sizes = [1, 128], strides = [1, 1]} : vector<32x128xf32> to vector<1x128xf32>
    %977 = vector.broadcast %976 : vector<1x128xf32> to vector<8x128xf32>
    %978 = arith.cmpf oge, %878, %977 : vector<8x128xf32>
    %979 = arith.extui %978 : vector<8x128xi1> to vector<8x128xi32>
    %980 = arith.sitofp %979 : vector<8x128xi32> to vector<8x128xf32>
    %981 = arith.addf %975, %980 : vector<8x128xf32>
    %982 = vector.extract_strided_slice %6 {offsets = [17, 0], sizes = [1, 128], strides = [1, 1]} : vector<32x128xf32> to vector<1x128xf32>
    %983 = vector.broadcast %982 : vector<1x128xf32> to vector<8x128xf32>
    %984 = arith.cmpf oge, %878, %983 : vector<8x128xf32>
    %985 = arith.extui %984 : vector<8x128xi1> to vector<8x128xi32>
    %986 = arith.sitofp %985 : vector<8x128xi32> to vector<8x128xf32>
    %987 = arith.addf %981, %986 : vector<8x128xf32>
    %988 = vector.extract_strided_slice %6 {offsets = [18, 0], sizes = [1, 128], strides = [1, 1]} : vector<32x128xf32> to vector<1x128xf32>
    %989 = vector.broadcast %988 : vector<1x128xf32> to vector<8x128xf32>
    %990 = arith.cmpf oge, %878, %989 : vector<8x128xf32>
    %991 = arith.extui %990 : vector<8x128xi1> to vector<8x128xi32>
    %992 = arith.sitofp %991 : vector<8x128xi32> to vector<8x128xf32>
    %993 = arith.addf %987, %992 : vector<8x128xf32>
    %994 = vector.extract_strided_slice %6 {offsets = [19, 0], sizes = [1, 128], strides = [1, 1]} : vector<32x128xf32> to vector<1x128xf32>
    %995 = vector.broadcast %994 : vector<1x128xf32> to vector<8x128xf32>
    %996 = arith.cmpf oge, %878, %995 : vector<8x128xf32>
    %997 = arith.extui %996 : vector<8x128xi1> to vector<8x128xi32>
    %998 = arith.sitofp %997 : vector<8x128xi32> to vector<8x128xf32>
    %999 = arith.addf %993, %998 : vector<8x128xf32>
    %1000 = vector.extract_strided_slice %6 {offsets = [20, 0], sizes = [1, 128], strides = [1, 1]} : vector<32x128xf32> to vector<1x128xf32>
    %1001 = vector.broadcast %1000 : vector<1x128xf32> to vector<8x128xf32>
    %1002 = arith.cmpf oge, %878, %1001 : vector<8x128xf32>
    %1003 = arith.extui %1002 : vector<8x128xi1> to vector<8x128xi32>
    %1004 = arith.sitofp %1003 : vector<8x128xi32> to vector<8x128xf32>
    %1005 = arith.addf %999, %1004 : vector<8x128xf32>
    %1006 = vector.extract_strided_slice %6 {offsets = [21, 0], sizes = [1, 128], strides = [1, 1]} : vector<32x128xf32> to vector<1x128xf32>
    %1007 = vector.broadcast %1006 : vector<1x128xf32> to vector<8x128xf32>
    %1008 = arith.cmpf oge, %878, %1007 : vector<8x128xf32>
    %1009 = arith.extui %1008 : vector<8x128xi1> to vector<8x128xi32>
    %1010 = arith.sitofp %1009 : vector<8x128xi32> to vector<8x128xf32>
    %1011 = arith.addf %1005, %1010 : vector<8x128xf32>
    %1012 = vector.extract_strided_slice %6 {offsets = [22, 0], sizes = [1, 128], strides = [1, 1]} : vector<32x128xf32> to vector<1x128xf32>
    %1013 = vector.broadcast %1012 : vector<1x128xf32> to vector<8x128xf32>
    %1014 = arith.cmpf oge, %878, %1013 : vector<8x128xf32>
    %1015 = arith.extui %1014 : vector<8x128xi1> to vector<8x128xi32>
    %1016 = arith.sitofp %1015 : vector<8x128xi32> to vector<8x128xf32>
    %1017 = arith.addf %1011, %1016 : vector<8x128xf32>
    %1018 = vector.extract_strided_slice %6 {offsets = [23, 0], sizes = [1, 128], strides = [1, 1]} : vector<32x128xf32> to vector<1x128xf32>
    %1019 = vector.broadcast %1018 : vector<1x128xf32> to vector<8x128xf32>
    %1020 = arith.cmpf oge, %878, %1019 : vector<8x128xf32>
    %1021 = arith.extui %1020 : vector<8x128xi1> to vector<8x128xi32>
    %1022 = arith.sitofp %1021 : vector<8x128xi32> to vector<8x128xf32>
    %1023 = arith.addf %1017, %1022 : vector<8x128xf32>
    %1024 = vector.extract_strided_slice %6 {offsets = [24, 0], sizes = [1, 128], strides = [1, 1]} : vector<32x128xf32> to vector<1x128xf32>
    %1025 = vector.broadcast %1024 : vector<1x128xf32> to vector<8x128xf32>
    %1026 = arith.cmpf oge, %878, %1025 : vector<8x128xf32>
    %1027 = arith.extui %1026 : vector<8x128xi1> to vector<8x128xi32>
    %1028 = arith.sitofp %1027 : vector<8x128xi32> to vector<8x128xf32>
    %1029 = arith.addf %1023, %1028 : vector<8x128xf32>
    %1030 = vector.extract_strided_slice %6 {offsets = [25, 0], sizes = [1, 128], strides = [1, 1]} : vector<32x128xf32> to vector<1x128xf32>
    %1031 = vector.broadcast %1030 : vector<1x128xf32> to vector<8x128xf32>
    %1032 = arith.cmpf oge, %878, %1031 : vector<8x128xf32>
    %1033 = arith.extui %1032 : vector<8x128xi1> to vector<8x128xi32>
    %1034 = arith.sitofp %1033 : vector<8x128xi32> to vector<8x128xf32>
    %1035 = arith.addf %1029, %1034 : vector<8x128xf32>
    %1036 = vector.extract_strided_slice %6 {offsets = [26, 0], sizes = [1, 128], strides = [1, 1]} : vector<32x128xf32> to vector<1x128xf32>
    %1037 = vector.broadcast %1036 : vector<1x128xf32> to vector<8x128xf32>
    %1038 = arith.cmpf oge, %878, %1037 : vector<8x128xf32>
    %1039 = arith.extui %1038 : vector<8x128xi1> to vector<8x128xi32>
    %1040 = arith.sitofp %1039 : vector<8x128xi32> to vector<8x128xf32>
    %1041 = arith.addf %1035, %1040 : vector<8x128xf32>
    %1042 = vector.extract_strided_slice %6 {offsets = [27, 0], sizes = [1, 128], strides = [1, 1]} : vector<32x128xf32> to vector<1x128xf32>
    %1043 = vector.broadcast %1042 : vector<1x128xf32> to vector<8x128xf32>
    %1044 = arith.cmpf oge, %878, %1043 : vector<8x128xf32>
    %1045 = arith.extui %1044 : vector<8x128xi1> to vector<8x128xi32>
    %1046 = arith.sitofp %1045 : vector<8x128xi32> to vector<8x128xf32>
    %1047 = arith.addf %1041, %1046 : vector<8x128xf32>
    %1048 = vector.extract_strided_slice %6 {offsets = [28, 0], sizes = [1, 128], strides = [1, 1]} : vector<32x128xf32> to vector<1x128xf32>
    %1049 = vector.broadcast %1048 : vector<1x128xf32> to vector<8x128xf32>
    %1050 = arith.cmpf oge, %878, %1049 : vector<8x128xf32>
    %1051 = arith.extui %1050 : vector<8x128xi1> to vector<8x128xi32>
    %1052 = arith.sitofp %1051 : vector<8x128xi32> to vector<8x128xf32>
    %1053 = arith.addf %1047, %1052 : vector<8x128xf32>
    %1054 = vector.extract_strided_slice %6 {offsets = [29, 0], sizes = [1, 128], strides = [1, 1]} : vector<32x128xf32> to vector<1x128xf32>
    %1055 = vector.broadcast %1054 : vector<1x128xf32> to vector<8x128xf32>
    %1056 = arith.cmpf oge, %878, %1055 : vector<8x128xf32>
    %1057 = arith.extui %1056 : vector<8x128xi1> to vector<8x128xi32>
    %1058 = arith.sitofp %1057 : vector<8x128xi32> to vector<8x128xf32>
    %1059 = arith.addf %1053, %1058 : vector<8x128xf32>
    %1060 = vector.extract_strided_slice %6 {offsets = [30, 0], sizes = [1, 128], strides = [1, 1]} : vector<32x128xf32> to vector<1x128xf32>
    %1061 = vector.broadcast %1060 : vector<1x128xf32> to vector<8x128xf32>
    %1062 = arith.cmpf oge, %878, %1061 : vector<8x128xf32>
    %1063 = arith.extui %1062 : vector<8x128xi1> to vector<8x128xi32>
    %1064 = arith.sitofp %1063 : vector<8x128xi32> to vector<8x128xf32>
    %1065 = arith.addf %1059, %1064 : vector<8x128xf32>
    %1066 = vector.broadcast %7 : vector<1x128xf32> to vector<8x128xf32>
    %1067 = arith.mulf %1065, %1066 : vector<8x128xf32>
    %1068 = vector.broadcast %8 : vector<1x128xf32> to vector<8x128xf32>
    %1069 = arith.addf %1067, %1068 : vector<8x128xf32>
    %1070 = vector.extract_strided_slice %1069 {offsets = [0, 0], sizes = [8, 32], strides = [1, 1]} : vector<8x128xf32> to vector<8x32xf32>
    %1071 = vector.extract_strided_slice %1069 {offsets = [0, 32], sizes = [8, 32], strides = [1, 1]} : vector<8x128xf32> to vector<8x32xf32>
    %1072 = vector.extract_strided_slice %1069 {offsets = [0, 64], sizes = [8, 32], strides = [1, 1]} : vector<8x128xf32> to vector<8x32xf32>
    %1073 = vector.extract_strided_slice %1069 {offsets = [0, 96], sizes = [8, 32], strides = [1, 1]} : vector<8x128xf32> to vector<8x32xf32>
    %c0_82 = arith.constant 0 : index
    %c0_83 = arith.constant 0 : index
    %1074 = vector.load %arg11[%c0_82, %c0_83] : memref<8x32xf32, #tpu.memory_space<vmem>>, vector<8x32xf32>
    %1075 = arith.mulf %1071, %1074 : vector<8x32xf32>
    %1076 = arith.mulf %1070, %1072 : vector<8x32xf32>
    %1077 = arith.addf %1075, %1076 : vector<8x32xf32>
    %1078 = math.tanh %1077 : vector<8x32xf32>
    %1079 = arith.mulf %1073, %1078 : vector<8x32xf32>
    %1080 = arith.truncf %1079 : vector<8x32xf32> to vector<8x32xbf16>
    %cst_84 = arith.constant dense<0.000000e+00> : vector<8x128xf32>
    %1081 = tpu.matmul %1080, %4, %cst_84 {dimension_numbers = #tpu.dot_dimension_numbers<[1], [0], [0], [1], [0, 0, 1, 1], [], []>} : vector<8x32xbf16>, vector<32x128xbf16>, vector<8x128xf32> -> vector<8x128xf32>
    %1082 = vector.broadcast %5 : vector<1x128xf32> to vector<8x128xf32>
    %1083 = arith.addf %1081, %1082 : vector<8x128xf32>
    %c0_85 = arith.constant 0 : index
    %c0_86 = arith.constant 0 : index
    %1084 = vector.load %arg11[%c0_85, %c0_86] : memref<8x32xf32, #tpu.memory_space<vmem>>, vector<8x32xf32>
    tpu.vector_store %arg11[%c0_85, %c0_86], %1077 {strides = array<i32>} : memref<8x32xf32, #tpu.memory_space<vmem>>, vector<8x32xf32>,
    %c0_87 = arith.constant 0 : index
    %c0_88 = arith.constant 0 : index
    %1085 = vector.load %arg10[%c0_87, %c0_88] : memref<8x128xf32, #tpu.memory_space<vmem>>, vector<8x128xf32>
    tpu.vector_store %arg10[%c0_87, %c0_88], %1083 {strides = array<i32>} : memref<8x128xf32, #tpu.memory_space<vmem>>, vector<8x128xf32>,
    %c4_89 = arith.constant 4 : index
    %c0_90 = arith.constant 0 : index
    %c0_91 = arith.constant 0 : index
    %1086 = vector.load %arg8[%c4_89, %c0_90, %c0_91] : memref<8x8x128xf32, #tpu.memory_space<vmem>>, vector<1x8x128xf32>
    %1087 = vector.shape_cast %1086 : vector<1x8x128xf32> to vector<8x128xf32>
    %1088 = vector.shape_cast %1083 : vector<8x128xf32> to vector<1x8x128xf32>
    tpu.vector_store %arg8[%c4_89, %c0_90, %c0_91], %1088 {strides = array<i32>} : memref<8x8x128xf32, #tpu.memory_space<vmem>>, vector<1x8x128xf32>,
    %c0_92 = arith.constant 0 : index
    %c0_93 = arith.constant 0 : index
    %1089 = vector.load %arg10[%c0_92, %c0_93] : memref<8x128xf32, #tpu.memory_space<vmem>>, vector<8x128xf32>
    %1090 = arith.truncf %1089 : vector<8x128xf32> to vector<8x128xbf16>
    %c5 = arith.constant 5 : index
    %c0_94 = arith.constant 0 : index
    %c0_95 = arith.constant 0 : index
    %1091 = vector.load %arg1[%c5, %c0_94, %c0_95] : memref<8x8x128xf32, #tpu.memory_space<vmem>>, vector<1x8x128xf32>
    %1092 = vector.shape_cast %1091 : vector<1x8x128xf32> to vector<8x128xf32>
    %cst_96 = arith.constant dense<0.000000e+00> : vector<8x128xf32>
    %1093 = tpu.matmul %1090, %3, %cst_96 {dimension_numbers = #tpu.dot_dimension_numbers<[1], [0], [0], [1], [0, 0, 1, 1], [], []>} : vector<8x128xbf16>, vector<128x128xbf16>, vector<8x128xf32> -> vector<8x128xf32>
    %1094 = arith.addf %1092, %1093 : vector<8x128xf32>
    %cst_97 = arith.constant 0.000000e+00 : f32
    %1095 = vector.broadcast %cst_97 : f32 to vector<8x128xf32>
    %1096 = vector.extract_strided_slice %6 {offsets = [0, 0], sizes = [1, 128], strides = [1, 1]} : vector<32x128xf32> to vector<1x128xf32>
    %1097 = vector.broadcast %1096 : vector<1x128xf32> to vector<8x128xf32>
    %1098 = arith.cmpf oge, %1094, %1097 : vector<8x128xf32>
    %1099 = arith.extui %1098 : vector<8x128xi1> to vector<8x128xi32>
    %1100 = arith.sitofp %1099 : vector<8x128xi32> to vector<8x128xf32>
    %1101 = arith.addf %1095, %1100 : vector<8x128xf32>
    %1102 = vector.extract_strided_slice %6 {offsets = [1, 0], sizes = [1, 128], strides = [1, 1]} : vector<32x128xf32> to vector<1x128xf32>
    %1103 = vector.broadcast %1102 : vector<1x128xf32> to vector<8x128xf32>
    %1104 = arith.cmpf oge, %1094, %1103 : vector<8x128xf32>
    %1105 = arith.extui %1104 : vector<8x128xi1> to vector<8x128xi32>
    %1106 = arith.sitofp %1105 : vector<8x128xi32> to vector<8x128xf32>
    %1107 = arith.addf %1101, %1106 : vector<8x128xf32>
    %1108 = vector.extract_strided_slice %6 {offsets = [2, 0], sizes = [1, 128], strides = [1, 1]} : vector<32x128xf32> to vector<1x128xf32>
    %1109 = vector.broadcast %1108 : vector<1x128xf32> to vector<8x128xf32>
    %1110 = arith.cmpf oge, %1094, %1109 : vector<8x128xf32>
    %1111 = arith.extui %1110 : vector<8x128xi1> to vector<8x128xi32>
    %1112 = arith.sitofp %1111 : vector<8x128xi32> to vector<8x128xf32>
    %1113 = arith.addf %1107, %1112 : vector<8x128xf32>
    %1114 = vector.extract_strided_slice %6 {offsets = [3, 0], sizes = [1, 128], strides = [1, 1]} : vector<32x128xf32> to vector<1x128xf32>
    %1115 = vector.broadcast %1114 : vector<1x128xf32> to vector<8x128xf32>
    %1116 = arith.cmpf oge, %1094, %1115 : vector<8x128xf32>
    %1117 = arith.extui %1116 : vector<8x128xi1> to vector<8x128xi32>
    %1118 = arith.sitofp %1117 : vector<8x128xi32> to vector<8x128xf32>
    %1119 = arith.addf %1113, %1118 : vector<8x128xf32>
    %1120 = vector.extract_strided_slice %6 {offsets = [4, 0], sizes = [1, 128], strides = [1, 1]} : vector<32x128xf32> to vector<1x128xf32>
    %1121 = vector.broadcast %1120 : vector<1x128xf32> to vector<8x128xf32>
    %1122 = arith.cmpf oge, %1094, %1121 : vector<8x128xf32>
    %1123 = arith.extui %1122 : vector<8x128xi1> to vector<8x128xi32>
    %1124 = arith.sitofp %1123 : vector<8x128xi32> to vector<8x128xf32>
    %1125 = arith.addf %1119, %1124 : vector<8x128xf32>
    %1126 = vector.extract_strided_slice %6 {offsets = [5, 0], sizes = [1, 128], strides = [1, 1]} : vector<32x128xf32> to vector<1x128xf32>
    %1127 = vector.broadcast %1126 : vector<1x128xf32> to vector<8x128xf32>
    %1128 = arith.cmpf oge, %1094, %1127 : vector<8x128xf32>
    %1129 = arith.extui %1128 : vector<8x128xi1> to vector<8x128xi32>
    %1130 = arith.sitofp %1129 : vector<8x128xi32> to vector<8x128xf32>
    %1131 = arith.addf %1125, %1130 : vector<8x128xf32>
    %1132 = vector.extract_strided_slice %6 {offsets = [6, 0], sizes = [1, 128], strides = [1, 1]} : vector<32x128xf32> to vector<1x128xf32>
    %1133 = vector.broadcast %1132 : vector<1x128xf32> to vector<8x128xf32>
    %1134 = arith.cmpf oge, %1094, %1133 : vector<8x128xf32>
    %1135 = arith.extui %1134 : vector<8x128xi1> to vector<8x128xi32>
    %1136 = arith.sitofp %1135 : vector<8x128xi32> to vector<8x128xf32>
    %1137 = arith.addf %1131, %1136 : vector<8x128xf32>
    %1138 = vector.extract_strided_slice %6 {offsets = [7, 0], sizes = [1, 128], strides = [1, 1]} : vector<32x128xf32> to vector<1x128xf32>
    %1139 = vector.broadcast %1138 : vector<1x128xf32> to vector<8x128xf32>
    %1140 = arith.cmpf oge, %1094, %1139 : vector<8x128xf32>
    %1141 = arith.extui %1140 : vector<8x128xi1> to vector<8x128xi32>
    %1142 = arith.sitofp %1141 : vector<8x128xi32> to vector<8x128xf32>
    %1143 = arith.addf %1137, %1142 : vector<8x128xf32>
    %1144 = vector.extract_strided_slice %6 {offsets = [8, 0], sizes = [1, 128], strides = [1, 1]} : vector<32x128xf32> to vector<1x128xf32>
    %1145 = vector.broadcast %1144 : vector<1x128xf32> to vector<8x128xf32>
    %1146 = arith.cmpf oge, %1094, %1145 : vector<8x128xf32>
    %1147 = arith.extui %1146 : vector<8x128xi1> to vector<8x128xi32>
    %1148 = arith.sitofp %1147 : vector<8x128xi32> to vector<8x128xf32>
    %1149 = arith.addf %1143, %1148 : vector<8x128xf32>
    %1150 = vector.extract_strided_slice %6 {offsets = [9, 0], sizes = [1, 128], strides = [1, 1]} : vector<32x128xf32> to vector<1x128xf32>
    %1151 = vector.broadcast %1150 : vector<1x128xf32> to vector<8x128xf32>
    %1152 = arith.cmpf oge, %1094, %1151 : vector<8x128xf32>
    %1153 = arith.extui %1152 : vector<8x128xi1> to vector<8x128xi32>
    %1154 = arith.sitofp %1153 : vector<8x128xi32> to vector<8x128xf32>
    %1155 = arith.addf %1149, %1154 : vector<8x128xf32>
    %1156 = vector.extract_strided_slice %6 {offsets = [10, 0], sizes = [1, 128], strides = [1, 1]} : vector<32x128xf32> to vector<1x128xf32>
    %1157 = vector.broadcast %1156 : vector<1x128xf32> to vector<8x128xf32>
    %1158 = arith.cmpf oge, %1094, %1157 : vector<8x128xf32>
    %1159 = arith.extui %1158 : vector<8x128xi1> to vector<8x128xi32>
    %1160 = arith.sitofp %1159 : vector<8x128xi32> to vector<8x128xf32>
    %1161 = arith.addf %1155, %1160 : vector<8x128xf32>
    %1162 = vector.extract_strided_slice %6 {offsets = [11, 0], sizes = [1, 128], strides = [1, 1]} : vector<32x128xf32> to vector<1x128xf32>
    %1163 = vector.broadcast %1162 : vector<1x128xf32> to vector<8x128xf32>
    %1164 = arith.cmpf oge, %1094, %1163 : vector<8x128xf32>
    %1165 = arith.extui %1164 : vector<8x128xi1> to vector<8x128xi32>
    %1166 = arith.sitofp %1165 : vector<8x128xi32> to vector<8x128xf32>
    %1167 = arith.addf %1161, %1166 : vector<8x128xf32>
    %1168 = vector.extract_strided_slice %6 {offsets = [12, 0], sizes = [1, 128], strides = [1, 1]} : vector<32x128xf32> to vector<1x128xf32>
    %1169 = vector.broadcast %1168 : vector<1x128xf32> to vector<8x128xf32>
    %1170 = arith.cmpf oge, %1094, %1169 : vector<8x128xf32>
    %1171 = arith.extui %1170 : vector<8x128xi1> to vector<8x128xi32>
    %1172 = arith.sitofp %1171 : vector<8x128xi32> to vector<8x128xf32>
    %1173 = arith.addf %1167, %1172 : vector<8x128xf32>
    %1174 = vector.extract_strided_slice %6 {offsets = [13, 0], sizes = [1, 128], strides = [1, 1]} : vector<32x128xf32> to vector<1x128xf32>
    %1175 = vector.broadcast %1174 : vector<1x128xf32> to vector<8x128xf32>
    %1176 = arith.cmpf oge, %1094, %1175 : vector<8x128xf32>
    %1177 = arith.extui %1176 : vector<8x128xi1> to vector<8x128xi32>
    %1178 = arith.sitofp %1177 : vector<8x128xi32> to vector<8x128xf32>
    %1179 = arith.addf %1173, %1178 : vector<8x128xf32>
    %1180 = vector.extract_strided_slice %6 {offsets = [14, 0], sizes = [1, 128], strides = [1, 1]} : vector<32x128xf32> to vector<1x128xf32>
    %1181 = vector.broadcast %1180 : vector<1x128xf32> to vector<8x128xf32>
    %1182 = arith.cmpf oge, %1094, %1181 : vector<8x128xf32>
    %1183 = arith.extui %1182 : vector<8x128xi1> to vector<8x128xi32>
    %1184 = arith.sitofp %1183 : vector<8x128xi32> to vector<8x128xf32>
    %1185 = arith.addf %1179, %1184 : vector<8x128xf32>
    %1186 = vector.extract_strided_slice %6 {offsets = [15, 0], sizes = [1, 128], strides = [1, 1]} : vector<32x128xf32> to vector<1x128xf32>
    %1187 = vector.broadcast %1186 : vector<1x128xf32> to vector<8x128xf32>
    %1188 = arith.cmpf oge, %1094, %1187 : vector<8x128xf32>
    %1189 = arith.extui %1188 : vector<8x128xi1> to vector<8x128xi32>
    %1190 = arith.sitofp %1189 : vector<8x128xi32> to vector<8x128xf32>
    %1191 = arith.addf %1185, %1190 : vector<8x128xf32>
    %1192 = vector.extract_strided_slice %6 {offsets = [16, 0], sizes = [1, 128], strides = [1, 1]} : vector<32x128xf32> to vector<1x128xf32>
    %1193 = vector.broadcast %1192 : vector<1x128xf32> to vector<8x128xf32>
    %1194 = arith.cmpf oge, %1094, %1193 : vector<8x128xf32>
    %1195 = arith.extui %1194 : vector<8x128xi1> to vector<8x128xi32>
    %1196 = arith.sitofp %1195 : vector<8x128xi32> to vector<8x128xf32>
    %1197 = arith.addf %1191, %1196 : vector<8x128xf32>
    %1198 = vector.extract_strided_slice %6 {offsets = [17, 0], sizes = [1, 128], strides = [1, 1]} : vector<32x128xf32> to vector<1x128xf32>
    %1199 = vector.broadcast %1198 : vector<1x128xf32> to vector<8x128xf32>
    %1200 = arith.cmpf oge, %1094, %1199 : vector<8x128xf32>
    %1201 = arith.extui %1200 : vector<8x128xi1> to vector<8x128xi32>
    %1202 = arith.sitofp %1201 : vector<8x128xi32> to vector<8x128xf32>
    %1203 = arith.addf %1197, %1202 : vector<8x128xf32>
    %1204 = vector.extract_strided_slice %6 {offsets = [18, 0], sizes = [1, 128], strides = [1, 1]} : vector<32x128xf32> to vector<1x128xf32>
    %1205 = vector.broadcast %1204 : vector<1x128xf32> to vector<8x128xf32>
    %1206 = arith.cmpf oge, %1094, %1205 : vector<8x128xf32>
    %1207 = arith.extui %1206 : vector<8x128xi1> to vector<8x128xi32>
    %1208 = arith.sitofp %1207 : vector<8x128xi32> to vector<8x128xf32>
    %1209 = arith.addf %1203, %1208 : vector<8x128xf32>
    %1210 = vector.extract_strided_slice %6 {offsets = [19, 0], sizes = [1, 128], strides = [1, 1]} : vector<32x128xf32> to vector<1x128xf32>
    %1211 = vector.broadcast %1210 : vector<1x128xf32> to vector<8x128xf32>
    %1212 = arith.cmpf oge, %1094, %1211 : vector<8x128xf32>
    %1213 = arith.extui %1212 : vector<8x128xi1> to vector<8x128xi32>
    %1214 = arith.sitofp %1213 : vector<8x128xi32> to vector<8x128xf32>
    %1215 = arith.addf %1209, %1214 : vector<8x128xf32>
    %1216 = vector.extract_strided_slice %6 {offsets = [20, 0], sizes = [1, 128], strides = [1, 1]} : vector<32x128xf32> to vector<1x128xf32>
    %1217 = vector.broadcast %1216 : vector<1x128xf32> to vector<8x128xf32>
    %1218 = arith.cmpf oge, %1094, %1217 : vector<8x128xf32>
    %1219 = arith.extui %1218 : vector<8x128xi1> to vector<8x128xi32>
    %1220 = arith.sitofp %1219 : vector<8x128xi32> to vector<8x128xf32>
    %1221 = arith.addf %1215, %1220 : vector<8x128xf32>
    %1222 = vector.extract_strided_slice %6 {offsets = [21, 0], sizes = [1, 128], strides = [1, 1]} : vector<32x128xf32> to vector<1x128xf32>
    %1223 = vector.broadcast %1222 : vector<1x128xf32> to vector<8x128xf32>
    %1224 = arith.cmpf oge, %1094, %1223 : vector<8x128xf32>
    %1225 = arith.extui %1224 : vector<8x128xi1> to vector<8x128xi32>
    %1226 = arith.sitofp %1225 : vector<8x128xi32> to vector<8x128xf32>
    %1227 = arith.addf %1221, %1226 : vector<8x128xf32>
    %1228 = vector.extract_strided_slice %6 {offsets = [22, 0], sizes = [1, 128], strides = [1, 1]} : vector<32x128xf32> to vector<1x128xf32>
    %1229 = vector.broadcast %1228 : vector<1x128xf32> to vector<8x128xf32>
    %1230 = arith.cmpf oge, %1094, %1229 : vector<8x128xf32>
    %1231 = arith.extui %1230 : vector<8x128xi1> to vector<8x128xi32>
    %1232 = arith.sitofp %1231 : vector<8x128xi32> to vector<8x128xf32>
    %1233 = arith.addf %1227, %1232 : vector<8x128xf32>
    %1234 = vector.extract_strided_slice %6 {offsets = [23, 0], sizes = [1, 128], strides = [1, 1]} : vector<32x128xf32> to vector<1x128xf32>
    %1235 = vector.broadcast %1234 : vector<1x128xf32> to vector<8x128xf32>
    %1236 = arith.cmpf oge, %1094, %1235 : vector<8x128xf32>
    %1237 = arith.extui %1236 : vector<8x128xi1> to vector<8x128xi32>
    %1238 = arith.sitofp %1237 : vector<8x128xi32> to vector<8x128xf32>
    %1239 = arith.addf %1233, %1238 : vector<8x128xf32>
    %1240 = vector.extract_strided_slice %6 {offsets = [24, 0], sizes = [1, 128], strides = [1, 1]} : vector<32x128xf32> to vector<1x128xf32>
    %1241 = vector.broadcast %1240 : vector<1x128xf32> to vector<8x128xf32>
    %1242 = arith.cmpf oge, %1094, %1241 : vector<8x128xf32>
    %1243 = arith.extui %1242 : vector<8x128xi1> to vector<8x128xi32>
    %1244 = arith.sitofp %1243 : vector<8x128xi32> to vector<8x128xf32>
    %1245 = arith.addf %1239, %1244 : vector<8x128xf32>
    %1246 = vector.extract_strided_slice %6 {offsets = [25, 0], sizes = [1, 128], strides = [1, 1]} : vector<32x128xf32> to vector<1x128xf32>
    %1247 = vector.broadcast %1246 : vector<1x128xf32> to vector<8x128xf32>
    %1248 = arith.cmpf oge, %1094, %1247 : vector<8x128xf32>
    %1249 = arith.extui %1248 : vector<8x128xi1> to vector<8x128xi32>
    %1250 = arith.sitofp %1249 : vector<8x128xi32> to vector<8x128xf32>
    %1251 = arith.addf %1245, %1250 : vector<8x128xf32>
    %1252 = vector.extract_strided_slice %6 {offsets = [26, 0], sizes = [1, 128], strides = [1, 1]} : vector<32x128xf32> to vector<1x128xf32>
    %1253 = vector.broadcast %1252 : vector<1x128xf32> to vector<8x128xf32>
    %1254 = arith.cmpf oge, %1094, %1253 : vector<8x128xf32>
    %1255 = arith.extui %1254 : vector<8x128xi1> to vector<8x128xi32>
    %1256 = arith.sitofp %1255 : vector<8x128xi32> to vector<8x128xf32>
    %1257 = arith.addf %1251, %1256 : vector<8x128xf32>
    %1258 = vector.extract_strided_slice %6 {offsets = [27, 0], sizes = [1, 128], strides = [1, 1]} : vector<32x128xf32> to vector<1x128xf32>
    %1259 = vector.broadcast %1258 : vector<1x128xf32> to vector<8x128xf32>
    %1260 = arith.cmpf oge, %1094, %1259 : vector<8x128xf32>
    %1261 = arith.extui %1260 : vector<8x128xi1> to vector<8x128xi32>
    %1262 = arith.sitofp %1261 : vector<8x128xi32> to vector<8x128xf32>
    %1263 = arith.addf %1257, %1262 : vector<8x128xf32>
    %1264 = vector.extract_strided_slice %6 {offsets = [28, 0], sizes = [1, 128], strides = [1, 1]} : vector<32x128xf32> to vector<1x128xf32>
    %1265 = vector.broadcast %1264 : vector<1x128xf32> to vector<8x128xf32>
    %1266 = arith.cmpf oge, %1094, %1265 : vector<8x128xf32>
    %1267 = arith.extui %1266 : vector<8x128xi1> to vector<8x128xi32>
    %1268 = arith.sitofp %1267 : vector<8x128xi32> to vector<8x128xf32>
    %1269 = arith.addf %1263, %1268 : vector<8x128xf32>
    %1270 = vector.extract_strided_slice %6 {offsets = [29, 0], sizes = [1, 128], strides = [1, 1]} : vector<32x128xf32> to vector<1x128xf32>
    %1271 = vector.broadcast %1270 : vector<1x128xf32> to vector<8x128xf32>
    %1272 = arith.cmpf oge, %1094, %1271 : vector<8x128xf32>
    %1273 = arith.extui %1272 : vector<8x128xi1> to vector<8x128xi32>
    %1274 = arith.sitofp %1273 : vector<8x128xi32> to vector<8x128xf32>
    %1275 = arith.addf %1269, %1274 : vector<8x128xf32>
    %1276 = vector.extract_strided_slice %6 {offsets = [30, 0], sizes = [1, 128], strides = [1, 1]} : vector<32x128xf32> to vector<1x128xf32>
    %1277 = vector.broadcast %1276 : vector<1x128xf32> to vector<8x128xf32>
    %1278 = arith.cmpf oge, %1094, %1277 : vector<8x128xf32>
    %1279 = arith.extui %1278 : vector<8x128xi1> to vector<8x128xi32>
    %1280 = arith.sitofp %1279 : vector<8x128xi32> to vector<8x128xf32>
    %1281 = arith.addf %1275, %1280 : vector<8x128xf32>
    %1282 = vector.broadcast %7 : vector<1x128xf32> to vector<8x128xf32>
    %1283 = arith.mulf %1281, %1282 : vector<8x128xf32>
    %1284 = vector.broadcast %8 : vector<1x128xf32> to vector<8x128xf32>
    %1285 = arith.addf %1283, %1284 : vector<8x128xf32>
    %1286 = vector.extract_strided_slice %1285 {offsets = [0, 0], sizes = [8, 32], strides = [1, 1]} : vector<8x128xf32> to vector<8x32xf32>
    %1287 = vector.extract_strided_slice %1285 {offsets = [0, 32], sizes = [8, 32], strides = [1, 1]} : vector<8x128xf32> to vector<8x32xf32>
    %1288 = vector.extract_strided_slice %1285 {offsets = [0, 64], sizes = [8, 32], strides = [1, 1]} : vector<8x128xf32> to vector<8x32xf32>
    %1289 = vector.extract_strided_slice %1285 {offsets = [0, 96], sizes = [8, 32], strides = [1, 1]} : vector<8x128xf32> to vector<8x32xf32>
    %c0_98 = arith.constant 0 : index
    %c0_99 = arith.constant 0 : index
    %1290 = vector.load %arg11[%c0_98, %c0_99] : memref<8x32xf32, #tpu.memory_space<vmem>>, vector<8x32xf32>
    %1291 = arith.mulf %1287, %1290 : vector<8x32xf32>
    %1292 = arith.mulf %1286, %1288 : vector<8x32xf32>
    %1293 = arith.addf %1291, %1292 : vector<8x32xf32>
    %1294 = math.tanh %1293 : vector<8x32xf32>
    %1295 = arith.mulf %1289, %1294 : vector<8x32xf32>
    %1296 = arith.truncf %1295 : vector<8x32xf32> to vector<8x32xbf16>
    %cst_100 = arith.constant dense<0.000000e+00> : vector<8x128xf32>
    %1297 = tpu.matmul %1296, %4, %cst_100 {dimension_numbers = #tpu.dot_dimension_numbers<[1], [0], [0], [1], [0, 0, 1, 1], [], []>} : vector<8x32xbf16>, vector<32x128xbf16>, vector<8x128xf32> -> vector<8x128xf32>
    %1298 = vector.broadcast %5 : vector<1x128xf32> to vector<8x128xf32>
    %1299 = arith.addf %1297, %1298 : vector<8x128xf32>
    %c0_101 = arith.constant 0 : index
    %c0_102 = arith.constant 0 : index
    %1300 = vector.load %arg11[%c0_101, %c0_102] : memref<8x32xf32, #tpu.memory_space<vmem>>, vector<8x32xf32>
    tpu.vector_store %arg11[%c0_101, %c0_102], %1293 {strides = array<i32>} : memref<8x32xf32, #tpu.memory_space<vmem>>, vector<8x32xf32>,
    %c0_103 = arith.constant 0 : index
    %c0_104 = arith.constant 0 : index
    %1301 = vector.load %arg10[%c0_103, %c0_104] : memref<8x128xf32, #tpu.memory_space<vmem>>, vector<8x128xf32>
    tpu.vector_store %arg10[%c0_103, %c0_104], %1299 {strides = array<i32>} : memref<8x128xf32, #tpu.memory_space<vmem>>, vector<8x128xf32>,
    %c5_105 = arith.constant 5 : index
    %c0_106 = arith.constant 0 : index
    %c0_107 = arith.constant 0 : index
    %1302 = vector.load %arg8[%c5_105, %c0_106, %c0_107] : memref<8x8x128xf32, #tpu.memory_space<vmem>>, vector<1x8x128xf32>
    %1303 = vector.shape_cast %1302 : vector<1x8x128xf32> to vector<8x128xf32>
    %1304 = vector.shape_cast %1299 : vector<8x128xf32> to vector<1x8x128xf32>
    tpu.vector_store %arg8[%c5_105, %c0_106, %c0_107], %1304 {strides = array<i32>} : memref<8x8x128xf32, #tpu.memory_space<vmem>>, vector<1x8x128xf32>,
    %c0_108 = arith.constant 0 : index
    %c0_109 = arith.constant 0 : index
    %1305 = vector.load %arg10[%c0_108, %c0_109] : memref<8x128xf32, #tpu.memory_space<vmem>>, vector<8x128xf32>
    %1306 = arith.truncf %1305 : vector<8x128xf32> to vector<8x128xbf16>
    %c6 = arith.constant 6 : index
    %c0_110 = arith.constant 0 : index
    %c0_111 = arith.constant 0 : index
    %1307 = vector.load %arg1[%c6, %c0_110, %c0_111] : memref<8x8x128xf32, #tpu.memory_space<vmem>>, vector<1x8x128xf32>
    %1308 = vector.shape_cast %1307 : vector<1x8x128xf32> to vector<8x128xf32>
    %cst_112 = arith.constant dense<0.000000e+00> : vector<8x128xf32>
    %1309 = tpu.matmul %1306, %3, %cst_112 {dimension_numbers = #tpu.dot_dimension_numbers<[1], [0], [0], [1], [0, 0, 1, 1], [], []>} : vector<8x128xbf16>, vector<128x128xbf16>, vector<8x128xf32> -> vector<8x128xf32>
    %1310 = arith.addf %1308, %1309 : vector<8x128xf32>
    %cst_113 = arith.constant 0.000000e+00 : f32
    %1311 = vector.broadcast %cst_113 : f32 to vector<8x128xf32>
    %1312 = vector.extract_strided_slice %6 {offsets = [0, 0], sizes = [1, 128], strides = [1, 1]} : vector<32x128xf32> to vector<1x128xf32>
    %1313 = vector.broadcast %1312 : vector<1x128xf32> to vector<8x128xf32>
    %1314 = arith.cmpf oge, %1310, %1313 : vector<8x128xf32>
    %1315 = arith.extui %1314 : vector<8x128xi1> to vector<8x128xi32>
    %1316 = arith.sitofp %1315 : vector<8x128xi32> to vector<8x128xf32>
    %1317 = arith.addf %1311, %1316 : vector<8x128xf32>
    %1318 = vector.extract_strided_slice %6 {offsets = [1, 0], sizes = [1, 128], strides = [1, 1]} : vector<32x128xf32> to vector<1x128xf32>
    %1319 = vector.broadcast %1318 : vector<1x128xf32> to vector<8x128xf32>
    %1320 = arith.cmpf oge, %1310, %1319 : vector<8x128xf32>
    %1321 = arith.extui %1320 : vector<8x128xi1> to vector<8x128xi32>
    %1322 = arith.sitofp %1321 : vector<8x128xi32> to vector<8x128xf32>
    %1323 = arith.addf %1317, %1322 : vector<8x128xf32>
    %1324 = vector.extract_strided_slice %6 {offsets = [2, 0], sizes = [1, 128], strides = [1, 1]} : vector<32x128xf32> to vector<1x128xf32>
    %1325 = vector.broadcast %1324 : vector<1x128xf32> to vector<8x128xf32>
    %1326 = arith.cmpf oge, %1310, %1325 : vector<8x128xf32>
    %1327 = arith.extui %1326 : vector<8x128xi1> to vector<8x128xi32>
    %1328 = arith.sitofp %1327 : vector<8x128xi32> to vector<8x128xf32>
    %1329 = arith.addf %1323, %1328 : vector<8x128xf32>
    %1330 = vector.extract_strided_slice %6 {offsets = [3, 0], sizes = [1, 128], strides = [1, 1]} : vector<32x128xf32> to vector<1x128xf32>
    %1331 = vector.broadcast %1330 : vector<1x128xf32> to vector<8x128xf32>
    %1332 = arith.cmpf oge, %1310, %1331 : vector<8x128xf32>
    %1333 = arith.extui %1332 : vector<8x128xi1> to vector<8x128xi32>
    %1334 = arith.sitofp %1333 : vector<8x128xi32> to vector<8x128xf32>
    %1335 = arith.addf %1329, %1334 : vector<8x128xf32>
    %1336 = vector.extract_strided_slice %6 {offsets = [4, 0], sizes = [1, 128], strides = [1, 1]} : vector<32x128xf32> to vector<1x128xf32>
    %1337 = vector.broadcast %1336 : vector<1x128xf32> to vector<8x128xf32>
    %1338 = arith.cmpf oge, %1310, %1337 : vector<8x128xf32>
    %1339 = arith.extui %1338 : vector<8x128xi1> to vector<8x128xi32>
    %1340 = arith.sitofp %1339 : vector<8x128xi32> to vector<8x128xf32>
    %1341 = arith.addf %1335, %1340 : vector<8x128xf32>
    %1342 = vector.extract_strided_slice %6 {offsets = [5, 0], sizes = [1, 128], strides = [1, 1]} : vector<32x128xf32> to vector<1x128xf32>
    %1343 = vector.broadcast %1342 : vector<1x128xf32> to vector<8x128xf32>
    %1344 = arith.cmpf oge, %1310, %1343 : vector<8x128xf32>
    %1345 = arith.extui %1344 : vector<8x128xi1> to vector<8x128xi32>
    %1346 = arith.sitofp %1345 : vector<8x128xi32> to vector<8x128xf32>
    %1347 = arith.addf %1341, %1346 : vector<8x128xf32>
    %1348 = vector.extract_strided_slice %6 {offsets = [6, 0], sizes = [1, 128], strides = [1, 1]} : vector<32x128xf32> to vector<1x128xf32>
    %1349 = vector.broadcast %1348 : vector<1x128xf32> to vector<8x128xf32>
    %1350 = arith.cmpf oge, %1310, %1349 : vector<8x128xf32>
    %1351 = arith.extui %1350 : vector<8x128xi1> to vector<8x128xi32>
    %1352 = arith.sitofp %1351 : vector<8x128xi32> to vector<8x128xf32>
    %1353 = arith.addf %1347, %1352 : vector<8x128xf32>
    %1354 = vector.extract_strided_slice %6 {offsets = [7, 0], sizes = [1, 128], strides = [1, 1]} : vector<32x128xf32> to vector<1x128xf32>
    %1355 = vector.broadcast %1354 : vector<1x128xf32> to vector<8x128xf32>
    %1356 = arith.cmpf oge, %1310, %1355 : vector<8x128xf32>
    %1357 = arith.extui %1356 : vector<8x128xi1> to vector<8x128xi32>
    %1358 = arith.sitofp %1357 : vector<8x128xi32> to vector<8x128xf32>
    %1359 = arith.addf %1353, %1358 : vector<8x128xf32>
    %1360 = vector.extract_strided_slice %6 {offsets = [8, 0], sizes = [1, 128], strides = [1, 1]} : vector<32x128xf32> to vector<1x128xf32>
    %1361 = vector.broadcast %1360 : vector<1x128xf32> to vector<8x128xf32>
    %1362 = arith.cmpf oge, %1310, %1361 : vector<8x128xf32>
    %1363 = arith.extui %1362 : vector<8x128xi1> to vector<8x128xi32>
    %1364 = arith.sitofp %1363 : vector<8x128xi32> to vector<8x128xf32>
    %1365 = arith.addf %1359, %1364 : vector<8x128xf32>
    %1366 = vector.extract_strided_slice %6 {offsets = [9, 0], sizes = [1, 128], strides = [1, 1]} : vector<32x128xf32> to vector<1x128xf32>
    %1367 = vector.broadcast %1366 : vector<1x128xf32> to vector<8x128xf32>
    %1368 = arith.cmpf oge, %1310, %1367 : vector<8x128xf32>
    %1369 = arith.extui %1368 : vector<8x128xi1> to vector<8x128xi32>
    %1370 = arith.sitofp %1369 : vector<8x128xi32> to vector<8x128xf32>
    %1371 = arith.addf %1365, %1370 : vector<8x128xf32>
    %1372 = vector.extract_strided_slice %6 {offsets = [10, 0], sizes = [1, 128], strides = [1, 1]} : vector<32x128xf32> to vector<1x128xf32>
    %1373 = vector.broadcast %1372 : vector<1x128xf32> to vector<8x128xf32>
    %1374 = arith.cmpf oge, %1310, %1373 : vector<8x128xf32>
    %1375 = arith.extui %1374 : vector<8x128xi1> to vector<8x128xi32>
    %1376 = arith.sitofp %1375 : vector<8x128xi32> to vector<8x128xf32>
    %1377 = arith.addf %1371, %1376 : vector<8x128xf32>
    %1378 = vector.extract_strided_slice %6 {offsets = [11, 0], sizes = [1, 128], strides = [1, 1]} : vector<32x128xf32> to vector<1x128xf32>
    %1379 = vector.broadcast %1378 : vector<1x128xf32> to vector<8x128xf32>
    %1380 = arith.cmpf oge, %1310, %1379 : vector<8x128xf32>
    %1381 = arith.extui %1380 : vector<8x128xi1> to vector<8x128xi32>
    %1382 = arith.sitofp %1381 : vector<8x128xi32> to vector<8x128xf32>
    %1383 = arith.addf %1377, %1382 : vector<8x128xf32>
    %1384 = vector.extract_strided_slice %6 {offsets = [12, 0], sizes = [1, 128], strides = [1, 1]} : vector<32x128xf32> to vector<1x128xf32>
    %1385 = vector.broadcast %1384 : vector<1x128xf32> to vector<8x128xf32>
    %1386 = arith.cmpf oge, %1310, %1385 : vector<8x128xf32>
    %1387 = arith.extui %1386 : vector<8x128xi1> to vector<8x128xi32>
    %1388 = arith.sitofp %1387 : vector<8x128xi32> to vector<8x128xf32>
    %1389 = arith.addf %1383, %1388 : vector<8x128xf32>
    %1390 = vector.extract_strided_slice %6 {offsets = [13, 0], sizes = [1, 128], strides = [1, 1]} : vector<32x128xf32> to vector<1x128xf32>
    %1391 = vector.broadcast %1390 : vector<1x128xf32> to vector<8x128xf32>
    %1392 = arith.cmpf oge, %1310, %1391 : vector<8x128xf32>
    %1393 = arith.extui %1392 : vector<8x128xi1> to vector<8x128xi32>
    %1394 = arith.sitofp %1393 : vector<8x128xi32> to vector<8x128xf32>
    %1395 = arith.addf %1389, %1394 : vector<8x128xf32>
    %1396 = vector.extract_strided_slice %6 {offsets = [14, 0], sizes = [1, 128], strides = [1, 1]} : vector<32x128xf32> to vector<1x128xf32>
    %1397 = vector.broadcast %1396 : vector<1x128xf32> to vector<8x128xf32>
    %1398 = arith.cmpf oge, %1310, %1397 : vector<8x128xf32>
    %1399 = arith.extui %1398 : vector<8x128xi1> to vector<8x128xi32>
    %1400 = arith.sitofp %1399 : vector<8x128xi32> to vector<8x128xf32>
    %1401 = arith.addf %1395, %1400 : vector<8x128xf32>
    %1402 = vector.extract_strided_slice %6 {offsets = [15, 0], sizes = [1, 128], strides = [1, 1]} : vector<32x128xf32> to vector<1x128xf32>
    %1403 = vector.broadcast %1402 : vector<1x128xf32> to vector<8x128xf32>
    %1404 = arith.cmpf oge, %1310, %1403 : vector<8x128xf32>
    %1405 = arith.extui %1404 : vector<8x128xi1> to vector<8x128xi32>
    %1406 = arith.sitofp %1405 : vector<8x128xi32> to vector<8x128xf32>
    %1407 = arith.addf %1401, %1406 : vector<8x128xf32>
    %1408 = vector.extract_strided_slice %6 {offsets = [16, 0], sizes = [1, 128], strides = [1, 1]} : vector<32x128xf32> to vector<1x128xf32>
    %1409 = vector.broadcast %1408 : vector<1x128xf32> to vector<8x128xf32>
    %1410 = arith.cmpf oge, %1310, %1409 : vector<8x128xf32>
    %1411 = arith.extui %1410 : vector<8x128xi1> to vector<8x128xi32>
    %1412 = arith.sitofp %1411 : vector<8x128xi32> to vector<8x128xf32>
    %1413 = arith.addf %1407, %1412 : vector<8x128xf32>
    %1414 = vector.extract_strided_slice %6 {offsets = [17, 0], sizes = [1, 128], strides = [1, 1]} : vector<32x128xf32> to vector<1x128xf32>
    %1415 = vector.broadcast %1414 : vector<1x128xf32> to vector<8x128xf32>
    %1416 = arith.cmpf oge, %1310, %1415 : vector<8x128xf32>
    %1417 = arith.extui %1416 : vector<8x128xi1> to vector<8x128xi32>
    %1418 = arith.sitofp %1417 : vector<8x128xi32> to vector<8x128xf32>
    %1419 = arith.addf %1413, %1418 : vector<8x128xf32>
    %1420 = vector.extract_strided_slice %6 {offsets = [18, 0], sizes = [1, 128], strides = [1, 1]} : vector<32x128xf32> to vector<1x128xf32>
    %1421 = vector.broadcast %1420 : vector<1x128xf32> to vector<8x128xf32>
    %1422 = arith.cmpf oge, %1310, %1421 : vector<8x128xf32>
    %1423 = arith.extui %1422 : vector<8x128xi1> to vector<8x128xi32>
    %1424 = arith.sitofp %1423 : vector<8x128xi32> to vector<8x128xf32>
    %1425 = arith.addf %1419, %1424 : vector<8x128xf32>
    %1426 = vector.extract_strided_slice %6 {offsets = [19, 0], sizes = [1, 128], strides = [1, 1]} : vector<32x128xf32> to vector<1x128xf32>
    %1427 = vector.broadcast %1426 : vector<1x128xf32> to vector<8x128xf32>
    %1428 = arith.cmpf oge, %1310, %1427 : vector<8x128xf32>
    %1429 = arith.extui %1428 : vector<8x128xi1> to vector<8x128xi32>
    %1430 = arith.sitofp %1429 : vector<8x128xi32> to vector<8x128xf32>
    %1431 = arith.addf %1425, %1430 : vector<8x128xf32>
    %1432 = vector.extract_strided_slice %6 {offsets = [20, 0], sizes = [1, 128], strides = [1, 1]} : vector<32x128xf32> to vector<1x128xf32>
    %1433 = vector.broadcast %1432 : vector<1x128xf32> to vector<8x128xf32>
    %1434 = arith.cmpf oge, %1310, %1433 : vector<8x128xf32>
    %1435 = arith.extui %1434 : vector<8x128xi1> to vector<8x128xi32>
    %1436 = arith.sitofp %1435 : vector<8x128xi32> to vector<8x128xf32>
    %1437 = arith.addf %1431, %1436 : vector<8x128xf32>
    %1438 = vector.extract_strided_slice %6 {offsets = [21, 0], sizes = [1, 128], strides = [1, 1]} : vector<32x128xf32> to vector<1x128xf32>
    %1439 = vector.broadcast %1438 : vector<1x128xf32> to vector<8x128xf32>
    %1440 = arith.cmpf oge, %1310, %1439 : vector<8x128xf32>
    %1441 = arith.extui %1440 : vector<8x128xi1> to vector<8x128xi32>
    %1442 = arith.sitofp %1441 : vector<8x128xi32> to vector<8x128xf32>
    %1443 = arith.addf %1437, %1442 : vector<8x128xf32>
    %1444 = vector.extract_strided_slice %6 {offsets = [22, 0], sizes = [1, 128], strides = [1, 1]} : vector<32x128xf32> to vector<1x128xf32>
    %1445 = vector.broadcast %1444 : vector<1x128xf32> to vector<8x128xf32>
    %1446 = arith.cmpf oge, %1310, %1445 : vector<8x128xf32>
    %1447 = arith.extui %1446 : vector<8x128xi1> to vector<8x128xi32>
    %1448 = arith.sitofp %1447 : vector<8x128xi32> to vector<8x128xf32>
    %1449 = arith.addf %1443, %1448 : vector<8x128xf32>
    %1450 = vector.extract_strided_slice %6 {offsets = [23, 0], sizes = [1, 128], strides = [1, 1]} : vector<32x128xf32> to vector<1x128xf32>
    %1451 = vector.broadcast %1450 : vector<1x128xf32> to vector<8x128xf32>
    %1452 = arith.cmpf oge, %1310, %1451 : vector<8x128xf32>
    %1453 = arith.extui %1452 : vector<8x128xi1> to vector<8x128xi32>
    %1454 = arith.sitofp %1453 : vector<8x128xi32> to vector<8x128xf32>
    %1455 = arith.addf %1449, %1454 : vector<8x128xf32>
    %1456 = vector.extract_strided_slice %6 {offsets = [24, 0], sizes = [1, 128], strides = [1, 1]} : vector<32x128xf32> to vector<1x128xf32>
    %1457 = vector.broadcast %1456 : vector<1x128xf32> to vector<8x128xf32>
    %1458 = arith.cmpf oge, %1310, %1457 : vector<8x128xf32>
    %1459 = arith.extui %1458 : vector<8x128xi1> to vector<8x128xi32>
    %1460 = arith.sitofp %1459 : vector<8x128xi32> to vector<8x128xf32>
    %1461 = arith.addf %1455, %1460 : vector<8x128xf32>
    %1462 = vector.extract_strided_slice %6 {offsets = [25, 0], sizes = [1, 128], strides = [1, 1]} : vector<32x128xf32> to vector<1x128xf32>
    %1463 = vector.broadcast %1462 : vector<1x128xf32> to vector<8x128xf32>
    %1464 = arith.cmpf oge, %1310, %1463 : vector<8x128xf32>
    %1465 = arith.extui %1464 : vector<8x128xi1> to vector<8x128xi32>
    %1466 = arith.sitofp %1465 : vector<8x128xi32> to vector<8x128xf32>
    %1467 = arith.addf %1461, %1466 : vector<8x128xf32>
    %1468 = vector.extract_strided_slice %6 {offsets = [26, 0], sizes = [1, 128], strides = [1, 1]} : vector<32x128xf32> to vector<1x128xf32>
    %1469 = vector.broadcast %1468 : vector<1x128xf32> to vector<8x128xf32>
    %1470 = arith.cmpf oge, %1310, %1469 : vector<8x128xf32>
    %1471 = arith.extui %1470 : vector<8x128xi1> to vector<8x128xi32>
    %1472 = arith.sitofp %1471 : vector<8x128xi32> to vector<8x128xf32>
    %1473 = arith.addf %1467, %1472 : vector<8x128xf32>
    %1474 = vector.extract_strided_slice %6 {offsets = [27, 0], sizes = [1, 128], strides = [1, 1]} : vector<32x128xf32> to vector<1x128xf32>
    %1475 = vector.broadcast %1474 : vector<1x128xf32> to vector<8x128xf32>
    %1476 = arith.cmpf oge, %1310, %1475 : vector<8x128xf32>
    %1477 = arith.extui %1476 : vector<8x128xi1> to vector<8x128xi32>
    %1478 = arith.sitofp %1477 : vector<8x128xi32> to vector<8x128xf32>
    %1479 = arith.addf %1473, %1478 : vector<8x128xf32>
    %1480 = vector.extract_strided_slice %6 {offsets = [28, 0], sizes = [1, 128], strides = [1, 1]} : vector<32x128xf32> to vector<1x128xf32>
    %1481 = vector.broadcast %1480 : vector<1x128xf32> to vector<8x128xf32>
    %1482 = arith.cmpf oge, %1310, %1481 : vector<8x128xf32>
    %1483 = arith.extui %1482 : vector<8x128xi1> to vector<8x128xi32>
    %1484 = arith.sitofp %1483 : vector<8x128xi32> to vector<8x128xf32>
    %1485 = arith.addf %1479, %1484 : vector<8x128xf32>
    %1486 = vector.extract_strided_slice %6 {offsets = [29, 0], sizes = [1, 128], strides = [1, 1]} : vector<32x128xf32> to vector<1x128xf32>
    %1487 = vector.broadcast %1486 : vector<1x128xf32> to vector<8x128xf32>
    %1488 = arith.cmpf oge, %1310, %1487 : vector<8x128xf32>
    %1489 = arith.extui %1488 : vector<8x128xi1> to vector<8x128xi32>
    %1490 = arith.sitofp %1489 : vector<8x128xi32> to vector<8x128xf32>
    %1491 = arith.addf %1485, %1490 : vector<8x128xf32>
    %1492 = vector.extract_strided_slice %6 {offsets = [30, 0], sizes = [1, 128], strides = [1, 1]} : vector<32x128xf32> to vector<1x128xf32>
    %1493 = vector.broadcast %1492 : vector<1x128xf32> to vector<8x128xf32>
    %1494 = arith.cmpf oge, %1310, %1493 : vector<8x128xf32>
    %1495 = arith.extui %1494 : vector<8x128xi1> to vector<8x128xi32>
    %1496 = arith.sitofp %1495 : vector<8x128xi32> to vector<8x128xf32>
    %1497 = arith.addf %1491, %1496 : vector<8x128xf32>
    %1498 = vector.broadcast %7 : vector<1x128xf32> to vector<8x128xf32>
    %1499 = arith.mulf %1497, %1498 : vector<8x128xf32>
    %1500 = vector.broadcast %8 : vector<1x128xf32> to vector<8x128xf32>
    %1501 = arith.addf %1499, %1500 : vector<8x128xf32>
    %1502 = vector.extract_strided_slice %1501 {offsets = [0, 0], sizes = [8, 32], strides = [1, 1]} : vector<8x128xf32> to vector<8x32xf32>
    %1503 = vector.extract_strided_slice %1501 {offsets = [0, 32], sizes = [8, 32], strides = [1, 1]} : vector<8x128xf32> to vector<8x32xf32>
    %1504 = vector.extract_strided_slice %1501 {offsets = [0, 64], sizes = [8, 32], strides = [1, 1]} : vector<8x128xf32> to vector<8x32xf32>
    %1505 = vector.extract_strided_slice %1501 {offsets = [0, 96], sizes = [8, 32], strides = [1, 1]} : vector<8x128xf32> to vector<8x32xf32>
    %c0_114 = arith.constant 0 : index
    %c0_115 = arith.constant 0 : index
    %1506 = vector.load %arg11[%c0_114, %c0_115] : memref<8x32xf32, #tpu.memory_space<vmem>>, vector<8x32xf32>
    %1507 = arith.mulf %1503, %1506 : vector<8x32xf32>
    %1508 = arith.mulf %1502, %1504 : vector<8x32xf32>
    %1509 = arith.addf %1507, %1508 : vector<8x32xf32>
    %1510 = math.tanh %1509 : vector<8x32xf32>
    %1511 = arith.mulf %1505, %1510 : vector<8x32xf32>
    %1512 = arith.truncf %1511 : vector<8x32xf32> to vector<8x32xbf16>
    %cst_116 = arith.constant dense<0.000000e+00> : vector<8x128xf32>
    %1513 = tpu.matmul %1512, %4, %cst_116 {dimension_numbers = #tpu.dot_dimension_numbers<[1], [0], [0], [1], [0, 0, 1, 1], [], []>} : vector<8x32xbf16>, vector<32x128xbf16>, vector<8x128xf32> -> vector<8x128xf32>
    %1514 = vector.broadcast %5 : vector<1x128xf32> to vector<8x128xf32>
    %1515 = arith.addf %1513, %1514 : vector<8x128xf32>
    %c0_117 = arith.constant 0 : index
    %c0_118 = arith.constant 0 : index
    %1516 = vector.load %arg11[%c0_117, %c0_118] : memref<8x32xf32, #tpu.memory_space<vmem>>, vector<8x32xf32>
    tpu.vector_store %arg11[%c0_117, %c0_118], %1509 {strides = array<i32>} : memref<8x32xf32, #tpu.memory_space<vmem>>, vector<8x32xf32>,
    %c0_119 = arith.constant 0 : index
    %c0_120 = arith.constant 0 : index
    %1517 = vector.load %arg10[%c0_119, %c0_120] : memref<8x128xf32, #tpu.memory_space<vmem>>, vector<8x128xf32>
    tpu.vector_store %arg10[%c0_119, %c0_120], %1515 {strides = array<i32>} : memref<8x128xf32, #tpu.memory_space<vmem>>, vector<8x128xf32>,
    %c6_121 = arith.constant 6 : index
    %c0_122 = arith.constant 0 : index
    %c0_123 = arith.constant 0 : index
    %1518 = vector.load %arg8[%c6_121, %c0_122, %c0_123] : memref<8x8x128xf32, #tpu.memory_space<vmem>>, vector<1x8x128xf32>
    %1519 = vector.shape_cast %1518 : vector<1x8x128xf32> to vector<8x128xf32>
    %1520 = vector.shape_cast %1515 : vector<8x128xf32> to vector<1x8x128xf32>
    tpu.vector_store %arg8[%c6_121, %c0_122, %c0_123], %1520 {strides = array<i32>} : memref<8x8x128xf32, #tpu.memory_space<vmem>>, vector<1x8x128xf32>,
    %c0_124 = arith.constant 0 : index
    %c0_125 = arith.constant 0 : index
    %1521 = vector.load %arg10[%c0_124, %c0_125] : memref<8x128xf32, #tpu.memory_space<vmem>>, vector<8x128xf32>
    %1522 = arith.truncf %1521 : vector<8x128xf32> to vector<8x128xbf16>
    %c7 = arith.constant 7 : index
    %c0_126 = arith.constant 0 : index
    %c0_127 = arith.constant 0 : index
    %1523 = vector.load %arg1[%c7, %c0_126, %c0_127] : memref<8x8x128xf32, #tpu.memory_space<vmem>>, vector<1x8x128xf32>
    %1524 = vector.shape_cast %1523 : vector<1x8x128xf32> to vector<8x128xf32>
    %cst_128 = arith.constant dense<0.000000e+00> : vector<8x128xf32>
    %1525 = tpu.matmul %1522, %3, %cst_128 {dimension_numbers = #tpu.dot_dimension_numbers<[1], [0], [0], [1], [0, 0, 1, 1], [], []>} : vector<8x128xbf16>, vector<128x128xbf16>, vector<8x128xf32> -> vector<8x128xf32>
    %1526 = arith.addf %1524, %1525 : vector<8x128xf32>
    %cst_129 = arith.constant 0.000000e+00 : f32
    %1527 = vector.broadcast %cst_129 : f32 to vector<8x128xf32>
    %1528 = vector.extract_strided_slice %6 {offsets = [0, 0], sizes = [1, 128], strides = [1, 1]} : vector<32x128xf32> to vector<1x128xf32>
    %1529 = vector.broadcast %1528 : vector<1x128xf32> to vector<8x128xf32>
    %1530 = arith.cmpf oge, %1526, %1529 : vector<8x128xf32>
    %1531 = arith.extui %1530 : vector<8x128xi1> to vector<8x128xi32>
    %1532 = arith.sitofp %1531 : vector<8x128xi32> to vector<8x128xf32>
    %1533 = arith.addf %1527, %1532 : vector<8x128xf32>
    %1534 = vector.extract_strided_slice %6 {offsets = [1, 0], sizes = [1, 128], strides = [1, 1]} : vector<32x128xf32> to vector<1x128xf32>
    %1535 = vector.broadcast %1534 : vector<1x128xf32> to vector<8x128xf32>
    %1536 = arith.cmpf oge, %1526, %1535 : vector<8x128xf32>
    %1537 = arith.extui %1536 : vector<8x128xi1> to vector<8x128xi32>
    %1538 = arith.sitofp %1537 : vector<8x128xi32> to vector<8x128xf32>
    %1539 = arith.addf %1533, %1538 : vector<8x128xf32>
    %1540 = vector.extract_strided_slice %6 {offsets = [2, 0], sizes = [1, 128], strides = [1, 1]} : vector<32x128xf32> to vector<1x128xf32>
    %1541 = vector.broadcast %1540 : vector<1x128xf32> to vector<8x128xf32>
    %1542 = arith.cmpf oge, %1526, %1541 : vector<8x128xf32>
    %1543 = arith.extui %1542 : vector<8x128xi1> to vector<8x128xi32>
    %1544 = arith.sitofp %1543 : vector<8x128xi32> to vector<8x128xf32>
    %1545 = arith.addf %1539, %1544 : vector<8x128xf32>
    %1546 = vector.extract_strided_slice %6 {offsets = [3, 0], sizes = [1, 128], strides = [1, 1]} : vector<32x128xf32> to vector<1x128xf32>
    %1547 = vector.broadcast %1546 : vector<1x128xf32> to vector<8x128xf32>
    %1548 = arith.cmpf oge, %1526, %1547 : vector<8x128xf32>
    %1549 = arith.extui %1548 : vector<8x128xi1> to vector<8x128xi32>
    %1550 = arith.sitofp %1549 : vector<8x128xi32> to vector<8x128xf32>
    %1551 = arith.addf %1545, %1550 : vector<8x128xf32>
    %1552 = vector.extract_strided_slice %6 {offsets = [4, 0], sizes = [1, 128], strides = [1, 1]} : vector<32x128xf32> to vector<1x128xf32>
    %1553 = vector.broadcast %1552 : vector<1x128xf32> to vector<8x128xf32>
    %1554 = arith.cmpf oge, %1526, %1553 : vector<8x128xf32>
    %1555 = arith.extui %1554 : vector<8x128xi1> to vector<8x128xi32>
    %1556 = arith.sitofp %1555 : vector<8x128xi32> to vector<8x128xf32>
    %1557 = arith.addf %1551, %1556 : vector<8x128xf32>
    %1558 = vector.extract_strided_slice %6 {offsets = [5, 0], sizes = [1, 128], strides = [1, 1]} : vector<32x128xf32> to vector<1x128xf32>
    %1559 = vector.broadcast %1558 : vector<1x128xf32> to vector<8x128xf32>
    %1560 = arith.cmpf oge, %1526, %1559 : vector<8x128xf32>
    %1561 = arith.extui %1560 : vector<8x128xi1> to vector<8x128xi32>
    %1562 = arith.sitofp %1561 : vector<8x128xi32> to vector<8x128xf32>
    %1563 = arith.addf %1557, %1562 : vector<8x128xf32>
    %1564 = vector.extract_strided_slice %6 {offsets = [6, 0], sizes = [1, 128], strides = [1, 1]} : vector<32x128xf32> to vector<1x128xf32>
    %1565 = vector.broadcast %1564 : vector<1x128xf32> to vector<8x128xf32>
    %1566 = arith.cmpf oge, %1526, %1565 : vector<8x128xf32>
    %1567 = arith.extui %1566 : vector<8x128xi1> to vector<8x128xi32>
    %1568 = arith.sitofp %1567 : vector<8x128xi32> to vector<8x128xf32>
    %1569 = arith.addf %1563, %1568 : vector<8x128xf32>
    %1570 = vector.extract_strided_slice %6 {offsets = [7, 0], sizes = [1, 128], strides = [1, 1]} : vector<32x128xf32> to vector<1x128xf32>
    %1571 = vector.broadcast %1570 : vector<1x128xf32> to vector<8x128xf32>
    %1572 = arith.cmpf oge, %1526, %1571 : vector<8x128xf32>
    %1573 = arith.extui %1572 : vector<8x128xi1> to vector<8x128xi32>
    %1574 = arith.sitofp %1573 : vector<8x128xi32> to vector<8x128xf32>
    %1575 = arith.addf %1569, %1574 : vector<8x128xf32>
    %1576 = vector.extract_strided_slice %6 {offsets = [8, 0], sizes = [1, 128], strides = [1, 1]} : vector<32x128xf32> to vector<1x128xf32>
    %1577 = vector.broadcast %1576 : vector<1x128xf32> to vector<8x128xf32>
    %1578 = arith.cmpf oge, %1526, %1577 : vector<8x128xf32>
    %1579 = arith.extui %1578 : vector<8x128xi1> to vector<8x128xi32>
    %1580 = arith.sitofp %1579 : vector<8x128xi32> to vector<8x128xf32>
    %1581 = arith.addf %1575, %1580 : vector<8x128xf32>
    %1582 = vector.extract_strided_slice %6 {offsets = [9, 0], sizes = [1, 128], strides = [1, 1]} : vector<32x128xf32> to vector<1x128xf32>
    %1583 = vector.broadcast %1582 : vector<1x128xf32> to vector<8x128xf32>
    %1584 = arith.cmpf oge, %1526, %1583 : vector<8x128xf32>
    %1585 = arith.extui %1584 : vector<8x128xi1> to vector<8x128xi32>
    %1586 = arith.sitofp %1585 : vector<8x128xi32> to vector<8x128xf32>
    %1587 = arith.addf %1581, %1586 : vector<8x128xf32>
    %1588 = vector.extract_strided_slice %6 {offsets = [10, 0], sizes = [1, 128], strides = [1, 1]} : vector<32x128xf32> to vector<1x128xf32>
    %1589 = vector.broadcast %1588 : vector<1x128xf32> to vector<8x128xf32>
    %1590 = arith.cmpf oge, %1526, %1589 : vector<8x128xf32>
    %1591 = arith.extui %1590 : vector<8x128xi1> to vector<8x128xi32>
    %1592 = arith.sitofp %1591 : vector<8x128xi32> to vector<8x128xf32>
    %1593 = arith.addf %1587, %1592 : vector<8x128xf32>
    %1594 = vector.extract_strided_slice %6 {offsets = [11, 0], sizes = [1, 128], strides = [1, 1]} : vector<32x128xf32> to vector<1x128xf32>
    %1595 = vector.broadcast %1594 : vector<1x128xf32> to vector<8x128xf32>
    %1596 = arith.cmpf oge, %1526, %1595 : vector<8x128xf32>
    %1597 = arith.extui %1596 : vector<8x128xi1> to vector<8x128xi32>
    %1598 = arith.sitofp %1597 : vector<8x128xi32> to vector<8x128xf32>
    %1599 = arith.addf %1593, %1598 : vector<8x128xf32>
    %1600 = vector.extract_strided_slice %6 {offsets = [12, 0], sizes = [1, 128], strides = [1, 1]} : vector<32x128xf32> to vector<1x128xf32>
    %1601 = vector.broadcast %1600 : vector<1x128xf32> to vector<8x128xf32>
    %1602 = arith.cmpf oge, %1526, %1601 : vector<8x128xf32>
    %1603 = arith.extui %1602 : vector<8x128xi1> to vector<8x128xi32>
    %1604 = arith.sitofp %1603 : vector<8x128xi32> to vector<8x128xf32>
    %1605 = arith.addf %1599, %1604 : vector<8x128xf32>
    %1606 = vector.extract_strided_slice %6 {offsets = [13, 0], sizes = [1, 128], strides = [1, 1]} : vector<32x128xf32> to vector<1x128xf32>
    %1607 = vector.broadcast %1606 : vector<1x128xf32> to vector<8x128xf32>
    %1608 = arith.cmpf oge, %1526, %1607 : vector<8x128xf32>
    %1609 = arith.extui %1608 : vector<8x128xi1> to vector<8x128xi32>
    %1610 = arith.sitofp %1609 : vector<8x128xi32> to vector<8x128xf32>
    %1611 = arith.addf %1605, %1610 : vector<8x128xf32>
    %1612 = vector.extract_strided_slice %6 {offsets = [14, 0], sizes = [1, 128], strides = [1, 1]} : vector<32x128xf32> to vector<1x128xf32>
    %1613 = vector.broadcast %1612 : vector<1x128xf32> to vector<8x128xf32>
    %1614 = arith.cmpf oge, %1526, %1613 : vector<8x128xf32>
    %1615 = arith.extui %1614 : vector<8x128xi1> to vector<8x128xi32>
    %1616 = arith.sitofp %1615 : vector<8x128xi32> to vector<8x128xf32>
    %1617 = arith.addf %1611, %1616 : vector<8x128xf32>
    %1618 = vector.extract_strided_slice %6 {offsets = [15, 0], sizes = [1, 128], strides = [1, 1]} : vector<32x128xf32> to vector<1x128xf32>
    %1619 = vector.broadcast %1618 : vector<1x128xf32> to vector<8x128xf32>
    %1620 = arith.cmpf oge, %1526, %1619 : vector<8x128xf32>
    %1621 = arith.extui %1620 : vector<8x128xi1> to vector<8x128xi32>
    %1622 = arith.sitofp %1621 : vector<8x128xi32> to vector<8x128xf32>
    %1623 = arith.addf %1617, %1622 : vector<8x128xf32>
    %1624 = vector.extract_strided_slice %6 {offsets = [16, 0], sizes = [1, 128], strides = [1, 1]} : vector<32x128xf32> to vector<1x128xf32>
    %1625 = vector.broadcast %1624 : vector<1x128xf32> to vector<8x128xf32>
    %1626 = arith.cmpf oge, %1526, %1625 : vector<8x128xf32>
    %1627 = arith.extui %1626 : vector<8x128xi1> to vector<8x128xi32>
    %1628 = arith.sitofp %1627 : vector<8x128xi32> to vector<8x128xf32>
    %1629 = arith.addf %1623, %1628 : vector<8x128xf32>
    %1630 = vector.extract_strided_slice %6 {offsets = [17, 0], sizes = [1, 128], strides = [1, 1]} : vector<32x128xf32> to vector<1x128xf32>
    %1631 = vector.broadcast %1630 : vector<1x128xf32> to vector<8x128xf32>
    %1632 = arith.cmpf oge, %1526, %1631 : vector<8x128xf32>
    %1633 = arith.extui %1632 : vector<8x128xi1> to vector<8x128xi32>
    %1634 = arith.sitofp %1633 : vector<8x128xi32> to vector<8x128xf32>
    %1635 = arith.addf %1629, %1634 : vector<8x128xf32>
    %1636 = vector.extract_strided_slice %6 {offsets = [18, 0], sizes = [1, 128], strides = [1, 1]} : vector<32x128xf32> to vector<1x128xf32>
    %1637 = vector.broadcast %1636 : vector<1x128xf32> to vector<8x128xf32>
    %1638 = arith.cmpf oge, %1526, %1637 : vector<8x128xf32>
    %1639 = arith.extui %1638 : vector<8x128xi1> to vector<8x128xi32>
    %1640 = arith.sitofp %1639 : vector<8x128xi32> to vector<8x128xf32>
    %1641 = arith.addf %1635, %1640 : vector<8x128xf32>
    %1642 = vector.extract_strided_slice %6 {offsets = [19, 0], sizes = [1, 128], strides = [1, 1]} : vector<32x128xf32> to vector<1x128xf32>
    %1643 = vector.broadcast %1642 : vector<1x128xf32> to vector<8x128xf32>
    %1644 = arith.cmpf oge, %1526, %1643 : vector<8x128xf32>
    %1645 = arith.extui %1644 : vector<8x128xi1> to vector<8x128xi32>
    %1646 = arith.sitofp %1645 : vector<8x128xi32> to vector<8x128xf32>
    %1647 = arith.addf %1641, %1646 : vector<8x128xf32>
    %1648 = vector.extract_strided_slice %6 {offsets = [20, 0], sizes = [1, 128], strides = [1, 1]} : vector<32x128xf32> to vector<1x128xf32>
    %1649 = vector.broadcast %1648 : vector<1x128xf32> to vector<8x128xf32>
    %1650 = arith.cmpf oge, %1526, %1649 : vector<8x128xf32>
    %1651 = arith.extui %1650 : vector<8x128xi1> to vector<8x128xi32>
    %1652 = arith.sitofp %1651 : vector<8x128xi32> to vector<8x128xf32>
    %1653 = arith.addf %1647, %1652 : vector<8x128xf32>
    %1654 = vector.extract_strided_slice %6 {offsets = [21, 0], sizes = [1, 128], strides = [1, 1]} : vector<32x128xf32> to vector<1x128xf32>
    %1655 = vector.broadcast %1654 : vector<1x128xf32> to vector<8x128xf32>
    %1656 = arith.cmpf oge, %1526, %1655 : vector<8x128xf32>
    %1657 = arith.extui %1656 : vector<8x128xi1> to vector<8x128xi32>
    %1658 = arith.sitofp %1657 : vector<8x128xi32> to vector<8x128xf32>
    %1659 = arith.addf %1653, %1658 : vector<8x128xf32>
    %1660 = vector.extract_strided_slice %6 {offsets = [22, 0], sizes = [1, 128], strides = [1, 1]} : vector<32x128xf32> to vector<1x128xf32>
    %1661 = vector.broadcast %1660 : vector<1x128xf32> to vector<8x128xf32>
    %1662 = arith.cmpf oge, %1526, %1661 : vector<8x128xf32>
    %1663 = arith.extui %1662 : vector<8x128xi1> to vector<8x128xi32>
    %1664 = arith.sitofp %1663 : vector<8x128xi32> to vector<8x128xf32>
    %1665 = arith.addf %1659, %1664 : vector<8x128xf32>
    %1666 = vector.extract_strided_slice %6 {offsets = [23, 0], sizes = [1, 128], strides = [1, 1]} : vector<32x128xf32> to vector<1x128xf32>
    %1667 = vector.broadcast %1666 : vector<1x128xf32> to vector<8x128xf32>
    %1668 = arith.cmpf oge, %1526, %1667 : vector<8x128xf32>
    %1669 = arith.extui %1668 : vector<8x128xi1> to vector<8x128xi32>
    %1670 = arith.sitofp %1669 : vector<8x128xi32> to vector<8x128xf32>
    %1671 = arith.addf %1665, %1670 : vector<8x128xf32>
    %1672 = vector.extract_strided_slice %6 {offsets = [24, 0], sizes = [1, 128], strides = [1, 1]} : vector<32x128xf32> to vector<1x128xf32>
    %1673 = vector.broadcast %1672 : vector<1x128xf32> to vector<8x128xf32>
    %1674 = arith.cmpf oge, %1526, %1673 : vector<8x128xf32>
    %1675 = arith.extui %1674 : vector<8x128xi1> to vector<8x128xi32>
    %1676 = arith.sitofp %1675 : vector<8x128xi32> to vector<8x128xf32>
    %1677 = arith.addf %1671, %1676 : vector<8x128xf32>
    %1678 = vector.extract_strided_slice %6 {offsets = [25, 0], sizes = [1, 128], strides = [1, 1]} : vector<32x128xf32> to vector<1x128xf32>
    %1679 = vector.broadcast %1678 : vector<1x128xf32> to vector<8x128xf32>
    %1680 = arith.cmpf oge, %1526, %1679 : vector<8x128xf32>
    %1681 = arith.extui %1680 : vector<8x128xi1> to vector<8x128xi32>
    %1682 = arith.sitofp %1681 : vector<8x128xi32> to vector<8x128xf32>
    %1683 = arith.addf %1677, %1682 : vector<8x128xf32>
    %1684 = vector.extract_strided_slice %6 {offsets = [26, 0], sizes = [1, 128], strides = [1, 1]} : vector<32x128xf32> to vector<1x128xf32>
    %1685 = vector.broadcast %1684 : vector<1x128xf32> to vector<8x128xf32>
    %1686 = arith.cmpf oge, %1526, %1685 : vector<8x128xf32>
    %1687 = arith.extui %1686 : vector<8x128xi1> to vector<8x128xi32>
    %1688 = arith.sitofp %1687 : vector<8x128xi32> to vector<8x128xf32>
    %1689 = arith.addf %1683, %1688 : vector<8x128xf32>
    %1690 = vector.extract_strided_slice %6 {offsets = [27, 0], sizes = [1, 128], strides = [1, 1]} : vector<32x128xf32> to vector<1x128xf32>
    %1691 = vector.broadcast %1690 : vector<1x128xf32> to vector<8x128xf32>
    %1692 = arith.cmpf oge, %1526, %1691 : vector<8x128xf32>
    %1693 = arith.extui %1692 : vector<8x128xi1> to vector<8x128xi32>
    %1694 = arith.sitofp %1693 : vector<8x128xi32> to vector<8x128xf32>
    %1695 = arith.addf %1689, %1694 : vector<8x128xf32>
    %1696 = vector.extract_strided_slice %6 {offsets = [28, 0], sizes = [1, 128], strides = [1, 1]} : vector<32x128xf32> to vector<1x128xf32>
    %1697 = vector.broadcast %1696 : vector<1x128xf32> to vector<8x128xf32>
    %1698 = arith.cmpf oge, %1526, %1697 : vector<8x128xf32>
    %1699 = arith.extui %1698 : vector<8x128xi1> to vector<8x128xi32>
    %1700 = arith.sitofp %1699 : vector<8x128xi32> to vector<8x128xf32>
    %1701 = arith.addf %1695, %1700 : vector<8x128xf32>
    %1702 = vector.extract_strided_slice %6 {offsets = [29, 0], sizes = [1, 128], strides = [1, 1]} : vector<32x128xf32> to vector<1x128xf32>
    %1703 = vector.broadcast %1702 : vector<1x128xf32> to vector<8x128xf32>
    %1704 = arith.cmpf oge, %1526, %1703 : vector<8x128xf32>
    %1705 = arith.extui %1704 : vector<8x128xi1> to vector<8x128xi32>
    %1706 = arith.sitofp %1705 : vector<8x128xi32> to vector<8x128xf32>
    %1707 = arith.addf %1701, %1706 : vector<8x128xf32>
    %1708 = vector.extract_strided_slice %6 {offsets = [30, 0], sizes = [1, 128], strides = [1, 1]} : vector<32x128xf32> to vector<1x128xf32>
    %1709 = vector.broadcast %1708 : vector<1x128xf32> to vector<8x128xf32>
    %1710 = arith.cmpf oge, %1526, %1709 : vector<8x128xf32>
    %1711 = arith.extui %1710 : vector<8x128xi1> to vector<8x128xi32>
    %1712 = arith.sitofp %1711 : vector<8x128xi32> to vector<8x128xf32>
    %1713 = arith.addf %1707, %1712 : vector<8x128xf32>
    %1714 = vector.broadcast %7 : vector<1x128xf32> to vector<8x128xf32>
    %1715 = arith.mulf %1713, %1714 : vector<8x128xf32>
    %1716 = vector.broadcast %8 : vector<1x128xf32> to vector<8x128xf32>
    %1717 = arith.addf %1715, %1716 : vector<8x128xf32>
    %1718 = vector.extract_strided_slice %1717 {offsets = [0, 0], sizes = [8, 32], strides = [1, 1]} : vector<8x128xf32> to vector<8x32xf32>
    %1719 = vector.extract_strided_slice %1717 {offsets = [0, 32], sizes = [8, 32], strides = [1, 1]} : vector<8x128xf32> to vector<8x32xf32>
    %1720 = vector.extract_strided_slice %1717 {offsets = [0, 64], sizes = [8, 32], strides = [1, 1]} : vector<8x128xf32> to vector<8x32xf32>
    %1721 = vector.extract_strided_slice %1717 {offsets = [0, 96], sizes = [8, 32], strides = [1, 1]} : vector<8x128xf32> to vector<8x32xf32>
    %c0_130 = arith.constant 0 : index
    %c0_131 = arith.constant 0 : index
    %1722 = vector.load %arg11[%c0_130, %c0_131] : memref<8x32xf32, #tpu.memory_space<vmem>>, vector<8x32xf32>
    %1723 = arith.mulf %1719, %1722 : vector<8x32xf32>
    %1724 = arith.mulf %1718, %1720 : vector<8x32xf32>
    %1725 = arith.addf %1723, %1724 : vector<8x32xf32>
    %1726 = math.tanh %1725 : vector<8x32xf32>
    %1727 = arith.mulf %1721, %1726 : vector<8x32xf32>
    %1728 = arith.truncf %1727 : vector<8x32xf32> to vector<8x32xbf16>
    %cst_132 = arith.constant dense<0.000000e+00> : vector<8x128xf32>
    %1729 = tpu.matmul %1728, %4, %cst_132 {dimension_numbers = #tpu.dot_dimension_numbers<[1], [0], [0], [1], [0, 0, 1, 1], [], []>} : vector<8x32xbf16>, vector<32x128xbf16>, vector<8x128xf32> -> vector<8x128xf32>
    %1730 = vector.broadcast %5 : vector<1x128xf32> to vector<8x128xf32>
    %1731 = arith.addf %1729, %1730 : vector<8x128xf32>
    %c0_133 = arith.constant 0 : index
    %c0_134 = arith.constant 0 : index
    %1732 = vector.load %arg11[%c0_133, %c0_134] : memref<8x32xf32, #tpu.memory_space<vmem>>, vector<8x32xf32>
    tpu.vector_store %arg11[%c0_133, %c0_134], %1725 {strides = array<i32>} : memref<8x32xf32, #tpu.memory_space<vmem>>, vector<8x32xf32>,
    %c0_135 = arith.constant 0 : index
    %c0_136 = arith.constant 0 : index
    %1733 = vector.load %arg10[%c0_135, %c0_136] : memref<8x128xf32, #tpu.memory_space<vmem>>, vector<8x128xf32>
    tpu.vector_store %arg10[%c0_135, %c0_136], %1731 {strides = array<i32>} : memref<8x128xf32, #tpu.memory_space<vmem>>, vector<8x128xf32>,
    %c7_137 = arith.constant 7 : index
    %c0_138 = arith.constant 0 : index
    %c0_139 = arith.constant 0 : index
    %1734 = vector.load %arg8[%c7_137, %c0_138, %c0_139] : memref<8x8x128xf32, #tpu.memory_space<vmem>>, vector<1x8x128xf32>
    %1735 = vector.shape_cast %1734 : vector<1x8x128xf32> to vector<8x128xf32>
    %1736 = vector.shape_cast %1731 : vector<8x128xf32> to vector<1x8x128xf32>
    tpu.vector_store %arg8[%c7_137, %c0_138, %c0_139], %1736 {strides = array<i32>} : memref<8x8x128xf32, #tpu.memory_space<vmem>>, vector<1x8x128xf32>,
    %c1_i32 = arith.constant 1 : i32
    %1737 = arith.cmpi eq, %arg0, %c1_i32 : i32
    %1738 = arith.extui %1737 : i1 to i32
    %c0_i32_140 = arith.constant 0 : i32
    %1739 = arith.cmpi ne, %1738, %c0_i32_140 : i32
    scf.if %1739 {
      %c0_141 = arith.constant 0 : index
      %c0_142 = arith.constant 0 : index
      %1740 = vector.load %arg11[%c0_141, %c0_142] : memref<8x32xf32, #tpu.memory_space<vmem>>, vector<8x32xf32>
      %c0_143 = arith.constant 0 : index
      %c0_144 = arith.constant 0 : index
      %1741 = vector.load %arg9[%c0_143, %c0_144] : memref<8x32xf32, #tpu.memory_space<vmem>>, vector<8x32xf32>
      tpu.vector_store %arg9[%c0_143, %c0_144], %1740 {strides = array<i32>} : memref<8x32xf32, #tpu.memory_space<vmem>>, vector<8x32xf32>,
    } else {
    }
    return
  }
  func.func @transform_0(%arg0: i32) -> (i32, i32, i32) {
    %c0_i32 = arith.constant 0 : i32
    %c0_i32_0 = arith.constant 0 : i32
    %c0_i32_1 = arith.constant 0 : i32
    return %arg0, %c0_i32, %c0_i32_0 : i32, i32, i32
  }
  func.func @transform_1(%arg0: i32) -> (i32, i32) {
    %c0_i32 = arith.constant 0 : i32
    %c0_i32_0 = arith.constant 0 : i32
    %c0_i32_1 = arith.constant 0 : i32
    return %c0_i32, %c0_i32_0 : i32, i32
  }
  func.func @transform_2(%arg0: i32) -> (i32, i32) {
    %c0_i32 = arith.constant 0 : i32
    %c0_i32_0 = arith.constant 0 : i32
    %c0_i32_1 = arith.constant 0 : i32
    return %c0_i32, %c0_i32_0 : i32, i32
  }
  func.func @transform_3(%arg0: i32) -> (i32, i32) {
    %c0_i32 = arith.constant 0 : i32
    %c0_i32_0 = arith.constant 0 : i32
    %c0_i32_1 = arith.constant 0 : i32
    return %c0_i32, %c0_i32_0 : i32, i32
  }
  func.func @transform_4(%arg0: i32) -> (i32, i32) {
    %c0_i32 = arith.constant 0 : i32
    %c0_i32_0 = arith.constant 0 : i32
    %c0_i32_1 = arith.constant 0 : i32
    return %c0_i32, %c0_i32_0 : i32, i32
  }
  func.func @transform_5(%arg0: i32) -> (i32, i32) {
    %c0_i32 = arith.constant 0 : i32
    %c0_i32_0 = arith.constant 0 : i32
    %c0_i32_1 = arith.constant 0 : i32
    return %c0_i32, %c0_i32_0 : i32, i32
  }
  func.func @transform_6(%arg0: i32) -> (i32, i32) {
    %c0_i32 = arith.constant 0 : i32
    %c0_i32_0 = arith.constant 0 : i32
    %c0_i32_1 = arith.constant 0 : i32
    return %c0_i32, %c0_i32_0 : i32, i32
  }
  func.func @transform_7(%arg0: i32) -> (i32, i32, i32) {
    %c0_i32 = arith.constant 0 : i32
    %c0_i32_0 = arith.constant 0 : i32
    %c0_i32_1 = arith.constant 0 : i32
    return %arg0, %c0_i32, %c0_i32_0 : i32, i32, i32
  }
  func.func @transform_8(%arg0: i32) -> (i32, i32) {
    %c0_i32 = arith.constant 0 : i32
    %c0_i32_0 = arith.constant 0 : i32
    %c0_i32_1 = arith.constant 0 : i32
    return %c0_i32, %c0_i32_0 : i32, i32
  }
}

</mosaic_0001>

<bundles_post_ra>
// kernel: tpu_custom_call.1
= control target key start
LH: loop header
LB: loop body
LE: loop exit
PB: predicated region body
PF: predicated region fallthrough
CT: control target
= control target key end

     0   :  { %14 = vsyncpa [#allocation5], 0  ;;  %s5312_s0 = inlined_call_operand.hbm [shape: f32[16,8,128], index: 0, kind: input, shape index: {}]   ;;  %s5313_s1 = inlined_call_operand.hbm [shape: bf16[128,128], index: 1, kind: input, shape index: {}]   ;;  %s5314_s2 = inlined_call_operand.hbm [shape: bf16[32,128], index: 2, kind: input, shape index: {}]   ;;  %s5315_s3 = inlined_call_operand.vmem [shape: f32[1,128], index: 3, kind: input, shape index: {}]   ;;  %s5316_s4 = inlined_call_operand.hbm [shape: f32[32,128], index: 4, kind: input, shape index: {}]   ;;  %s5317_s5 = inlined_call_operand.vmem [shape: f32[1,128], index: 5, kind: input, shape index: {}]   ;;  %s5318_s6 = inlined_call_operand.vmem [shape: f32[1,128], index: 6, kind: input, shape index: {}]   ;;  %s5319_s7 = inlined_call_operand.hbm [shape: f32[16,8,128], index: 7, kind: output, shape index: {0}]   ;;  %s5320_s8 = inlined_call_operand.hbm [shape: f32[8,32], index: 8, kind: output, shape index: {1}]  }
   0x1   :  { %16 = vsyncpa [#allocation5 + $0x1], 0 }
   0x2   :  { %17 = vsyncpa [#allocation8], 0 }
   0x3   :  { %18 = vsyncpa [#allocation11], 0 }
   0x4   :  { %19 = vsyncpa [#allocation6], 0 }
   0x5   :  { %21 = vsyncpa [#allocation6 + $0x1], 0 }
   0x6   :  { %22 = vsyncpa [#allocation14], 0  ;;  %s3788_s27 = smov 0   ;;  %s3790_s28 = smov 0  }
   0x7   :  { %s3792_s29 = smov 0   ;;  %s3794_s30 = smov 0  }
   0x8 LB: > { %5326 = sst [smem:[#allocation20_spill]] %s3711_s27  ;;  %s3809_s9 = sadd.s32 4294967295, %s3723_s30   ;;  %s3723_s30 = sphi %s3794_s30, %s5356_s30   ;;  %s3719_s29 = sphi %s3792_s29, %s5355_s29   ;;  %s3715_s28 = sphi %s3790_s28, %s5354_s28   ;;  %s3711_s27 = sphi %s3788_s27, %s5353_s27  }
   0x9   : > { %s2733_s10 = sadd.s32 4294967294, %s3723_s30   ;;  %p48_p0 = scmp.ne.s32.totalorder %s3715_s28, %s3711_s27 }
   0xa   : > { %p5321_p1 = scmp.eq.s32.totalorder %s3809_s9, 0  ;;  %p204_p3 = scmp.eq.s32.totalorder %s2733_s10, 1 }
   0xb   : > { %p2734_p5 = scmp.ge.s32.totalorder %s3723_s30, 1  ;;  %p232_p7 = scmp.lt.s32.totalorder %s3723_s30, 3 }
   0xc   : > { %p3818_p4 = por %p5321_p1, %p48_p0  ;;  %p3823_p6 = por %p204_p3, %p48_p0 }
   0xd   : > { %p3829_p9 = pnand %p2734_p5, %p232_p7  ;;  %s3725_s14 = smov [#allocation7]  }
   0xe   : > { %s5327_s11 = scalar_select %p3818_p4, 1, 0 }
   0xf   : > { %s5328_s12 = scalar_select %p3823_p6, 1, 0 }
  0x10   : > { %s5330_s13 = scalar_select %p3829_p9, 1, 0 }
  0x11   : > { %5329 = sst [smem:[#allocation21_spill]] %s5328_s12  ;;  %s244_s15 = sshll.u32 %s3725_s14, 4  ;;  %s3833_s15 = int_to_ptr.vmem [resolvable:$true] %s244_s15 }
  0x12   : > { %p3382_p10 = pneg %p3829_p9  ;;  %s3726_s17 = smov [#allocation9]  }
  0x13   : > { %s257_s18 = sshll.u32 %s3726_s17, 4  ;;  %s3727_s19 = smov [#allocation10]   ;;  %s3844_s18 = int_to_ptr.vmem [resolvable:$true] %s257_s18 }
  0x14   : > { %p3840_p12 = pnand %p3382_p10, %p5321_p1  ;;  %s3846_s20 = sshll.u32 %s3727_s19, 4  ;;  %s274_s20 = int_to_ptr.vmem [resolvable:$true] %s3846_s20 }
  0x15   : > { %s3505_s23 = scalar_lea.hbm %s5313_s1, 1024 }
  0x16   : > { %p3506_p13 = scmp.ne.s32.totalorder %s5313_s1, %s3505_s23  ;;  %p3856_p0 = pneg %p3840_p12 }
  0x17   : > { %p3512_p7 = scmp.lt.u32.totalorder %s3505_s23, %s5313_s1 }
  0x18   : > { %p3508_p3 = pnand %p3856_p0, %p3506_p13 }
  0x1a   : > { %p3509_p5 = pneg %p3508_p3 }
  0x1c   : > { %p3514_p10 = pnand %p3512_p7, %p3509_p5 }
  0x1e   : > { %3517 = shalt.err (!%p3514_p10)
}
  0x1f   : > { %s3518_s17 = scalar_lea.vmem %s3833_s15, 1024  ;;  %p3526_p2 = scmp.lt.s32.totalorder %s3833_s15, %s3833_s15 }
  0x20   : > { %p3519_p11 = scmp.ne.s32.totalorder %s3833_s15, %s3518_s17  ;;  %p3527_p6 = scmp.lt.s32.totalorder %s3518_s17, %s3518_s17 }
  0x22   : > { %p3521_p8 = pnand %p3519_p11, %p3856_p0  ;;  %p3528_p13 = por %p3527_p6, %p3526_p2 }
  0x24   : > { %p3522_p1 = pneg %p3521_p8 }
  0x26   : > { %p3529_p3 = pnand %p3528_p13, %p3522_p1 }
  0x28   : > { %3532 = shalt.err (!%p3529_p3)
}
  0x29   : > { %s3728_s19 = smov 64   ;;  %s3729_s21 = smov 4  }
  0x2a   : > { %3385 = dma.hbm_to_vmem [thread:$0]  (!%p3840_p12), %s5313_s1, 1024, %s3833_s15, [#allocation8], %s3728_s19, %s3728_s19, %s3729_s21  }
  0x2b   : > { %s3533_s10 = scalar_lea.hbm %s5314_s2, 256 }
  0x2c   : > { %p3534_p2 = scmp.ne.s32.totalorder %s5314_s2, %s3533_s10  ;;  %p3540_p8 = scmp.lt.u32.totalorder %s3533_s10, %s5314_s2 }
  0x2e   : > { %p3536_p1 = pnand %p3534_p2, %p3856_p0 }
  0x30   : > { %p3537_p6 = pneg %p3536_p1 }
  0x32   : > { %p3542_p11 = pnand %p3540_p8, %p3537_p6 }
  0x34   : > { %3545 = shalt.err (!%p3542_p11)
}
  0x35   : > { %s3546_s15 = scalar_lea.vmem %s3844_s18, 256  ;;  %p3554_p13 = scmp.lt.s32.totalorder %s3844_s18, %s3844_s18 }
  0x36   : > { %p3547_p5 = scmp.ne.s32.totalorder %s3844_s18, %s3546_s15  ;;  %p3555_p3 = scmp.lt.s32.totalorder %s3546_s15, %s3546_s15 }
  0x38   : > { %p3549_p7 = pnand %p3547_p5, %p3856_p0  ;;  %p3556_p2 = por %p3555_p3, %p3554_p13 }
  0x3a   : > { %p3550_p10 = pneg %p3549_p7 }
  0x3c   : > { %p3557_p1 = pnand %p3556_p2, %p3550_p10 }
  0x3e   : > { %3560 = shalt.err (!%p3557_p1)
}
  0x3f   : > { %3388 = dma.hbm_to_vmem [thread:$0]  (!%p3840_p12), %s5314_s2, 256, %s3844_s18, [#allocation8], %s3728_s19, %s3728_s19, %s3729_s21  }
  0x40   : > { %s3561_s24 = scalar_lea.hbm %s5316_s4, 512 }
  0x41   : > { %p3562_p6 = scmp.ne.s32.totalorder %s5316_s4, %s3561_s24  ;;  %p3568_p5 = scmp.lt.u32.totalorder %s3561_s24, %s5316_s4 }
  0x43   : > { %p3564_p8 = pnand %p3562_p6, %p3856_p0 }
  0x45   : > { %p3565_p11 = pneg %p3564_p8 }
  0x47   : > { %p3570_p7 = pnand %p3568_p5, %p3565_p11 }
  0x49   : > { %3573 = shalt.err (!%p3570_p7)
}
  0x4a   : > { %s3574_s15 = scalar_lea.vmem %s274_s20, 512  ;;  %p3582_p2 = scmp.lt.s32.totalorder %s274_s20, %s274_s20 }
  0x4b   : > { %p3575_p10 = scmp.ne.s32.totalorder %s274_s20, %s3574_s15  ;;  %p3583_p1 = scmp.lt.s32.totalorder %s3574_s15, %s3574_s15 }
  0x4d   : > { %p3577_p13 = pnand %p3575_p10, %p3856_p0  ;;  %p3584_p4 = por %p3583_p1, %p3582_p2 }
  0x4f   : > { %p3578_p3 = pneg %p3577_p13 }
  0x51   : > { %p3585_p9 = pnand %p3584_p4, %p3578_p3 }
  0x53   : > { %3588 = shalt.err (!%p3585_p9)
}
  0x54   : > { %s3730_s18 = smov 128   ;;  %s3731_s26 = smov 8  }
  0x55   : > { %3391 = dma.hbm_to_vmem [thread:$0]  (!%p3840_p12), %s5316_s4, 512, %s274_s20, [#allocation11], %s3730_s18, %s3730_s18, %s3731_s26  }
  0x56   : > { %s3923_s27 = sadd.s32 1, %s3723_s30   ;;  %s35_s22 = sadd.s32 1, %s3719_s29 }
  0x57   : > { %s32_s12 = ssub.s32 %s3723_s30, %s3923_s27  ;;  %p42_p9 = scmp.ne.s32.totalorder %s3719_s29, %s3715_s28 }
  0x58   : > { %p33_p4 = scmp.eq.s32.totalorder %s32_s12, 0  ;;  %p43_p0 = scmp.eq.s32.totalorder %s3723_s30, 0 }
  0x59   : > { %p3403_p6 = scmp.lt.s32.totalorder %s3723_s30, 2  ;;  %p5333_p11 = scmp.eq.s32.totalorder %s3809_s9, 1 }
  0x5a   : > { %s3933_s23 = scalar_select %p33_p4, %s3719_s29, %s35_s22  }
  0x5b   : > { %p44_p8 = por %p43_p0, %p42_p9  ;;  %p3937_p5 = por %p5333_p11, %p42_p9 }
  0x5c   : > { %s293_s24 = sand.u32 1, %s3719_s29   ;;  %s3040_s25 = sshll.u32 %s3723_s30, 10 }
  0x5d   : > { %s2739_s20 = sshll.u32 %s293_s24, 6  ;;  %s3946_s17 = scalar_lea.hbm %s5312_s0, %s3040_s25 }
  0x5e   : > { %s297_s15 = scalar_lea.vmem [#allocation4], %s2739_s20  ;;  %p3948_p12 = pnand %p3403_p6, %p44_p8 }
  0x5f   : > { %s304_s19 = sshll.u32 %s297_s15, 4  ;;  %s3954_s12 = scalar_lea.sflag [#allocation5], %s293_s24  ;;  %s3952_s19 = int_to_ptr.vmem [resolvable:$true] %s304_s19 }
  0x60   : > { %s3589_s22 = scalar_lea.hbm %s3946_s17, 1024  ;;  %p3591_p10 = pneg %p3948_p12 }
  0x61   : > { %p3590_p7 = scmp.ne.s32.totalorder %s3946_s17, %s3589_s22  ;;  %s3594_s10 = scalar_lea.hbm %s5312_s0, 2048 }
  0x62   : > { %p3595_p2 = scmp.lt.u32.totalorder %s3946_s17, %s5312_s0  ;;  %p3596_p1 = scmp.lt.u32.totalorder %s3594_s10, %s3589_s22 }
  0x63   : > { %p3592_p13 = pnand %p3591_p10, %p3590_p7  ;;  %p3598_p9 = scmp.lt.u32.totalorder %s3589_s22, %s3946_s17 }
  0x64   : > { %p3597_p4 = por %p3596_p1, %p3595_p2 }
  0x65   : > { %p3593_p3 = pneg %p3592_p13 }
  0x66   : > { %p3599_p0 = por %p3598_p9, %p3597_p4 }
  0x68   : > { %p3600_p6 = pnand %p3599_p0, %p3593_p3 }
  0x6a   : > { %3603 = shalt.err (!%p3600_p6)
}
  0x6b   : > { %s3604_s24 = scalar_lea.vmem %s3952_s19, 1024  ;;  %s3732_s25 = smov [#allocation4]  }
  0x6c   : > { %p3605_p8 = scmp.ne.s32.totalorder %s3952_s19, %s3604_s24  ;;  %s3609_s20 = sshll.u32 %s3732_s25, 4  ;;  %s3610_s20 = int_to_ptr.vmem [resolvable:$false] %s3609_s20 }
  0x6d   : > { %s3611_s14 = scalar_lea.vmem %s3610_s20, 2048  ;;  %p3612_p13 = scmp.lt.s32.totalorder %s3952_s19, %s3610_s20 }
  0x6e   : > { %p3607_p11 = pnand %p3605_p8, %p3591_p10  ;;  %p3613_p2 = scmp.lt.s32.totalorder %s3611_s14, %s3604_s24 }
  0x70   : > { %p3608_p7 = pneg %p3607_p11  ;;  %p3614_p1 = por %p3613_p2, %p3612_p13 }
  0x72   : > { %p3615_p4 = pnand %p3614_p1, %p3608_p7 }
  0x74   : > { %3618 = shalt.err (!%p3615_p4)
}
  0x75   : > { %3395 = dma.hbm_to_vmem [thread:$0]  (!%p3948_p12), %s3946_s17, 1024, %s3952_s19, %s3954_s12, %s3730_s18, %s3730_s18, %s3731_s26  }
  0x76   : > { %p5336_p10 = scmp.ne.s32.totalorder %s5330_s13, 0 }
  0x77   : > { %s3988_s22 = sand.u32 (!%p5336_p10), 1, %s3715_s28   ;;  %p5337_p3 = scmp.ne.s32.totalorder (!%p5336_p10), %s5327_s11, 0 }
  0x78   : > { %316 = sbr.rel (%p5336_p10) target bundleno = 8030 (0x1f5e), region = 48  ;;  %s2743_s10 = sshll.u32 (!%p5336_p10), %s3988_s22, 6 }
  0x79   : > { %s319_s15 = scalar_lea.sflag (!%p5336_p10), [#allocation5], %s3988_s22  ;;  %s3992_s24 = scalar_lea.vmem (!%p5336_p10), [#allocation4], %s2743_s10 }
  0x7f   : > { %3690 = dma.done.wait (%p5337_p3), %s319_s15, 1024  }
  0x80   : > { %3692 = vsyncadd (%p5337_p3), %s319_s15, 4294966272  ;;  %p5338_p12 = scmp.eq.s32.totalorder %s3809_s9, 0 }
  0x82   : > { %3694 = dma.done.wait (%p5338_p12), [#allocation8], 1280   ;;  %p5339_p9 = pmov %p5338_p12 }
  0x84   : > { %3696 = vsyncadd (%p5339_p9), [#allocation8], 4294966016  ;;  %p5340_p0 = pmov %p5339_p9 }
  0x86   : > { %3698 = dma.done.wait (%p5340_p0), [#allocation11], 512   ;;  %p5341_p6 = pmov %p5340_p0 }
  0x87   : > { %s4006_s13 = scalar_lea.vmem [#allocation12], %s2743_s10  ;;  %p5342_p8 = scmp.ne.s32.totalorder %s3809_s9, 0 }
  0x88   : > { %3700 = vsyncadd (%p5341_p6), [#allocation11], 4294966784  ;;  %vm375_vm0 = vcmask (!%p5342_p8), 261120   ;;  %v3733_v0 = vmov (!%p5342_p8), 0.0  }
  0x89   : > { %373 = sbr.rel (%p5342_p8) target bundleno = 144 (0x90), region = 68  ;;  %374 = vst [vmem:[#allocation2] sm:$0xff] (!%p5342_p8), %v3733_v0  ;;  %376 = vst.msk [vmem:[#allocation3] sm:$0xff] (!%p5342_p8), %vm375_vm0, %v3733_v0 }
  0x90 PF: > { %v4010_v1 = vld [vmem:[#allocation7] sm:$0xff]   ;;  %v3734_v2 = vmov 0.0   ;;  %v4015_v3 = vld [vmem:[#allocation7 + $0x8] sm:$0xff]   ;;  %vm3735_vm1 = vmmov 0   ;;  %v4023_v4 = vld [vmem:[#allocation7 + $0x10] sm:$0xff]   ;;  %v496_v12 = vlaneseq  ;;  %s3736_s19 = smov 64  }
  0x91   : > { %3138 = vmatprep.subr.bf16.mxu0 %v3734_v2  ;;  %3158 = vmatprep.subr.bf16.mxu1 %v3734_v2  ;;  %v4027_v5 = vld [vmem:[#allocation7 + $0x18] sm:$0xff]   ;;  %v4031_v6 = vld [vmem:[#allocation7 + $0x20] sm:$0xff]   ;;  %v4035_v7 = vld [vmem:[#allocation7 + $0x28] sm:$0xff]   ;;  %s3737_s21 = smov 32   ;;  %s3738_s12 = smov 96  }
  0x92   : > { %3139 = vmatpush3.bf16.msra.mxu0 %v4010_v1  ;;  %3154 = vmatprep.mubr.msk.bf16.mxu0 %vm3735_vm1, %v3734_v2  ;;  %v4039_v8 = vld [vmem:[#allocation7 + $0x30] sm:$0xff]   ;;  %v4043_v9 = vld [vmem:[#allocation7 + $0x38] sm:$0xff]   ;;  %v497_v13 = vshrl.u32 %v496_v12, 7  ;;  %v406_v19 = vld [vmem:[%s3992_s24] sm:$0xff]  ;;  %p3032_p11 = scmp.ne.s32.totalorder %s3809_s9, 1 }
  0x93   : > { %3140 = vmatprep.subr.bf16.mxu0 %v3734_v2  ;;  %3162 = vmatprep.mubr.msk.bf16.mxu1 %vm3735_vm1, %v3734_v2  ;;  %v404_v10 = vld [vmem:[#allocation2] sm:$0xff]  ;;  %v399_v41 = vld [vmem:[#allocation10 + $0x8] sm:$0xff] }
  0x94   : > { %v405_v11 = vpack.c.bf16 %v404_v10, %v404_v10  ;;  %v4050_v14 = vsub.s32 0, %v497_v13  ;;  %v4052_v15 = vsub.s32 1, %v497_v13  ;;  %v4054_v16 = vsub.s32 2, %v497_v13  ;;  %v398_v17 = vld [vmem:[#allocation10] sm:$0xff] }
  0x95   : > { %v4056_v18 = vsub.s32 3, %v497_v13  ;;  %v4059_v20 = vsub.s32 4, %v497_v13  ;;  %v4075_v28 = vsub.s32 5, %v497_v13  ;;  %v4086_v32 = vsub.s32 6, %v497_v13 }
  0x96   : > { %3141 = vmatpush3.bf16.msra.mxu0 %v4015_v3  ;;  %v4062_v21 = vrot.slane %v398_v17, %v4050_v14  ;;  %v4065_v22 = vrot.slane %v398_v17, %v4052_v15  ;;  %v4068_v23 = vrot.slane %v398_v17, %v4054_v16  ;;  %v4095_v37 = vsub.s32 7, %v497_v13 }
  0x97   : > { %3142 = vmatprep.subr.bf16.mxu0 %v3734_v2  ;;  %v4073_v27 = vrot.slane %v398_v17, %v4056_v18  ;;  %v4078_v30 = vrot.slane %v398_v17, %v4059_v20  ;;  %v4093_v36 = vrot.slane %v398_v17, %v4075_v28  ;;  %v4101_v40 = vrot.slane %v398_v17, %v4086_v32 }
  0x98   : > { %v4107_v44 = vrot.slane %v398_v17, %v4095_v37  ;;  %v4113_v47 = vrot.slane %v399_v41, %v4050_v14  ;;  %v4119_v50 = vrot.slane %v399_v41, %v4052_v15  ;;  %v4125_v53 = vrot.slane %v399_v41, %v4054_v16 }
  0x99   : > { %v4131_v56 = vrot.slane %v399_v41, %v4056_v18  ;;  %v4137_v59 = vrot.slane %v399_v41, %v4059_v20  ;;  %v4143_v62 = vrot.slane %v399_v41, %v4075_v28  ;;  %v4149_v10 = vrot.slane %v399_v41, %v4086_v32 }
  0x9a   : > { %3143 = vmatpush3.bf16.msra.mxu0 %v4023_v4  ;;  %v4155_v17 = vrot.slane %v399_v41, %v4095_v37 }
  0x9b   : > { %3144 = vmatprep.subr.bf16.mxu0 %v3734_v2 }
  0x9e   : > { %3145 = vmatpush3.bf16.msra.mxu0 %v4027_v5 }
  0x9f   : > { %3146 = vmatprep.subr.bf16.mxu0 %v3734_v2 }
  0xa2   : > { %3147 = vmatpush3.bf16.msra.mxu0 %v4031_v6 }
  0xa3   : > { %3148 = vmatprep.subr.bf16.mxu0 %v3734_v2 }
  0xa6   : > { %3149 = vmatpush3.bf16.msra.mxu0 %v4035_v7 }
  0xa7   : > { %3150 = vmatprep.subr.bf16.mxu0 %v3734_v2 }
  0xaa   : > { %3151 = vmatpush3.bf16.msra.mxu0 %v4039_v8 }
  0xab   : > { %3152 = vmatprep.subr.bf16.mxu0 %v3734_v2 }
  0xae   : > { %3153 = vmatpush3.bf16.msra.mxu0 %v4043_v9 }
  0xaf   : > { %3186 = vmatprep.subr.bf16.mxu0 %v3734_v2 }
  0xb1   : > { %3155 = vmatmul.mubr.bf16.vlgmr.msra.gmra.mrb[0].mxu0 %v405_v11  ;;  %v400_v11 = vld [vmem:[#allocation10 + $0x10] sm:$0xff] }
  0xb2   : > { %3190 = vmatprep.mubr.msk.bf16.mxu0 %vm3735_vm1, %v3734_v2 }
 0x184   : > { %v489_v24 = vpop.f32.mrb[0].mxu0 }
 0x185   : > { %v4070_v25 = vadd.f32 %v489_v24, %v406_v19  ;;  %v3156_v26 = vpop.f32.mrb[1].mxu0 }
 0x186   : > { %v492_v29 = vpop.f32.mrb[2].mxu0  ;;  %v4161_v26 = vrot.slane %v400_v11, %v4050_v14 }
 0x187   : > { %v3157_v31 = vpop.f32.mrb[3].mxu0  ;;  %vm500_vm2 = vcmp.ge.f32.partialorder %v4070_v25, %v4062_v21  ;;  %vm508_vm3 = vcmp.ge.f32.partialorder %v4070_v25, %v4065_v22  ;;  %vm516_vm4 = vcmp.ge.f32.partialorder %v4070_v25, %v4068_v23  ;;  %vm524_vm5 = vcmp.ge.f32.partialorder %v4070_v25, %v4073_v27 }
 0x188   : > { %v2757_v33 = vsel %vm500_vm2, 1.0, %v3734_v2  ;;  %v2758_v34 = vsel %vm508_vm3, 1.0, %v3734_v2  ;;  %v2759_v38 = vsel %vm516_vm4, 1.0, %v3734_v2  ;;  %vm532_vm6 = vcmp.ge.f32.partialorder %v4070_v25, %v4078_v30 }
 0x189   : > { %v511_v35 = vadd.f32 %v2758_v34, %v2757_v33  ;;  %v2760_v42 = vsel %vm524_vm5, 1.0, %v3734_v2  ;;  %vm540_vm7 = vcmp.ge.f32.partialorder %v4070_v25, %v4093_v36  ;;  %v2761_v45 = vsel %vm532_vm6, 1.0, %v3734_v2 }
 0x18a   : > { %vm548_vm8 = vcmp.ge.f32.partialorder %v4070_v25, %v4101_v40  ;;  %v2762_v48 = vsel %vm540_vm7, 1.0, %v3734_v2  ;;  %vm556_vm9 = vcmp.ge.f32.partialorder %v4070_v25, %v4107_v44  ;;  %vm564_vm10 = vcmp.ge.f32.partialorder %v4070_v25, %v4113_v47 }
 0x18b   : > { %v519_v39 = vadd.f32 %v2759_v38, %v511_v35  ;;  %v2763_v51 = vsel %vm548_vm8, 1.0, %v3734_v2  ;;  %v2764_v54 = vsel %vm556_vm9, 1.0, %v3734_v2  ;;  %vm572_vm11 = vcmp.ge.f32.partialorder %v4070_v25, %v4119_v50 }
 0x18c   : > { %v2765_v57 = vsel %vm564_vm10, 1.0, %v3734_v2  ;;  %vm580_vm12 = vcmp.ge.f32.partialorder %v4070_v25, %v4125_v53  ;;  %v2766_v60 = vsel %vm572_vm11, 1.0, %v3734_v2  ;;  %vm588_vm13 = vcmp.ge.f32.partialorder %v4070_v25, %v4131_v56 }
 0x18d   : > { %v527_v43 = vadd.f32 %v2760_v42, %v519_v39  ;;  %v2767_v63 = vsel %vm580_vm12, 1.0, %v3734_v2  ;;  %vm596_vm14 = vcmp.ge.f32.partialorder %v4070_v25, %v4137_v59  ;;  %v2768_v12 = vsel %vm588_vm13, 1.0, %v3734_v2 }
 0x18e   : > { %vm604_vm15 = vcmp.ge.f32.partialorder %v4070_v25, %v4143_v62  ;;  %v2769_v19 = vsel %vm596_vm14, 1.0, %v3734_v2  ;;  %vm612_vm0 = vcmp.ge.f32.partialorder %v4070_v25, %v4149_v10  ;;  %vm620_vm2 = vcmp.ge.f32.partialorder %v4070_v25, %v4155_v17 }
 0x18f   : > { %v535_v46 = vadd.f32 %v2761_v45, %v527_v43  ;;  %v2770_v29 = vsel %vm604_vm15, 1.0, %v3734_v2  ;;  %v4167_v33 = vrot.slane %v400_v11, %v4052_v15  ;;  %v2771_v34 = vsel %vm612_vm0, 1.0, %v3734_v2 }
 0x190   : > { %vm628_vm3 = vcmp.ge.f32.partialorder %v4070_v25, %v4161_v26  ;;  %v4173_v38 = vrot.slane %v400_v11, %v4054_v16  ;;  %v2772_v39 = vsel %vm620_vm2, 1.0, %v3734_v2  ;;  %v4179_v42 = vrot.slane %v400_v11, %v4056_v18 }
 0x191   : > { %v543_v49 = vadd.f32 %v2762_v48, %v535_v46  ;;  %vm636_vm4 = vcmp.ge.f32.partialorder %v4070_v25, %v4167_v33  ;;  %v2773_v43 = vsel %vm628_vm3, 1.0, %v3734_v2  ;;  %v4185_v46 = vrot.slane %v400_v11, %v4059_v20 }
 0x192   : > { %vm644_vm5 = vcmp.ge.f32.partialorder %v4070_v25, %v4173_v38  ;;  %v2774_v48 = vsel %vm636_vm4, 1.0, %v3734_v2  ;;  %vm652_vm6 = vcmp.ge.f32.partialorder %v4070_v25, %v4179_v42  ;;  %vm802_vm3 = vcmask 261120  }
 0x193   : > { %v551_v52 = vadd.f32 %v2763_v51, %v543_v49  ;;  %v4191_v51 = vrot.slane %v400_v11, %v4075_v28  ;;  %vm660_vm7 = vcmp.ge.f32.partialorder %v4070_v25, %v4185_v46 }
 0x195   : > { %v559_v55 = vadd.f32 %v2764_v54, %v551_v52  ;;  %v2775_v52 = vsel %vm644_vm5, 1.0, %v3734_v2  ;;  %vm668_vm8 = vcmp.ge.f32.partialorder %v4070_v25, %v4191_v51 }
 0x197   : > { %v567_v58 = vadd.f32 %v2765_v57, %v559_v55  ;;  %v4197_v55 = vrot.slane %v400_v11, %v4086_v32  ;;  %v401_v57 = vld [vmem:[#allocation10 + $0x18] sm:$0xff] }
 0x199   : > { %v575_v61 = vadd.f32 %v2766_v60, %v567_v58  ;;  %v2776_v58 = vsel %vm652_vm6, 1.0, %v3734_v2  ;;  %vm676_vm9 = vcmp.ge.f32.partialorder %v4070_v25, %v4197_v55 }
 0x19b   : > { %v583_v0 = vadd.f32 %v2767_v63, %v575_v61  ;;  %v4203_v61 = vrot.slane %v400_v11, %v4095_v37  ;;  %v2777_v63 = vsel %vm660_vm7, 1.0, %v3734_v2  ;;  %v2779_v37 = vsel %vm676_vm9, 1.0, %v3734_v2 }
 0x19d   : > { %v591_v13 = vadd.f32 %v2768_v12, %v583_v0  ;;  %v4209_v12 = vrot.slane %v401_v57, %v4050_v14  ;;  %vm684_vm10 = vcmp.ge.f32.partialorder %v4070_v25, %v4203_v61 }
 0x19e   : > { %v2780_v14 = vsel %vm684_vm10, 1.0, %v3734_v2 }
 0x19f   : > { %v599_v24 = vadd.f32 %v2769_v19, %v591_v13  ;;  %v2778_v13 = vsel %vm668_vm8, 1.0, %v3734_v2  ;;  %vm692_vm11 = vcmp.ge.f32.partialorder %v4070_v25, %v4209_v12 }
 0x1a1   : > { %v607_v31 = vadd.f32 %v2770_v29, %v599_v24  ;;  %v4215_v24 = vrot.slane %v401_v57, %v4052_v15  ;;  %v4221_v29 = vrot.slane %v401_v57, %v4054_v16  ;;  %v2781_v15 = vsel %vm692_vm11, 1.0, %v3734_v2 }
 0x1a3   : > { %v615_v35 = vadd.f32 %v2771_v34, %v607_v31  ;;  %vm700_vm12 = vcmp.ge.f32.partialorder %v4070_v25, %v4215_v24  ;;  %v4227_v34 = vrot.slane %v401_v57, %v4056_v18  ;;  %vm708_vm13 = vcmp.ge.f32.partialorder %v4070_v25, %v4221_v29 }
 0x1a4   : > { %v2782_v16 = vsel %vm700_vm12, 1.0, %v3734_v2  ;;  %v2783_v18 = vsel %vm708_vm13, 1.0, %v3734_v2 }
 0x1a5   : > { %v623_v41 = vadd.f32 %v2772_v39, %v615_v35  ;;  %v4233_v39 = vrot.slane %v401_v57, %v4059_v20  ;;  %vm716_vm14 = vcmp.ge.f32.partialorder %v4070_v25, %v4227_v34 }
 0x1a6   : > { %v2784_v20 = vsel %vm716_vm14, 1.0, %v3734_v2 }
 0x1a7   : > { %v631_v45 = vadd.f32 %v2773_v43, %v623_v41  ;;  %v4239_v43 = vrot.slane %v401_v57, %v4075_v28  ;;  %vm724_vm15 = vcmp.ge.f32.partialorder %v4070_v25, %v4233_v39 }
 0x1a9   : > { %v639_v49 = vadd.f32 %v2774_v48, %v631_v45  ;;  %v4245_v48 = vrot.slane %v401_v57, %v4086_v32  ;;  %vm732_vm0 = vcmp.ge.f32.partialorder %v4070_v25, %v4239_v43  ;;  %v4257_v32 = vld [vmem:[%s5317_s5] ss:$0 sm:$0xff] }
 0x1aa   : > { %v2786_v28 = vsel %vm732_vm0, 1.0, %v3734_v2 }
 0x1ab   : > { %v647_v54 = vadd.f32 %v2775_v52, %v639_v49  ;;  %v2785_v52 = vsel %vm724_vm15, 1.0, %v3734_v2  ;;  %vm740_vm2 = vcmp.ge.f32.partialorder %v4070_v25, %v4245_v48 }
 0x1ac   : > { %v2787_v57 = vsel %vm740_vm2, 1.0, %v3734_v2 }
 0x1ad   : > { %v655_v60 = vadd.f32 %v2776_v58, %v647_v54 }
 0x1af   : > { %v663_v0 = vadd.f32 %v2777_v63, %v655_v60  ;;  %v4263_v63 = vld [vmem:[%s5318_s6] ss:$0 sm:$0xff] }
 0x1b1   : > { %v671_v19 = vadd.f32 %v2778_v13, %v663_v0  ;;  %v758_v13 = vld [vmem:[#allocation3] sm:$0xff] }
 0x1b3   : > { %v679_v11 = vadd.f32 %v2779_v37, %v671_v19 }
 0x1b5   : > { %v687_v31 = vadd.f32 %v2780_v14, %v679_v11 }
 0x1b7   : > { %v695_v35 = vadd.f32 %v2781_v15, %v687_v31 }
 0x1b9   : > { %v703_v41 = vadd.f32 %v2782_v16, %v695_v35  ;;  %v4270_v16 = vld [vmem:[#allocation9] sm:$0xff]  }
 0x1ba   : > { %3159 = vmatpush3.bf16.msra.mxu1 %v4270_v16  ;;  %3187 = vmatpush3.bf16.msra.mxu0 %v4270_v16 }
 0x1bb   : > { %v711_v45 = vadd.f32 %v2783_v18, %v703_v41  ;;  %v4274_v41 = vld [vmem:[#allocation9 + $0x8] sm:$0xff]   ;;  %3160 = vmatprep.subr.bf16.mxu1 %v3734_v2  ;;  %3188 = vmatprep.subr.bf16.mxu0 %v3734_v2 }
 0x1bd   : > { %v719_v49 = vadd.f32 %v2784_v20, %v711_v45 }
 0x1be   : > { %3161 = vmatpush3.bf16.msra.mxu1 %v4274_v41  ;;  %3189 = vmatpush3.bf16.msra.mxu0 %v4274_v41 }
 0x1bf   : > { %v727_v54 = vadd.f32 %v2785_v52, %v719_v49  ;;  %3166 = vmatprep.subr.bf16.mxu1 %v3734_v2  ;;  %3194 = vmatprep.subr.bf16.mxu0 %v3734_v2 }
 0x1c1   : > { %v735_v58 = vadd.f32 %v2786_v28, %v727_v54  ;;  %v4309_v28 = vld [vmem:[%s5315_s3] ss:$0 sm:$0xff] }
 0x1c3   : > { %v743_v60 = vadd.f32 %v2787_v57, %v735_v58 }
 0x1c5   : > { %v750_v0 = vmul.f32 %v4257_v32, %v743_v60 }
 0x1c7   : > { %v757_v25 = vadd.f32 %v4263_v63, %v750_v0 }
 0x1c9   : > { %765 = vrot.lane.b32.xlu0 %v757_v25, %s3736_s19 }
 0x1cd   : > { %760 = vrot.lane.b32.xlu0 %v758_v13, %s3737_s21 }
 0x23b   : > { %v766_v19 = vpop.permute.xlu0 %765 }
 0x23c   : > { %v768_v37 = vmul.f32 %v766_v19, %v757_v25  ;;  %v2794_v19 = vld [vmem:[%s3992_s24 + $0x8] sm:$0xff] }
 0x23e   : > { %770 = vrot.lane.b32.xlu1 %v768_v37, %s3737_s21 }
 0x23f   : > { %v761_v11 = vpop.permute.xlu0 %760 }
 0x240   : > { %v763_v14 = vmul.f32 %v761_v11, %v757_v25 }
 0x2b0   : > { %v771_v31 = vpop.permute.xlu1 %770 }
 0x2b1   : > { %v773_v15 = vadd.f32 %v771_v31, %v763_v14 }
 0x2b3   : > { %3468 = vtanh.f32 %v773_v15 }
 0x2bd   : > { %v3469_v35 = vpop.eup %3468 }
 0x2be   : > { %776 = vrot.lane.b32.xlu1 %v3469_v35, %s3736_s19 }
 0x2c2   : > { %847 = vrot.lane.b32.xlu1 %v773_v15, %s3738_s12 }
 0x330   : > { %v777_v18 = vpop.permute.xlu1 %776 }
 0x331   : > { %v779_v45 = vmul.f32 %v777_v18, %v757_v25 }
 0x333   : > { %v780_v20 = vpack.c.bf16 %v779_v45, %v779_v45 }
 0x334   : > { %v848_v49 = vpop.permute.xlu1 %847 }
 0x335   : > { %850 = vst.msk [vmem:[#allocation3] sm:$0xff] %vm802_vm3, %v848_v49  ;;  %788 = vrot.lane.b32.xlu0 %v780_v20, %s3737_s21 }
 0x33c   : > { %v1024_v52 = vld [vmem:[#allocation3] sm:$0xff] }
 0x33d   : > { %1026 = vrot.lane.b32.xlu1 %v1024_v52, %s3737_s21 }
 0x3a7   : > { %v789_v54 = vpop.permute.xlu0 %788 }
 0x3a8   : > { %3163 = vmatmul.mubr.msk.bf16.vlgmr.msra.gmra.mrb[0].mxu1 %vm802_vm3, %v789_v54 }
 0x3a9   : > { %3167 = vmatpush3.bf16.msra.mxu1 %v4010_v1  ;;  %3182 = vmatprep.mubr.msk.bf16.mxu1 %vm3735_vm1, %v3734_v2 }
 0x3aa   : > { %3168 = vmatprep.subr.bf16.mxu1 %v3734_v2 }
 0x3ad   : > { %3169 = vmatpush3.bf16.msra.mxu1 %v4015_v3 }
 0x3ae   : > { %3170 = vmatprep.subr.bf16.mxu1 %v3734_v2 }
 0x3b1   : > { %3171 = vmatpush3.bf16.msra.mxu1 %v4023_v4 }
 0x3b2   : > { %3172 = vmatprep.subr.bf16.mxu1 %v3734_v2 }
 0x3b5   : > { %3173 = vmatpush3.bf16.msra.mxu1 %v4027_v5 }
 0x3b6   : > { %3174 = vmatprep.subr.bf16.mxu1 %v3734_v2 }
 0x3b9   : > { %3175 = vmatpush3.bf16.msra.mxu1 %v4031_v6 }
 0x3ba   : > { %3176 = vmatprep.subr.bf16.mxu1 %v3734_v2 }
 0x3bd   : > { %3177 = vmatpush3.bf16.msra.mxu1 %v4035_v7 }
 0x3be   : > { %3178 = vmatprep.subr.bf16.mxu1 %v3734_v2 }
 0x3c1   : > { %3179 = vmatpush3.bf16.msra.mxu1 %v4039_v8 }
 0x3c2   : > { %3180 = vmatprep.subr.bf16.mxu1 %v3734_v2 }
 0x3c5   : > { %3181 = vmatpush3.bf16.msra.mxu1 %v4043_v9 }
 0x3c6   : > { %3214 = vmatprep.subr.bf16.mxu1 %v3734_v2 }
 0x47b   : > { %v840_v58 = vpop.f32.mrb[0].mxu1 }
 0x47c   : > { %v841_v57 = vadd.f32 %v4309_v28, %v840_v58  ;;  %v3164_v60 = vpop.f32.mrb[1].mxu1 }
 0x47d   : > { %v843_v0 = vpop.f32.mrb[2].mxu1 }
 0x47e   : > { %852 = vst [vmem:[%s4006_s13] sm:$0xff] %v841_v57  ;;  %v3165_v25 = vpop.f32.mrb[3].mxu1  ;;  %v854_v13 = vpack.c.bf16 %v841_v57, %v841_v57 }
 0x480   : > { %3183 = vmatmul.mubr.bf16.vlgmr.msra.gmra.mrb[4].mxu1 %v854_v13 }
 0x481   : > { %3215 = vmatpush3.bf16.msra.mxu1 %v4270_v16  ;;  %3218 = vmatprep.mubr.msk.bf16.mxu1 %vm3735_vm1, %v3734_v2 }
 0x482   : > { %3216 = vmatprep.subr.bf16.mxu1 %v3734_v2 }
 0x485   : > { %3217 = vmatpush3.bf16.msra.mxu1 %v4274_v41 }
 0x486   : > { %3222 = vmatprep.subr.bf16.mxu1 %v3734_v2 }
 0x553   : > { %v891_v37 = vpop.f32.mrb[4].mxu1 }
 0x554   : > { %v4320_v11 = vadd.f32 %v2794_v19, %v891_v37  ;;  %v3184_v14 = vpop.f32.mrb[5].mxu1 }
 0x555   : > { %v894_v31 = vpop.f32.mrb[6].mxu1 }
 0x556   : > { %v3185_v15 = vpop.f32.mrb[7].mxu1  ;;  %vm898_vm4 = vcmp.ge.f32.partialorder %v4320_v11, %v4062_v21  ;;  %vm902_vm5 = vcmp.ge.f32.partialorder %v4320_v11, %v4065_v22  ;;  %vm906_vm6 = vcmp.ge.f32.partialorder %v4320_v11, %v4068_v23  ;;  %vm910_vm7 = vcmp.ge.f32.partialorder %v4320_v11, %v4073_v27 }
 0x557   : > { %v2795_v35 = vsel %vm898_vm4, 1.0, %v3734_v2  ;;  %v2796_v18 = vsel %vm902_vm5, 1.0, %v3734_v2  ;;  %v2797_v20 = vsel %vm906_vm6, 1.0, %v3734_v2  ;;  %vm914_vm8 = vcmp.ge.f32.partialorder %v4320_v11, %v4078_v30 }
 0x558   : > { %v905_v45 = vadd.f32 %v2796_v18, %v2795_v35  ;;  %v2798_v52 = vsel %vm910_vm7, 1.0, %v3734_v2  ;;  %vm918_vm9 = vcmp.ge.f32.partialorder %v4320_v11, %v4093_v36  ;;  %v2799_v58 = vsel %vm914_vm8, 1.0, %v3734_v2 }
 0x559   : > { %vm922_vm10 = vcmp.ge.f32.partialorder %v4320_v11, %v4101_v40  ;;  %v2800_v60 = vsel %vm918_vm9, 1.0, %v3734_v2  ;;  %vm926_vm11 = vcmp.ge.f32.partialorder %v4320_v11, %v4107_v44  ;;  %vm930_vm12 = vcmp.ge.f32.partialorder %v4320_v11, %v4113_v47 }
 0x55a   : > { %v909_v49 = vadd.f32 %v2797_v20, %v905_v45  ;;  %v2801_v25 = vsel %vm922_vm10, 1.0, %v3734_v2  ;;  %v2802_v19 = vsel %vm926_vm11, 1.0, %v3734_v2  ;;  %vm934_vm13 = vcmp.ge.f32.partialorder %v4320_v11, %v4119_v50 }
 0x55b   : > { %v2803_v14 = vsel %vm930_vm12, 1.0, %v3734_v2  ;;  %vm938_vm14 = vcmp.ge.f32.partialorder %v4320_v11, %v4125_v53  ;;  %v2804_v15 = vsel %vm934_vm13, 1.0, %v3734_v2  ;;  %vm942_vm15 = vcmp.ge.f32.partialorder %v4320_v11, %v4131_v56 }
 0x55c   : > { %v913_v54 = vadd.f32 %v2798_v52, %v909_v49  ;;  %v2805_v18 = vsel %vm938_vm14, 1.0, %v3734_v2  ;;  %vm946_vm0 = vcmp.ge.f32.partialorder %v4320_v11, %v4137_v59  ;;  %v2806_v20 = vsel %vm942_vm15, 1.0, %v3734_v2 }
 0x55d   : > { %vm950_vm2 = vcmp.ge.f32.partialorder %v4320_v11, %v4143_v62  ;;  %v2807_v52 = vsel %vm946_vm0, 1.0, %v3734_v2  ;;  %vm954_vm4 = vcmp.ge.f32.partialorder %v4320_v11, %v4149_v10  ;;  %vm958_vm5 = vcmp.ge.f32.partialorder %v4320_v11, %v4155_v17 }
 0x55e   : > { %v917_v57 = vadd.f32 %v2799_v58, %v913_v54  ;;  %v2808_v58 = vsel %vm950_vm2, 1.0, %v3734_v2  ;;  %vm962_vm6 = vcmp.ge.f32.partialorder %v4320_v11, %v4161_v26  ;;  %vm966_vm7 = vcmp.ge.f32.partialorder %v4320_v11, %v4167_v33 }
 0x55f   : > { %vm970_vm8 = vcmp.ge.f32.partialorder %v4320_v11, %v4173_v38  ;;  %vm974_vm9 = vcmp.ge.f32.partialorder %v4320_v11, %v4179_v42  ;;  %vm978_vm10 = vcmp.ge.f32.partialorder %v4320_v11, %v4185_v46  ;;  %vm982_vm11 = vcmp.ge.f32.partialorder %v4320_v11, %v4191_v51 }
 0x560   : > { %v921_v0 = vadd.f32 %v2800_v60, %v917_v57  ;;  %v2809_v60 = vsel %vm954_vm4, 1.0, %v3734_v2  ;;  %vm986_vm12 = vcmp.ge.f32.partialorder %v4320_v11, %v4197_v55  ;;  %vm990_vm13 = vcmp.ge.f32.partialorder %v4320_v11, %v4203_v61 }
 0x561   : > { %vm994_vm14 = vcmp.ge.f32.partialorder %v4320_v11, %v4209_v12  ;;  %vm998_vm15 = vcmp.ge.f32.partialorder %v4320_v11, %v4215_v24  ;;  %vm1002_vm0 = vcmp.ge.f32.partialorder %v4320_v11, %v4221_v29  ;;  %vm1006_vm2 = vcmp.ge.f32.partialorder %v4320_v11, %v4227_v34 }
 0x562   : > { %v925_v13 = vadd.f32 %v2801_v25, %v921_v0  ;;  %v2810_v25 = vsel %vm958_vm5, 1.0, %v3734_v2  ;;  %vm1010_vm4 = vcmp.ge.f32.partialorder %v4320_v11, %v4233_v39  ;;  %vm1014_vm5 = vcmp.ge.f32.partialorder %v4320_v11, %v4239_v43 }
 0x564   : > { %v929_v37 = vadd.f32 %v2802_v19, %v925_v13  ;;  %v2811_v19 = vsel %vm962_vm6, 1.0, %v3734_v2  ;;  %vm1018_vm6 = vcmp.ge.f32.partialorder %v4320_v11, %v4245_v48 }
 0x566   : > { %v933_v31 = vadd.f32 %v2803_v14, %v929_v37  ;;  %v2812_v14 = vsel %vm966_vm7, 1.0, %v3734_v2 }
 0x568   : > { %v937_v35 = vadd.f32 %v2804_v15, %v933_v31  ;;  %v2813_v15 = vsel %vm970_vm8, 1.0, %v3734_v2 }
 0x56a   : > { %v941_v45 = vadd.f32 %v2805_v18, %v937_v35  ;;  %v2814_v18 = vsel %vm974_vm9, 1.0, %v3734_v2 }
 0x56c   : > { %v945_v49 = vadd.f32 %v2806_v20, %v941_v45  ;;  %v2815_v20 = vsel %vm978_vm10, 1.0, %v3734_v2 }
 0x56e   : > { %v949_v54 = vadd.f32 %v2807_v52, %v945_v49  ;;  %v2816_v52 = vsel %vm982_vm11, 1.0, %v3734_v2 }
 0x570   : > { %v953_v57 = vadd.f32 %v2808_v58, %v949_v54  ;;  %v2817_v58 = vsel %vm986_vm12, 1.0, %v3734_v2 }
 0x572   : > { %v957_v0 = vadd.f32 %v2809_v60, %v953_v57  ;;  %v2818_v60 = vsel %vm990_vm13, 1.0, %v3734_v2 }
 0x574   : > { %v961_v13 = vadd.f32 %v2810_v25, %v957_v0  ;;  %v2819_v25 = vsel %vm994_vm14, 1.0, %v3734_v2 }
 0x576   : > { %v965_v37 = vadd.f32 %v2811_v19, %v961_v13  ;;  %v2820_v19 = vsel %vm998_vm15, 1.0, %v3734_v2 }
 0x578   : > { %v969_v31 = vadd.f32 %v2812_v14, %v965_v37  ;;  %v2821_v14 = vsel %vm1002_vm0, 1.0, %v3734_v2 }
 0x57a   : > { %v973_v35 = vadd.f32 %v2813_v15, %v969_v31  ;;  %v2822_v15 = vsel %vm1006_vm2, 1.0, %v3734_v2 }
 0x57c   : > { %v977_v45 = vadd.f32 %v2814_v18, %v973_v35  ;;  %v2823_v18 = vsel %vm1010_vm4, 1.0, %v3734_v2 }
 0x57e   : > { %v981_v49 = vadd.f32 %v2815_v20, %v977_v45  ;;  %v2824_v20 = vsel %vm1014_vm5, 1.0, %v3734_v2 }
 0x580   : > { %v985_v54 = vadd.f32 %v2816_v52, %v981_v49  ;;  %v2825_v52 = vsel %vm1018_vm6, 1.0, %v3734_v2 }
 0x582   : > { %v989_v57 = vadd.f32 %v2817_v58, %v985_v54 }
 0x584   : > { %v993_v0 = vadd.f32 %v2818_v60, %v989_v57 }
 0x586   : > { %v997_v13 = vadd.f32 %v2819_v25, %v993_v0  ;;  %v1027_v25 = vpop.permute.xlu1 %1026 }
 0x588   : > { %v1001_v37 = vadd.f32 %v2820_v19, %v997_v13 }
 0x58a   : > { %v1005_v31 = vadd.f32 %v2821_v14, %v1001_v37 }
 0x58c   : > { %v1009_v35 = vadd.f32 %v2822_v15, %v1005_v31 }
 0x58e   : > { %v1013_v45 = vadd.f32 %v2823_v18, %v1009_v35 }
 0x590   : > { %v1017_v49 = vadd.f32 %v2824_v20, %v1013_v45 }
 0x592   : > { %v1021_v54 = vadd.f32 %v2825_v52, %v1017_v49 }
 0x594   : > { %v1022_v58 = vmul.f32 %v4257_v32, %v1021_v54 }
 0x596   : > { %v1023_v57 = vadd.f32 %v4263_v63, %v1022_v58 }
 0x598   : > { %1031 = vrot.lane.b32.xlu0 %v1023_v57, %s3736_s19  ;;  %v1029_v13 = vmul.f32 %v1027_v25, %v1023_v57 }
 0x60a   : > { %v1032_v60 = vpop.permute.xlu0 %1031 }
 0x60b   : > { %v1034_v0 = vmul.f32 %v1032_v60, %v1023_v57 }
 0x60d   : > { %1036 = vrot.lane.b32.xlu0 %v1034_v0, %s3737_s21 }
 0x67f   : > { %v1037_v19 = vpop.permute.xlu0 %1036 }
 0x680   : > { %v1039_v11 = vadd.f32 %v1037_v19, %v1029_v13 }
 0x682   : > { %3470 = vtanh.f32 %v1039_v11 }
 0x68c   : > { %v3471_v37 = vpop.eup %3470 }
 0x68d   : > { %1042 = vrot.lane.b32.xlu1 %v3471_v37, %s3736_s19 }
 0x691   : > { %1094 = vrot.lane.b32.xlu1 %v1039_v11, %s3738_s12 }
 0x6ff   : > { %v1043_v14 = vpop.permute.xlu1 %1042 }
 0x700   : > { %v1045_v31 = vmul.f32 %v1043_v14, %v1023_v57 }
 0x702   : > { %v1046_v15 = vpack.c.bf16 %v1045_v31, %v1045_v31 }
 0x703   : > { %v1095_v35 = vpop.permute.xlu1 %1094 }
 0x704   : > { %1097 = vst.msk [vmem:[#allocation3] sm:$0xff] %vm802_vm3, %v1095_v35  ;;  %1048 = vrot.lane.b32.xlu0 %v1046_v15, %s3737_s21 }
 0x70b   : > { %v1272_v18 = vld [vmem:[#allocation3] sm:$0xff] }
 0x70c   : > { %1274 = vrot.lane.b32.xlu1 %v1272_v18, %s3737_s21 }
 0x776   : > { %v1049_v45 = vpop.permute.xlu0 %1048 }
 0x777   : > { %3191 = vmatmul.mubr.msk.bf16.vlgmr.msra.gmra.mrb[4].mxu0 %vm802_vm3, %v1049_v45 }
 0x778   : > { %3195 = vmatpush3.bf16.msra.mxu0 %v4010_v1  ;;  %3210 = vmatprep.mubr.msk.bf16.mxu0 %vm3735_vm1, %v3734_v2 }
 0x779   : > { %3196 = vmatprep.subr.bf16.mxu0 %v3734_v2 }
 0x77c   : > { %3197 = vmatpush3.bf16.msra.mxu0 %v4015_v3 }
 0x77d   : > { %3198 = vmatprep.subr.bf16.mxu0 %v3734_v2 }
 0x780   : > { %3199 = vmatpush3.bf16.msra.mxu0 %v4023_v4 }
 0x781   : > { %3200 = vmatprep.subr.bf16.mxu0 %v3734_v2 }
 0x784   : > { %3201 = vmatpush3.bf16.msra.mxu0 %v4027_v5 }
 0x785   : > { %3202 = vmatprep.subr.bf16.mxu0 %v3734_v2 }
 0x788   : > { %3203 = vmatpush3.bf16.msra.mxu0 %v4031_v6 }
 0x789   : > { %3204 = vmatprep.subr.bf16.mxu0 %v3734_v2 }
 0x78c   : > { %3205 = vmatpush3.bf16.msra.mxu0 %v4035_v7  ;;  %v2828_v7 = vld [vmem:[%s3992_s24 + $0x10] sm:$0xff] }
 0x78d   : > { %3206 = vmatprep.subr.bf16.mxu0 %v3734_v2 }
 0x790   : > { %3207 = vmatpush3.bf16.msra.mxu0 %v4039_v8 }
 0x791   : > { %3208 = vmatprep.subr.bf16.mxu0 %v3734_v2 }
 0x794   : > { %3209 = vmatpush3.bf16.msra.mxu0 %v4043_v9 }
 0x795   : > { %3242 = vmatprep.subr.bf16.mxu0 %v3734_v2 }
 0x84a   : > { %v1087_v1 = vpop.f32.mrb[4].mxu0 }
 0x84b   : > { %v1088_v3 = vadd.f32 %v4309_v28, %v1087_v1  ;;  %v3192_v4 = vpop.f32.mrb[5].mxu0 }
 0x84c   : > { %v1090_v5 = vpop.f32.mrb[6].mxu0 }
 0x84d   : > { %2827 = vst [vmem:[%s4006_s13 + $0x8] sm:$0xff] %v1088_v3  ;;  %v3193_v6 = vpop.f32.mrb[7].mxu0  ;;  %v1102_v20 = vpack.c.bf16 %v1088_v3, %v1088_v3 }
 0x84f   : > { %3211 = vmatmul.mubr.bf16.vlgmr.msra.gmra.mrb[8].mxu0 %v1102_v20 }
 0x850   : > { %3243 = vmatpush3.bf16.msra.mxu0 %v4270_v16  ;;  %3246 = vmatprep.mubr.msk.bf16.mxu0 %vm3735_vm1, %v3734_v2 }
 0x851   : > { %3244 = vmatprep.subr.bf16.mxu0 %v3734_v2 }
 0x854   : > { %3245 = vmatpush3.bf16.msra.mxu0 %v4274_v41 }
 0x855   : > { %3250 = vmatprep.subr.bf16.mxu0 %v3734_v2 }
 0x922   : > { %v1139_v8 = vpop.f32.mrb[8].mxu0 }
 0x923   : > { %v4452_v9 = vadd.f32 %v2828_v7, %v1139_v8  ;;  %v3212_v49 = vpop.f32.mrb[9].mxu0 }
 0x924   : > { %v1142_v52 = vpop.f32.mrb[10].mxu0 }
 0x925   : > { %v3213_v54 = vpop.f32.mrb[11].mxu0  ;;  %vm1146_vm7 = vcmp.ge.f32.partialorder %v4452_v9, %v4062_v21  ;;  %vm1150_vm8 = vcmp.ge.f32.partialorder %v4452_v9, %v4065_v22  ;;  %vm1154_vm9 = vcmp.ge.f32.partialorder %v4452_v9, %v4068_v23  ;;  %vm1158_vm10 = vcmp.ge.f32.partialorder %v4452_v9, %v4073_v27 }
 0x926   : > { %v2829_v58 = vsel %vm1146_vm7, 1.0, %v3734_v2  ;;  %v2830_v57 = vsel %vm1150_vm8, 1.0, %v3734_v2  ;;  %v2831_v0 = vsel %vm1154_vm9, 1.0, %v3734_v2  ;;  %vm1162_vm11 = vcmp.ge.f32.partialorder %v4452_v9, %v4078_v30 }
 0x927   : > { %v1153_v60 = vadd.f32 %v2830_v57, %v2829_v58  ;;  %v2832_v13 = vsel %vm1158_vm10, 1.0, %v3734_v2  ;;  %vm1166_vm12 = vcmp.ge.f32.partialorder %v4452_v9, %v4093_v36  ;;  %v2833_v11 = vsel %vm1162_vm11, 1.0, %v3734_v2 }
 0x928   : > { %vm1170_vm13 = vcmp.ge.f32.partialorder %v4452_v9, %v4101_v40  ;;  %v2834_v14 = vsel %vm1166_vm12, 1.0, %v3734_v2  ;;  %vm1174_vm14 = vcmp.ge.f32.partialorder %v4452_v9, %v4107_v44  ;;  %vm1178_vm15 = vcmp.ge.f32.partialorder %v4452_v9, %v4113_v47 }
 0x929   : > { %v1157_v25 = vadd.f32 %v2831_v0, %v1153_v60  ;;  %v2835_v15 = vsel %vm1170_vm13, 1.0, %v3734_v2  ;;  %v2836_v18 = vsel %vm1174_vm14, 1.0, %v3734_v2  ;;  %vm1182_vm0 = vcmp.ge.f32.partialorder %v4452_v9, %v4119_v50 }
 0x92a   : > { %v2837_v1 = vsel %vm1178_vm15, 1.0, %v3734_v2  ;;  %vm1186_vm2 = vcmp.ge.f32.partialorder %v4452_v9, %v4125_v53  ;;  %v2838_v4 = vsel %vm1182_vm0, 1.0, %v3734_v2  ;;  %vm1190_vm4 = vcmp.ge.f32.partialorder %v4452_v9, %v4131_v56 }
 0x92b   : > { %v1161_v19 = vadd.f32 %v2832_v13, %v1157_v25  ;;  %v2839_v6 = vsel %vm1186_vm2, 1.0, %v3734_v2  ;;  %vm1194_vm5 = vcmp.ge.f32.partialorder %v4452_v9, %v4137_v59  ;;  %v2840_v7 = vsel %vm1190_vm4, 1.0, %v3734_v2 }
 0x92c   : > { %vm1198_vm6 = vcmp.ge.f32.partialorder %v4452_v9, %v4143_v62  ;;  %v2841_v49 = vsel %vm1194_vm5, 1.0, %v3734_v2  ;;  %vm1202_vm7 = vcmp.ge.f32.partialorder %v4452_v9, %v4149_v10  ;;  %vm1206_vm8 = vcmp.ge.f32.partialorder %v4452_v9, %v4155_v17 }
 0x92d   : > { %v1165_v37 = vadd.f32 %v2833_v11, %v1161_v19  ;;  %v2842_v54 = vsel %vm1198_vm6, 1.0, %v3734_v2  ;;  %v2843_v57 = vsel %vm1202_vm7, 1.0, %v3734_v2  ;;  %vm1210_vm9 = vcmp.ge.f32.partialorder %v4452_v9, %v4161_v26 }
 0x92e   : > { %v2844_v0 = vsel %vm1206_vm8, 1.0, %v3734_v2  ;;  %vm1214_vm10 = vcmp.ge.f32.partialorder %v4452_v9, %v4167_v33  ;;  %v2845_v13 = vsel %vm1210_vm9, 1.0, %v3734_v2  ;;  %vm1218_vm11 = vcmp.ge.f32.partialorder %v4452_v9, %v4173_v38 }
 0x92f   : > { %v1169_v31 = vadd.f32 %v2834_v14, %v1165_v37  ;;  %v2846_v11 = vsel %vm1214_vm10, 1.0, %v3734_v2  ;;  %vm1222_vm12 = vcmp.ge.f32.partialorder %v4452_v9, %v4179_v42  ;;  %v2847_v14 = vsel %vm1218_vm11, 1.0, %v3734_v2 }
 0x930   : > { %vm1226_vm13 = vcmp.ge.f32.partialorder %v4452_v9, %v4185_v46  ;;  %vm1230_vm14 = vcmp.ge.f32.partialorder %v4452_v9, %v4191_v51  ;;  %vm1234_vm15 = vcmp.ge.f32.partialorder %v4452_v9, %v4197_v55  ;;  %vm1238_vm0 = vcmp.ge.f32.partialorder %v4452_v9, %v4203_v61 }
 0x931   : > { %v1173_v35 = vadd.f32 %v2835_v15, %v1169_v31  ;;  %v2848_v15 = vsel %vm1222_vm12, 1.0, %v3734_v2  ;;  %vm1242_vm2 = vcmp.ge.f32.partialorder %v4452_v9, %v4209_v12  ;;  %vm1246_vm4 = vcmp.ge.f32.partialorder %v4452_v9, %v4215_v24 }
 0x932   : > { %vm1250_vm5 = vcmp.ge.f32.partialorder %v4452_v9, %v4221_v29  ;;  %vm1254_vm6 = vcmp.ge.f32.partialorder %v4452_v9, %v4227_v34  ;;  %vm1258_vm7 = vcmp.ge.f32.partialorder %v4452_v9, %v4233_v39  ;;  %vm1262_vm8 = vcmp.ge.f32.partialorder %v4452_v9, %v4239_v43 }
 0x933   : > { %v1177_v45 = vadd.f32 %v2836_v18, %v1173_v35  ;;  %v2849_v18 = vsel %vm1226_vm13, 1.0, %v3734_v2  ;;  %vm1266_vm9 = vcmp.ge.f32.partialorder %v4452_v9, %v4245_v48 }
 0x935   : > { %v1181_v3 = vadd.f32 %v2837_v1, %v1177_v45  ;;  %v2850_v1 = vsel %vm1230_vm14, 1.0, %v3734_v2 }
 0x937   : > { %v1185_v5 = vadd.f32 %v2838_v4, %v1181_v3  ;;  %v2851_v4 = vsel %vm1234_vm15, 1.0, %v3734_v2 }
 0x939   : > { %v1189_v20 = vadd.f32 %v2839_v6, %v1185_v5  ;;  %v2852_v6 = vsel %vm1238_vm0, 1.0, %v3734_v2 }
 0x93b   : > { %v1193_v8 = vadd.f32 %v2840_v7, %v1189_v20  ;;  %v2853_v7 = vsel %vm1242_vm2, 1.0, %v3734_v2 }
 0x93d   : > { %v1197_v52 = vadd.f32 %v2841_v49, %v1193_v8  ;;  %v2854_v49 = vsel %vm1246_vm4, 1.0, %v3734_v2 }
 0x93f   : > { %v1201_v58 = vadd.f32 %v2842_v54, %v1197_v52  ;;  %v2855_v54 = vsel %vm1250_vm5, 1.0, %v3734_v2 }
 0x941   : > { %v1205_v60 = vadd.f32 %v2843_v57, %v1201_v58  ;;  %v2856_v57 = vsel %vm1254_vm6, 1.0, %v3734_v2 }
 0x943   : > { %v1209_v25 = vadd.f32 %v2844_v0, %v1205_v60  ;;  %v2857_v0 = vsel %vm1258_vm7, 1.0, %v3734_v2 }
 0x945   : > { %v1213_v19 = vadd.f32 %v2845_v13, %v1209_v25  ;;  %v2858_v13 = vsel %vm1262_vm8, 1.0, %v3734_v2 }
 0x947   : > { %v1217_v37 = vadd.f32 %v2846_v11, %v1213_v19  ;;  %v2859_v11 = vsel %vm1266_vm9, 1.0, %v3734_v2 }
 0x949   : > { %v1221_v31 = vadd.f32 %v2847_v14, %v1217_v37 }
 0x94b   : > { %v1225_v35 = vadd.f32 %v2848_v15, %v1221_v31 }
 0x94d   : > { %v1229_v45 = vadd.f32 %v2849_v18, %v1225_v35  ;;  %v1275_v18 = vpop.permute.xlu1 %1274 }
 0x94f   : > { %v1233_v3 = vadd.f32 %v2850_v1, %v1229_v45 }
 0x951   : > { %v1237_v5 = vadd.f32 %v2851_v4, %v1233_v3 }
 0x953   : > { %v1241_v20 = vadd.f32 %v2852_v6, %v1237_v5 }
 0x955   : > { %v1245_v8 = vadd.f32 %v2853_v7, %v1241_v20 }
 0x957   : > { %v1249_v52 = vadd.f32 %v2854_v49, %v1245_v8  ;;  %v4557_v49 = vld [vmem:[#allocation7] sm:$0xff]  }
 0x959   : > { %v1253_v58 = vadd.f32 %v2855_v54, %v1249_v52  ;;  %v4563_v52 = vld [vmem:[#allocation7 + $0x8] sm:$0xff]   ;;  %v4567_v54 = vld [vmem:[#allocation7 + $0x10] sm:$0xff]  }
 0x95b   : > { %v1257_v60 = vadd.f32 %v2856_v57, %v1253_v58  ;;  %v4571_v58 = vld [vmem:[#allocation7 + $0x18] sm:$0xff]   ;;  %v4575_v57 = vld [vmem:[#allocation7 + $0x20] sm:$0xff]  }
 0x95d   : > { %v1261_v25 = vadd.f32 %v2857_v0, %v1257_v60  ;;  %v4579_v60 = vld [vmem:[#allocation7 + $0x28] sm:$0xff]   ;;  %v4583_v0 = vld [vmem:[#allocation7 + $0x30] sm:$0xff]  }
 0x95f   : > { %v1265_v19 = vadd.f32 %v2858_v13, %v1261_v25  ;;  %v4587_v25 = vld [vmem:[#allocation7 + $0x38] sm:$0xff]  }
 0x961   : > { %v1269_v37 = vadd.f32 %v2859_v11, %v1265_v19 }
 0x963   : > { %v1270_v14 = vmul.f32 %v4257_v32, %v1269_v37 }
 0x965   : > { %v1271_v31 = vadd.f32 %v4263_v63, %v1270_v14 }
 0x967   : > { %1279 = vrot.lane.b32.xlu0 %v1271_v31, %s3736_s19  ;;  %v1277_v45 = vmul.f32 %v1275_v18, %v1271_v31 }
 0x9d9   : > { %v1280_v15 = vpop.permute.xlu0 %1279 }
 0x9da   : > { %v1282_v35 = vmul.f32 %v1280_v15, %v1271_v31  ;;  %v2862_v15 = vld [vmem:[%s3992_s24 + $0x18] sm:$0xff] }
 0x9dc   : > { %1284 = vrot.lane.b32.xlu0 %v1282_v35, %s3737_s21 }
 0xa4e   : > { %v1285_v1 = vpop.permute.xlu0 %1284 }
 0xa4f   : > { %v1287_v9 = vadd.f32 %v1285_v1, %v1277_v45 }
 0xa51   : > { %3472 = vtanh.f32 %v1287_v9 }
 0xa5b   : > { %v3473_v3 = vpop.eup %3472 }
 0xa5c   : > { %1290 = vrot.lane.b32.xlu1 %v3473_v3, %s3736_s19 }
 0xa60   : > { %1342 = vrot.lane.b32.xlu1 %v1287_v9, %s3738_s12 }
 0xace   : > { %v1291_v4 = vpop.permute.xlu1 %1290 }
 0xacf   : > { %v1293_v5 = vmul.f32 %v1291_v4, %v1271_v31 }
 0xad1   : > { %v1294_v6 = vpack.c.bf16 %v1293_v5, %v1293_v5 }
 0xad2   : > { %v1343_v20 = vpop.permute.xlu1 %1342 }
 0xad3   : > { %1345 = vst.msk [vmem:[#allocation3] sm:$0xff] %vm802_vm3, %v1343_v20  ;;  %1296 = vrot.lane.b32.xlu0 %v1294_v6, %s3737_s21 }
 0xada   : > { %v1520_v7 = vld [vmem:[#allocation3] sm:$0xff] }
 0xadb   : > { %1522 = vrot.lane.b32.xlu1 %v1520_v7, %s3737_s21 }
 0xb45   : > { %v1297_v8 = vpop.permute.xlu0 %1296 }
 0xb46   : > { %3219 = vmatmul.mubr.msk.bf16.vlgmr.msra.gmra.mrb[8].mxu1 %vm802_vm3, %v1297_v8 }
 0xb47   : > { %3223 = vmatpush3.bf16.msra.mxu1 %v4557_v49  ;;  %3238 = vmatprep.mubr.msk.bf16.mxu1 %vm3735_vm1, %v3734_v2 }
 0xb48   : > { %3224 = vmatprep.subr.bf16.mxu1 %v3734_v2 }
 0xb4b   : > { %3225 = vmatpush3.bf16.msra.mxu1 %v4563_v52 }
 0xb4c   : > { %3226 = vmatprep.subr.bf16.mxu1 %v3734_v2 }
 0xb4f   : > { %3227 = vmatpush3.bf16.msra.mxu1 %v4567_v54 }
 0xb50   : > { %3228 = vmatprep.subr.bf16.mxu1 %v3734_v2 }
 0xb53   : > { %3229 = vmatpush3.bf16.msra.mxu1 %v4571_v58 }
 0xb54   : > { %3230 = vmatprep.subr.bf16.mxu1 %v3734_v2 }
 0xb57   : > { %3231 = vmatpush3.bf16.msra.mxu1 %v4575_v57 }
 0xb58   : > { %3232 = vmatprep.subr.bf16.mxu1 %v3734_v2 }
 0xb5b   : > { %3233 = vmatpush3.bf16.msra.mxu1 %v4579_v60 }
 0xb5c   : > { %3234 = vmatprep.subr.bf16.mxu1 %v3734_v2 }
 0xb5f   : > { %3235 = vmatpush3.bf16.msra.mxu1 %v4583_v0 }
 0xb60   : > { %3236 = vmatprep.subr.bf16.mxu1 %v3734_v2 }
 0xb63   : > { %3237 = vmatpush3.bf16.msra.mxu1 %v4587_v25 }
 0xb64   : > { %3270 = vmatprep.subr.bf16.mxu1 %v3734_v2 }
 0xc19   : > { %v1335_v13 = vpop.f32.mrb[8].mxu1 }
 0xc1a   : > { %v1336_v19 = vadd.f32 %v4309_v28, %v1335_v13  ;;  %v3220_v11 = vpop.f32.mrb[9].mxu1 }
 0xc1b   : > { %v1338_v37 = vpop.f32.mrb[10].mxu1 }
 0xc1c   : > { %2861 = vst [vmem:[%s4006_s13 + $0x10] sm:$0xff] %v1336_v19  ;;  %v3221_v14 = vpop.f32.mrb[11].mxu1  ;;  %v1350_v31 = vpack.c.bf16 %v1336_v19, %v1336_v19 }
 0xc1e   : > { %3239 = vmatmul.mubr.bf16.vlgmr.msra.gmra.mrb[12].mxu1 %v1350_v31 }
 0xc1f   : > { %3271 = vmatpush3.bf16.msra.mxu1 %v4270_v16  ;;  %3274 = vmatprep.mubr.msk.bf16.mxu1 %vm3735_vm1, %v3734_v2 }
 0xc20   : > { %3272 = vmatprep.subr.bf16.mxu1 %v3734_v2 }
 0xc23   : > { %3273 = vmatpush3.bf16.msra.mxu1 %v4274_v41 }
 0xc24   : > { %3278 = vmatprep.subr.bf16.mxu1 %v3734_v2 }
 0xcf1   : > { %v1387_v35 = vpop.f32.mrb[12].mxu1 }
 0xcf2   : > { %v4600_v18 = vadd.f32 %v2862_v15, %v1387_v35  ;;  %v3240_v45 = vpop.f32.mrb[13].mxu1 }
 0xcf3   : > { %v1390_v1 = vpop.f32.mrb[14].mxu1 }
 0xcf4   : > { %v3241_v9 = vpop.f32.mrb[15].mxu1  ;;  %vm1394_vm10 = vcmp.ge.f32.partialorder %v4600_v18, %v4062_v21  ;;  %vm1398_vm11 = vcmp.ge.f32.partialorder %v4600_v18, %v4065_v22  ;;  %vm1402_vm12 = vcmp.ge.f32.partialorder %v4600_v18, %v4068_v23  ;;  %vm1406_vm13 = vcmp.ge.f32.partialorder %v4600_v18, %v4073_v27 }
 0xcf5   : > { %v2863_v3 = vsel %vm1394_vm10, 1.0, %v3734_v2  ;;  %v2864_v4 = vsel %vm1398_vm11, 1.0, %v3734_v2  ;;  %v2865_v6 = vsel %vm1402_vm12, 1.0, %v3734_v2  ;;  %vm1410_vm14 = vcmp.ge.f32.partialorder %v4600_v18, %v4078_v30 }
 0xcf6   : > { %v1401_v5 = vadd.f32 %v2864_v4, %v2863_v3  ;;  %v2866_v7 = vsel %vm1406_vm13, 1.0, %v3734_v2  ;;  %vm1414_vm15 = vcmp.ge.f32.partialorder %v4600_v18, %v4093_v36  ;;  %v2867_v13 = vsel %vm1410_vm14, 1.0, %v3734_v2 }
 0xcf7   : > { %vm1418_vm0 = vcmp.ge.f32.partialorder %v4600_v18, %v4101_v40  ;;  %v2868_v11 = vsel %vm1414_vm15, 1.0, %v3734_v2  ;;  %vm1422_vm2 = vcmp.ge.f32.partialorder %v4600_v18, %v4107_v44  ;;  %vm1426_vm4 = vcmp.ge.f32.partialorder %v4600_v18, %v4113_v47 }
 0xcf8   : > { %v1405_v20 = vadd.f32 %v2865_v6, %v1401_v5  ;;  %v2869_v14 = vsel %vm1418_vm0, 1.0, %v3734_v2  ;;  %v2870_v15 = vsel %vm1422_vm2, 1.0, %v3734_v2  ;;  %vm1430_vm5 = vcmp.ge.f32.partialorder %v4600_v18, %v4119_v50 }
 0xcf9   : > { %v2871_v45 = vsel %vm1426_vm4, 1.0, %v3734_v2  ;;  %vm1434_vm6 = vcmp.ge.f32.partialorder %v4600_v18, %v4125_v53  ;;  %v2872_v9 = vsel %vm1430_vm5, 1.0, %v3734_v2  ;;  %vm1438_vm7 = vcmp.ge.f32.partialorder %v4600_v18, %v4131_v56 }
 0xcfa   : > { %v1409_v8 = vadd.f32 %v2866_v7, %v1405_v20  ;;  %v2873_v4 = vsel %vm1434_vm6, 1.0, %v3734_v2  ;;  %vm1442_vm8 = vcmp.ge.f32.partialorder %v4600_v18, %v4137_v59  ;;  %v2874_v6 = vsel %vm1438_vm7, 1.0, %v3734_v2 }
 0xcfb   : > { %vm1446_vm9 = vcmp.ge.f32.partialorder %v4600_v18, %v4143_v62  ;;  %v2875_v7 = vsel %vm1442_vm8, 1.0, %v3734_v2  ;;  %vm1450_vm10 = vcmp.ge.f32.partialorder %v4600_v18, %v4149_v10  ;;  %vm1454_vm11 = vcmp.ge.f32.partialorder %v4600_v18, %v4155_v17 }
 0xcfc   : > { %v1413_v19 = vadd.f32 %v2867_v13, %v1409_v8  ;;  %v2876_v13 = vsel %vm1446_vm9, 1.0, %v3734_v2  ;;  %vm1458_vm12 = vcmp.ge.f32.partialorder %v4600_v18, %v4161_v26  ;;  %vm1462_vm13 = vcmp.ge.f32.partialorder %v4600_v18, %v4167_v33 }
 0xcfd   : > { %vm1466_vm14 = vcmp.ge.f32.partialorder %v4600_v18, %v4173_v38  ;;  %vm1470_vm15 = vcmp.ge.f32.partialorder %v4600_v18, %v4179_v42  ;;  %vm1474_vm0 = vcmp.ge.f32.partialorder %v4600_v18, %v4185_v46  ;;  %vm1478_vm2 = vcmp.ge.f32.partialorder %v4600_v18, %v4191_v51 }
 0xcfe   : > { %v1417_v37 = vadd.f32 %v2868_v11, %v1413_v19  ;;  %v2877_v11 = vsel %vm1450_vm10, 1.0, %v3734_v2  ;;  %vm1482_vm4 = vcmp.ge.f32.partialorder %v4600_v18, %v4197_v55  ;;  %vm1486_vm5 = vcmp.ge.f32.partialorder %v4600_v18, %v4203_v61 }
 0xcff   : > { %vm1490_vm6 = vcmp.ge.f32.partialorder %v4600_v18, %v4209_v12  ;;  %vm1494_vm7 = vcmp.ge.f32.partialorder %v4600_v18, %v4215_v24  ;;  %vm1498_vm8 = vcmp.ge.f32.partialorder %v4600_v18, %v4221_v29  ;;  %vm1502_vm9 = vcmp.ge.f32.partialorder %v4600_v18, %v4227_v34 }
 0xd00   : > { %v1421_v31 = vadd.f32 %v2869_v14, %v1417_v37  ;;  %v2878_v14 = vsel %vm1454_vm11, 1.0, %v3734_v2  ;;  %vm1506_vm10 = vcmp.ge.f32.partialorder %v4600_v18, %v4233_v39  ;;  %vm1510_vm11 = vcmp.ge.f32.partialorder %v4600_v18, %v4239_v43 }
 0xd02   : > { %v1425_v35 = vadd.f32 %v2870_v15, %v1421_v31  ;;  %v2879_v15 = vsel %vm1458_vm12, 1.0, %v3734_v2  ;;  %vm1514_vm12 = vcmp.ge.f32.partialorder %v4600_v18, %v4245_v48 }
 0xd04   : > { %v1429_v1 = vadd.f32 %v2871_v45, %v1425_v35  ;;  %v2880_v45 = vsel %vm1462_vm13, 1.0, %v3734_v2 }
 0xd06   : > { %v1433_v3 = vadd.f32 %v2872_v9, %v1429_v1  ;;  %v2881_v9 = vsel %vm1466_vm14, 1.0, %v3734_v2 }
 0xd08   : > { %v1437_v5 = vadd.f32 %v2873_v4, %v1433_v3  ;;  %v2882_v4 = vsel %vm1470_vm15, 1.0, %v3734_v2 }
 0xd0a   : > { %v1441_v20 = vadd.f32 %v2874_v6, %v1437_v5  ;;  %v2883_v6 = vsel %vm1474_vm0, 1.0, %v3734_v2 }
 0xd0c   : > { %v1445_v8 = vadd.f32 %v2875_v7, %v1441_v20  ;;  %v2884_v7 = vsel %vm1478_vm2, 1.0, %v3734_v2 }
 0xd0e   : > { %v1449_v19 = vadd.f32 %v2876_v13, %v1445_v8  ;;  %v2885_v13 = vsel %vm1482_vm4, 1.0, %v3734_v2 }
 0xd10   : > { %v1453_v37 = vadd.f32 %v2877_v11, %v1449_v19  ;;  %v2886_v11 = vsel %vm1486_vm5, 1.0, %v3734_v2 }
 0xd12   : > { %v1457_v31 = vadd.f32 %v2878_v14, %v1453_v37  ;;  %v2887_v14 = vsel %vm1490_vm6, 1.0, %v3734_v2 }
 0xd14   : > { %v1461_v35 = vadd.f32 %v2879_v15, %v1457_v31  ;;  %v2888_v15 = vsel %vm1494_vm7, 1.0, %v3734_v2 }
 0xd16   : > { %v1465_v1 = vadd.f32 %v2880_v45, %v1461_v35  ;;  %v2889_v45 = vsel %vm1498_vm8, 1.0, %v3734_v2 }
 0xd18   : > { %v1469_v3 = vadd.f32 %v2881_v9, %v1465_v1  ;;  %v2890_v9 = vsel %vm1502_vm9, 1.0, %v3734_v2 }
 0xd1a   : > { %v1473_v5 = vadd.f32 %v2882_v4, %v1469_v3  ;;  %v2891_v4 = vsel %vm1506_vm10, 1.0, %v3734_v2 }
 0xd1c   : > { %v1477_v20 = vadd.f32 %v2883_v6, %v1473_v5  ;;  %v2892_v6 = vsel %vm1510_vm11, 1.0, %v3734_v2 }
 0xd1e   : > { %v1481_v8 = vadd.f32 %v2884_v7, %v1477_v20  ;;  %v2893_v7 = vsel %vm1514_vm12, 1.0, %v3734_v2 }
 0xd20   : > { %v1485_v19 = vadd.f32 %v2885_v13, %v1481_v8 }
 0xd22   : > { %v1489_v37 = vadd.f32 %v2886_v11, %v1485_v19 }
 0xd24   : > { %v1493_v31 = vadd.f32 %v2887_v14, %v1489_v37  ;;  %v1523_v14 = vpop.permute.xlu1 %1522 }
 0xd26   : > { %v1497_v35 = vadd.f32 %v2888_v15, %v1493_v31 }
 0xd28   : > { %v1501_v1 = vadd.f32 %v2889_v45, %v1497_v35 }
 0xd2a   : > { %v1505_v3 = vadd.f32 %v2890_v9, %v1501_v1 }
 0xd2c   : > { %v1509_v5 = vadd.f32 %v2891_v4, %v1505_v3 }
 0xd2e   : > { %v1513_v20 = vadd.f32 %v2892_v6, %v1509_v5 }
 0xd30   : > { %v1517_v8 = vadd.f32 %v2893_v7, %v1513_v20 }
 0xd32   : > { %v1518_v13 = vmul.f32 %v4257_v32, %v1517_v8 }
 0xd34   : > { %v1519_v19 = vadd.f32 %v4263_v63, %v1518_v13  ;;  %v2896_v13 = vld [vmem:[%s3992_s24 + $0x20] sm:$0xff] }
 0xd36   : > { %1527 = vrot.lane.b32.xlu0 %v1519_v19, %s3736_s19  ;;  %v1525_v31 = vmul.f32 %v1523_v14, %v1519_v19 }
 0xda8   : > { %v1528_v11 = vpop.permute.xlu0 %1527 }
 0xda9   : > { %v1530_v37 = vmul.f32 %v1528_v11, %v1519_v19 }
 0xdab   : > { %1532 = vrot.lane.b32.xlu0 %v1530_v37, %s3737_s21 }
 0xe1d   : > { %v1533_v15 = vpop.permute.xlu0 %1532 }
 0xe1e   : > { %v1535_v18 = vadd.f32 %v1533_v15, %v1525_v31 }
 0xe20   : > { %3474 = vtanh.f32 %v1535_v18 }
 0xe2a   : > { %v3475_v35 = vpop.eup %3474 }
 0xe2b   : > { %1538 = vrot.lane.b32.xlu1 %v3475_v35, %s3736_s19 }
 0xe2f   : > { %1590 = vrot.lane.b32.xlu1 %v1535_v18, %s3738_s12 }
 0xe9d   : > { %v1539_v45 = vpop.permute.xlu1 %1538 }
 0xe9e   : > { %v1541_v32 = vmul.f32 %v1539_v45, %v1519_v19 }
 0xea0   : > { %v1542_v1 = vpack.c.bf16 %v1541_v32, %v1541_v32 }
 0xea1   : > { %v1591_v63 = vpop.permute.xlu1 %1590 }
 0xea2   : > { %1593 = vst.msk [vmem:[#allocation3] sm:$0xff] %vm802_vm3, %v1591_v63  ;;  %1544 = vrot.lane.b32.xlu0 %v1542_v1, %s3737_s21 }
 0xea9   : > { %v1768_v9 = vld [vmem:[#allocation3] sm:$0xff] }
 0xeaa   : > { %1770 = vrot.lane.b32.xlu1 %v1768_v9, %s3737_s21 }
 0xf14   : > { %v1545_v3 = vpop.permute.xlu0 %1544 }
 0xf15   : > { %3247 = vmatmul.mubr.msk.bf16.vlgmr.msra.gmra.mrb[12].mxu0 %vm802_vm3, %v1545_v3 }
 0xf16   : > { %3251 = vmatpush3.bf16.msra.mxu0 %v4557_v49  ;;  %3266 = vmatprep.mubr.msk.bf16.mxu0 %vm3735_vm1, %v3734_v2 }
 0xf17   : > { %3252 = vmatprep.subr.bf16.mxu0 %v3734_v2 }
 0xf1a   : > { %3253 = vmatpush3.bf16.msra.mxu0 %v4563_v52 }
 0xf1b   : > { %3254 = vmatprep.subr.bf16.mxu0 %v3734_v2 }
 0xf1e   : > { %3255 = vmatpush3.bf16.msra.mxu0 %v4567_v54 }
 0xf1f   : > { %3256 = vmatprep.subr.bf16.mxu0 %v3734_v2 }
 0xf22   : > { %3257 = vmatpush3.bf16.msra.mxu0 %v4571_v58 }
 0xf23   : > { %3258 = vmatprep.subr.bf16.mxu0 %v3734_v2 }
 0xf26   : > { %3259 = vmatpush3.bf16.msra.mxu0 %v4575_v57 }
 0xf27   : > { %3260 = vmatprep.subr.bf16.mxu0 %v3734_v2 }
 0xf2a   : > { %3261 = vmatpush3.bf16.msra.mxu0 %v4579_v60 }
 0xf2b   : > { %3262 = vmatprep.subr.bf16.mxu0 %v3734_v2 }
 0xf2e   : > { %3263 = vmatpush3.bf16.msra.mxu0 %v4583_v0 }
 0xf2f   : > { %3264 = vmatprep.subr.bf16.mxu0 %v3734_v2 }
 0xf32   : > { %3265 = vmatpush3.bf16.msra.mxu0 %v4587_v25 }
 0xf33   : > { %3298 = vmatprep.subr.bf16.mxu0 %v3734_v2 }
 0xfe8   : > { %v1583_v4 = vpop.f32.mrb[12].mxu0 }
 0xfe9   : > { %v1584_v5 = vadd.f32 %v4309_v28, %v1583_v4  ;;  %v3248_v6 = vpop.f32.mrb[13].mxu0 }
 0xfea   : > { %v1586_v20 = vpop.f32.mrb[14].mxu0 }
 0xfeb   : > { %2895 = vst [vmem:[%s4006_s13 + $0x18] sm:$0xff] %v1584_v5  ;;  %v3249_v7 = vpop.f32.mrb[15].mxu0  ;;  %v1598_v8 = vpack.c.bf16 %v1584_v5, %v1584_v5 }
 0xfed   : > { %3267 = vmatmul.mubr.bf16.vlgmr.msra.gmra.mrb[16].mxu0 %v1598_v8 }
 0xfee   : > { %3299 = vmatpush3.bf16.msra.mxu0 %v4270_v16  ;;  %3302 = vmatprep.mubr.msk.bf16.mxu0 %vm3735_vm1, %v3734_v2 }
 0xfef   : > { %3300 = vmatprep.subr.bf16.mxu0 %v3734_v2 }
 0xff2   : > { %3301 = vmatpush3.bf16.msra.mxu0 %v4274_v41 }
 0xff3   : > { %3306 = vmatprep.subr.bf16.mxu0 %v3734_v2 }
0x10c0   : > { %v1635_v19 = vpop.f32.mrb[16].mxu0 }
0x10c1   : > { %v4732_v28 = vadd.f32 %v2896_v13, %v1635_v19  ;;  %v3268_v11 = vpop.f32.mrb[17].mxu0 }
0x10c2   : > { %v1638_v37 = vpop.f32.mrb[18].mxu0 }
0x10c3   : > { %v3269_v14 = vpop.f32.mrb[19].mxu0  ;;  %vm1642_vm13 = vcmp.ge.f32.partialorder %v4732_v28, %v4062_v21  ;;  %vm1646_vm14 = vcmp.ge.f32.partialorder %v4732_v28, %v4065_v22  ;;  %vm1650_vm15 = vcmp.ge.f32.partialorder %v4732_v28, %v4068_v23  ;;  %vm1654_vm0 = vcmp.ge.f32.partialorder %v4732_v28, %v4073_v27 }
0x10c4   : > { %v2897_v16 = vsel %vm1642_vm13, 1.0, %v3734_v2  ;;  %v2898_v41 = vsel %vm1646_vm14, 1.0, %v3734_v2  ;;  %v2899_v15 = vsel %vm1650_vm15, 1.0, %v3734_v2  ;;  %vm1658_vm2 = vcmp.ge.f32.partialorder %v4732_v28, %v4078_v30 }
0x10c5   : > { %v1649_v31 = vadd.f32 %v2898_v41, %v2897_v16  ;;  %v2900_v35 = vsel %vm1654_vm0, 1.0, %v3734_v2  ;;  %vm1662_vm4 = vcmp.ge.f32.partialorder %v4732_v28, %v4093_v36  ;;  %v2901_v32 = vsel %vm1658_vm2, 1.0, %v3734_v2 }
0x10c6   : > { %vm1666_vm5 = vcmp.ge.f32.partialorder %v4732_v28, %v4101_v40  ;;  %v2902_v63 = vsel %vm1662_vm4, 1.0, %v3734_v2  ;;  %vm1670_vm6 = vcmp.ge.f32.partialorder %v4732_v28, %v4107_v44  ;;  %vm1674_vm7 = vcmp.ge.f32.partialorder %v4732_v28, %v4113_v47 }
0x10c7   : > { %v1653_v18 = vadd.f32 %v2899_v15, %v1649_v31  ;;  %v2903_v3 = vsel %vm1666_vm5, 1.0, %v3734_v2  ;;  %v2904_v5 = vsel %vm1670_vm6, 1.0, %v3734_v2  ;;  %vm1678_vm8 = vcmp.ge.f32.partialorder %v4732_v28, %v4119_v50 }
0x10c8   : > { %v2905_v20 = vsel %vm1674_vm7, 1.0, %v3734_v2  ;;  %vm1682_vm9 = vcmp.ge.f32.partialorder %v4732_v28, %v4125_v53  ;;  %v2906_v8 = vsel %vm1678_vm8, 1.0, %v3734_v2  ;;  %vm1686_vm10 = vcmp.ge.f32.partialorder %v4732_v28, %v4131_v56 }
0x10c9   : > { %v1657_v45 = vadd.f32 %v2900_v35, %v1653_v18  ;;  %v2907_v19 = vsel %vm1682_vm9, 1.0, %v3734_v2  ;;  %vm1690_vm11 = vcmp.ge.f32.partialorder %v4732_v28, %v4137_v59  ;;  %v2908_v37 = vsel %vm1686_vm10, 1.0, %v3734_v2 }
0x10ca   : > { %vm1694_vm12 = vcmp.ge.f32.partialorder %v4732_v28, %v4143_v62  ;;  %v2909_v16 = vsel %vm1690_vm11, 1.0, %v3734_v2  ;;  %vm1698_vm13 = vcmp.ge.f32.partialorder %v4732_v28, %v4149_v10  ;;  %vm1702_vm14 = vcmp.ge.f32.partialorder %v4732_v28, %v4155_v17 }
0x10cb   : > { %v1661_v1 = vadd.f32 %v2901_v32, %v1657_v45  ;;  %v2910_v31 = vsel %vm1694_vm12, 1.0, %v3734_v2  ;;  %v2911_v18 = vsel %vm1698_vm13, 1.0, %v3734_v2  ;;  %vm1706_vm15 = vcmp.ge.f32.partialorder %v4732_v28, %v4161_v26 }
0x10cc   : > { %v2912_v45 = vsel %vm1702_vm14, 1.0, %v3734_v2  ;;  %vm1710_vm0 = vcmp.ge.f32.partialorder %v4732_v28, %v4167_v33  ;;  %vm1714_vm2 = vcmp.ge.f32.partialorder %v4732_v28, %v4173_v38  ;;  %vm1718_vm4 = vcmp.ge.f32.partialorder %v4732_v28, %v4179_v42 }
0x10cd   : > { %v1665_v9 = vadd.f32 %v2902_v63, %v1661_v1  ;;  %v2913_v1 = vsel %vm1706_vm15, 1.0, %v3734_v2  ;;  %vm1722_vm5 = vcmp.ge.f32.partialorder %v4732_v28, %v4185_v46  ;;  %vm1726_vm6 = vcmp.ge.f32.partialorder %v4732_v28, %v4191_v51 }
0x10ce   : > { %vm1730_vm7 = vcmp.ge.f32.partialorder %v4732_v28, %v4197_v55  ;;  %vm1734_vm8 = vcmp.ge.f32.partialorder %v4732_v28, %v4203_v61  ;;  %vm1738_vm9 = vcmp.ge.f32.partialorder %v4732_v28, %v4209_v12  ;;  %vm1742_vm10 = vcmp.ge.f32.partialorder %v4732_v28, %v4215_v24 }
0x10cf   : > { %v1669_v4 = vadd.f32 %v2903_v3, %v1665_v9  ;;  %v2914_v9 = vsel %vm1710_vm0, 1.0, %v3734_v2  ;;  %vm1746_vm11 = vcmp.ge.f32.partialorder %v4732_v28, %v4221_v29  ;;  %vm1750_vm12 = vcmp.ge.f32.partialorder %v4732_v28, %v4227_v34 }
0x10d0   : > { %vm1754_vm13 = vcmp.ge.f32.partialorder %v4732_v28, %v4233_v39  ;;  %vm1758_vm14 = vcmp.ge.f32.partialorder %v4732_v28, %v4239_v43  ;;  %vm1762_vm15 = vcmp.ge.f32.partialorder %v4732_v28, %v4245_v48 }
0x10d1   : > { %v1673_v6 = vadd.f32 %v2904_v5, %v1669_v4  ;;  %v2915_v4 = vsel %vm1714_vm2, 1.0, %v3734_v2 }
0x10d3   : > { %v1677_v7 = vadd.f32 %v2905_v20, %v1673_v6  ;;  %v2916_v6 = vsel %vm1718_vm4, 1.0, %v3734_v2 }
0x10d5   : > { %v1681_v13 = vadd.f32 %v2906_v8, %v1677_v7  ;;  %v2917_v7 = vsel %vm1722_vm5, 1.0, %v3734_v2 }
0x10d7   : > { %v1685_v11 = vadd.f32 %v2907_v19, %v1681_v13  ;;  %v2918_v13 = vsel %vm1726_vm6, 1.0, %v3734_v2 }
0x10d9   : > { %v1689_v14 = vadd.f32 %v2908_v37, %v1685_v11  ;;  %v2919_v11 = vsel %vm1730_vm7, 1.0, %v3734_v2 }
0x10db   : > { %v1693_v41 = vadd.f32 %v2909_v16, %v1689_v14  ;;  %v2920_v14 = vsel %vm1734_vm8, 1.0, %v3734_v2 }
0x10dd   : > { %v1697_v15 = vadd.f32 %v2910_v31, %v1693_v41  ;;  %v2921_v41 = vsel %vm1738_vm9, 1.0, %v3734_v2 }
0x10df   : > { %v1701_v35 = vadd.f32 %v2911_v18, %v1697_v15  ;;  %v2922_v15 = vsel %vm1742_vm10, 1.0, %v3734_v2 }
0x10e1   : > { %v1705_v32 = vadd.f32 %v2912_v45, %v1701_v35  ;;  %v2923_v35 = vsel %vm1746_vm11, 1.0, %v3734_v2 }
0x10e3   : > { %v1709_v63 = vadd.f32 %v2913_v1, %v1705_v32  ;;  %v2924_v32 = vsel %vm1750_vm12, 1.0, %v3734_v2 }
0x10e5   : > { %v1713_v3 = vadd.f32 %v2914_v9, %v1709_v63  ;;  %v2925_v63 = vsel %vm1754_vm13, 1.0, %v3734_v2 }
0x10e7   : > { %v1717_v5 = vadd.f32 %v2915_v4, %v1713_v3  ;;  %v2926_v3 = vsel %vm1758_vm14, 1.0, %v3734_v2 }
0x10e9   : > { %v1721_v20 = vadd.f32 %v2916_v6, %v1717_v5  ;;  %v2927_v5 = vsel %vm1762_vm15, 1.0, %v3734_v2 }
0x10eb   : > { %v1725_v8 = vadd.f32 %v2917_v7, %v1721_v20  ;;  %v4830_v20 = vld [vmem:[%s5317_s5] ss:$0 sm:$0xff] }
0x10ed   : > { %v1729_v19 = vadd.f32 %v2918_v13, %v1725_v8  ;;  %v4836_v8 = vld [vmem:[%s5318_s6] ss:$0 sm:$0xff] }
0x10ef   : > { %v1733_v37 = vadd.f32 %v2919_v11, %v1729_v19  ;;  %v1771_v11 = vpop.permute.xlu1 %1770 }
0x10f1   : > { %v1737_v16 = vadd.f32 %v2920_v14, %v1733_v37 }
0x10f3   : > { %v1741_v31 = vadd.f32 %v2921_v41, %v1737_v16 }
0x10f5   : > { %v1745_v18 = vadd.f32 %v2922_v15, %v1741_v31 }
0x10f7   : > { %v1749_v45 = vadd.f32 %v2923_v35, %v1745_v18 }
0x10f9   : > { %v1753_v1 = vadd.f32 %v2924_v32, %v1749_v45 }
0x10fb   : > { %v1757_v9 = vadd.f32 %v2925_v63, %v1753_v1  ;;  %v4868_v63 = vld [vmem:[%s5315_s3] ss:$0 sm:$0xff] }
0x10fd   : > { %v1761_v4 = vadd.f32 %v2926_v3, %v1757_v9 }
0x10ff   : > { %v1765_v6 = vadd.f32 %v2927_v5, %v1761_v4 }
0x1101   : > { %v1766_v7 = vmul.f32 %v4830_v20, %v1765_v6 }
0x1103   : > { %v1767_v28 = vadd.f32 %v4836_v8, %v1766_v7  ;;  %v4872_v7 = vld [vmem:[#allocation9] sm:$0xff]  }
0x1105   : > { %1775 = vrot.lane.b32.xlu0 %v1767_v28, %s3736_s19  ;;  %v1773_v37 = vmul.f32 %v1771_v11, %v1767_v28 }
0x1177   : > { %v1776_v13 = vpop.permute.xlu0 %1775 }
0x1178   : > { %v1778_v19 = vmul.f32 %v1776_v13, %v1767_v28  ;;  %v2930_v13 = vld [vmem:[%s3992_s24 + $0x28] sm:$0xff] }
0x117a   : > { %1780 = vrot.lane.b32.xlu0 %v1778_v19, %s3737_s21 }
0x11ec   : > { %v1781_v14 = vpop.permute.xlu0 %1780 }
0x11ed   : > { %v1783_v16 = vadd.f32 %v1781_v14, %v1773_v37 }
0x11ef   : > { %3476 = vtanh.f32 %v1783_v16 }
0x11f9   : > { %v3477_v41 = vpop.eup %3476 }
0x11fa   : > { %1786 = vrot.lane.b32.xlu1 %v3477_v41, %s3736_s19 }
0x11fe   : > { %1838 = vrot.lane.b32.xlu1 %v1783_v16, %s3738_s12 }
0x126c   : > { %v1787_v31 = vpop.permute.xlu1 %1786 }
0x126d   : > { %v1789_v15 = vmul.f32 %v1787_v31, %v1767_v28  ;;  %v4878_v28 = vld [vmem:[#allocation9 + $0x8] sm:$0xff]  }
0x126f   : > { %v1790_v18 = vpack.c.bf16 %v1789_v15, %v1789_v15 }
0x1270   : > { %v1839_v35 = vpop.permute.xlu1 %1838 }
0x1271   : > { %1841 = vst.msk [vmem:[#allocation3] sm:$0xff] %vm802_vm3, %v1839_v35  ;;  %1792 = vrot.lane.b32.xlu0 %v1790_v18, %s3737_s21 }
0x1278   : > { %v2016_v45 = vld [vmem:[#allocation3] sm:$0xff] }
0x1279   : > { %2018 = vrot.lane.b32.xlu1 %v2016_v45, %s3737_s21 }
0x12e3   : > { %v1793_v32 = vpop.permute.xlu0 %1792 }
0x12e4   : > { %3275 = vmatmul.mubr.msk.bf16.vlgmr.msra.gmra.mrb[16].mxu1 %vm802_vm3, %v1793_v32 }
0x12e5   : > { %3279 = vmatpush3.bf16.msra.mxu1 %v4557_v49  ;;  %3294 = vmatprep.mubr.msk.bf16.mxu1 %vm3735_vm1, %v3734_v2 }
0x12e6   : > { %3280 = vmatprep.subr.bf16.mxu1 %v3734_v2 }
0x12e9   : > { %3281 = vmatpush3.bf16.msra.mxu1 %v4563_v52 }
0x12ea   : > { %3282 = vmatprep.subr.bf16.mxu1 %v3734_v2 }
0x12ed   : > { %3283 = vmatpush3.bf16.msra.mxu1 %v4567_v54 }
0x12ee   : > { %3284 = vmatprep.subr.bf16.mxu1 %v3734_v2 }
0x12f1   : > { %3285 = vmatpush3.bf16.msra.mxu1 %v4571_v58 }
0x12f2   : > { %3286 = vmatprep.subr.bf16.mxu1 %v3734_v2 }
0x12f5   : > { %3287 = vmatpush3.bf16.msra.mxu1 %v4575_v57 }
0x12f6   : > { %3288 = vmatprep.subr.bf16.mxu1 %v3734_v2 }
0x12f9   : > { %3289 = vmatpush3.bf16.msra.mxu1 %v4579_v60 }
0x12fa   : > { %3290 = vmatprep.subr.bf16.mxu1 %v3734_v2 }
0x12fd   : > { %3291 = vmatpush3.bf16.msra.mxu1 %v4583_v0 }
0x12fe   : > { %3292 = vmatprep.subr.bf16.mxu1 %v3734_v2 }
0x1301   : > { %3293 = vmatpush3.bf16.msra.mxu1 %v4587_v25 }
0x1302   : > { %3326 = vmatprep.subr.bf16.mxu1 %v3734_v2 }
0x13b7   : > { %v1831_v1 = vpop.f32.mrb[16].mxu1 }
0x13b8   : > { %v1832_v9 = vadd.f32 %v4868_v63, %v1831_v1  ;;  %v3276_v3 = vpop.f32.mrb[17].mxu1 }
0x13b9   : > { %v1834_v4 = vpop.f32.mrb[18].mxu1 }
0x13ba   : > { %2929 = vst [vmem:[%s4006_s13 + $0x20] sm:$0xff] %v1832_v9  ;;  %v3277_v5 = vpop.f32.mrb[19].mxu1  ;;  %v1846_v6 = vpack.c.bf16 %v1832_v9, %v1832_v9 }
0x13bc   : > { %3295 = vmatmul.mubr.bf16.vlgmr.msra.gmra.mrb[20].mxu1 %v1846_v6 }
0x13bd   : > { %3327 = vmatpush3.bf16.msra.mxu1 %v4872_v7  ;;  %3330 = vmatprep.mubr.msk.bf16.mxu1 %vm3735_vm1, %v3734_v2 }
0x13be   : > { %3328 = vmatprep.subr.bf16.mxu1 %v3734_v2 }
0x13c1   : > { %3329 = vmatpush3.bf16.msra.mxu1 %v4878_v28 }
0x13c2   : > { %3334 = vmatprep.subr.bf16.mxu1 %v3734_v2 }
0x148f   : > { %v1883_v19 = vpop.f32.mrb[20].mxu1 }
0x1490   : > { %v4883_v11 = vadd.f32 %v2930_v13, %v1883_v19  ;;  %v3296_v37 = vpop.f32.mrb[21].mxu1 }
0x1491   : > { %v1886_v14 = vpop.f32.mrb[22].mxu1 }
0x1492   : > { %v3297_v16 = vpop.f32.mrb[23].mxu1  ;;  %vm1890_vm0 = vcmp.ge.f32.partialorder %v4883_v11, %v4062_v21  ;;  %vm1894_vm2 = vcmp.ge.f32.partialorder %v4883_v11, %v4065_v22  ;;  %vm1898_vm4 = vcmp.ge.f32.partialorder %v4883_v11, %v4068_v23  ;;  %vm1902_vm5 = vcmp.ge.f32.partialorder %v4883_v11, %v4073_v27 }
0x1493   : > { %v2931_v41 = vsel %vm1890_vm0, 1.0, %v3734_v2  ;;  %v2932_v31 = vsel %vm1894_vm2, 1.0, %v3734_v2  ;;  %v2933_v18 = vsel %vm1898_vm4, 1.0, %v3734_v2  ;;  %vm1906_vm6 = vcmp.ge.f32.partialorder %v4883_v11, %v4078_v30 }
0x1494   : > { %v1897_v15 = vadd.f32 %v2932_v31, %v2931_v41  ;;  %v2934_v45 = vsel %vm1902_vm5, 1.0, %v3734_v2  ;;  %vm1910_vm7 = vcmp.ge.f32.partialorder %v4883_v11, %v4093_v36  ;;  %v2935_v1 = vsel %vm1906_vm6, 1.0, %v3734_v2 }
0x1495   : > { %vm1914_vm8 = vcmp.ge.f32.partialorder %v4883_v11, %v4101_v40  ;;  %v2936_v3 = vsel %vm1910_vm7, 1.0, %v3734_v2  ;;  %vm1918_vm9 = vcmp.ge.f32.partialorder %v4883_v11, %v4107_v44  ;;  %vm1922_vm10 = vcmp.ge.f32.partialorder %v4883_v11, %v4113_v47 }
0x1496   : > { %v1901_v35 = vadd.f32 %v2933_v18, %v1897_v15  ;;  %v2937_v5 = vsel %vm1914_vm8, 1.0, %v3734_v2  ;;  %v2938_v13 = vsel %vm1918_vm9, 1.0, %v3734_v2  ;;  %vm1926_vm11 = vcmp.ge.f32.partialorder %v4883_v11, %v4119_v50 }
0x1497   : > { %v2939_v37 = vsel %vm1922_vm10, 1.0, %v3734_v2  ;;  %vm1930_vm12 = vcmp.ge.f32.partialorder %v4883_v11, %v4125_v53  ;;  %v2940_v16 = vsel %vm1926_vm11, 1.0, %v3734_v2  ;;  %vm1934_vm13 = vcmp.ge.f32.partialorder %v4883_v11, %v4131_v56 }
0x1498   : > { %v1905_v32 = vadd.f32 %v2934_v45, %v1901_v35  ;;  %v2941_v31 = vsel %vm1930_vm12, 1.0, %v3734_v2  ;;  %vm1938_vm14 = vcmp.ge.f32.partialorder %v4883_v11, %v4137_v59  ;;  %v2942_v18 = vsel %vm1934_vm13, 1.0, %v3734_v2 }
0x1499   : > { %vm1942_vm15 = vcmp.ge.f32.partialorder %v4883_v11, %v4143_v62  ;;  %v2943_v45 = vsel %vm1938_vm14, 1.0, %v3734_v2  ;;  %vm1946_vm0 = vcmp.ge.f32.partialorder %v4883_v11, %v4149_v10  ;;  %vm1950_vm2 = vcmp.ge.f32.partialorder %v4883_v11, %v4155_v17 }
0x149a   : > { %v1909_v9 = vadd.f32 %v2935_v1, %v1905_v32  ;;  %v2944_v1 = vsel %vm1942_vm15, 1.0, %v3734_v2  ;;  %vm1954_vm4 = vcmp.ge.f32.partialorder %v4883_v11, %v4161_v26  ;;  %vm1958_vm5 = vcmp.ge.f32.partialorder %v4883_v11, %v4167_v33 }
0x149b   : > { %vm1962_vm6 = vcmp.ge.f32.partialorder %v4883_v11, %v4173_v38  ;;  %vm1966_vm7 = vcmp.ge.f32.partialorder %v4883_v11, %v4179_v42  ;;  %vm1970_vm8 = vcmp.ge.f32.partialorder %v4883_v11, %v4185_v46  ;;  %vm1974_vm9 = vcmp.ge.f32.partialorder %v4883_v11, %v4191_v51 }
0x149c   : > { %v1913_v4 = vadd.f32 %v2936_v3, %v1909_v9  ;;  %v2945_v3 = vsel %vm1946_vm0, 1.0, %v3734_v2  ;;  %vm1978_vm10 = vcmp.ge.f32.partialorder %v4883_v11, %v4197_v55  ;;  %vm1982_vm11 = vcmp.ge.f32.partialorder %v4883_v11, %v4203_v61 }
0x149d   : > { %vm1986_vm12 = vcmp.ge.f32.partialorder %v4883_v11, %v4209_v12  ;;  %vm1990_vm13 = vcmp.ge.f32.partialorder %v4883_v11, %v4215_v24  ;;  %vm1994_vm14 = vcmp.ge.f32.partialorder %v4883_v11, %v4221_v29  ;;  %vm1998_vm15 = vcmp.ge.f32.partialorder %v4883_v11, %v4227_v34 }
0x149e   : > { %v1917_v6 = vadd.f32 %v2937_v5, %v1913_v4  ;;  %v2946_v5 = vsel %vm1950_vm2, 1.0, %v3734_v2  ;;  %vm2002_vm0 = vcmp.ge.f32.partialorder %v4883_v11, %v4233_v39  ;;  %vm2006_vm2 = vcmp.ge.f32.partialorder %v4883_v11, %v4239_v43 }
0x14a0   : > { %v1921_v19 = vadd.f32 %v2938_v13, %v1917_v6  ;;  %v2947_v13 = vsel %vm1954_vm4, 1.0, %v3734_v2  ;;  %vm2010_vm4 = vcmp.ge.f32.partialorder %v4883_v11, %v4245_v48 }
0x14a2   : > { %v1925_v14 = vadd.f32 %v2939_v37, %v1921_v19  ;;  %v2948_v37 = vsel %vm1958_vm5, 1.0, %v3734_v2 }
0x14a4   : > { %v1929_v41 = vadd.f32 %v2940_v16, %v1925_v14  ;;  %v2949_v16 = vsel %vm1962_vm6, 1.0, %v3734_v2 }
0x14a6   : > { %v1933_v15 = vadd.f32 %v2941_v31, %v1929_v41  ;;  %v2950_v31 = vsel %vm1966_vm7, 1.0, %v3734_v2 }
0x14a8   : > { %v1937_v35 = vadd.f32 %v2942_v18, %v1933_v15  ;;  %v2951_v18 = vsel %vm1970_vm8, 1.0, %v3734_v2 }
0x14aa   : > { %v1941_v32 = vadd.f32 %v2943_v45, %v1937_v35  ;;  %v2952_v45 = vsel %vm1974_vm9, 1.0, %v3734_v2 }
0x14ac   : > { %v1945_v9 = vadd.f32 %v2944_v1, %v1941_v32  ;;  %v2953_v1 = vsel %vm1978_vm10, 1.0, %v3734_v2 }
0x14ae   : > { %v1949_v4 = vadd.f32 %v2945_v3, %v1945_v9  ;;  %v2954_v3 = vsel %vm1982_vm11, 1.0, %v3734_v2 }
0x14b0   : > { %v1953_v6 = vadd.f32 %v2946_v5, %v1949_v4  ;;  %v2955_v5 = vsel %vm1986_vm12, 1.0, %v3734_v2 }
0x14b2   : > { %v1957_v19 = vadd.f32 %v2947_v13, %v1953_v6  ;;  %v2956_v13 = vsel %vm1990_vm13, 1.0, %v3734_v2 }
0x14b4   : > { %v1961_v14 = vadd.f32 %v2948_v37, %v1957_v19  ;;  %v2957_v37 = vsel %vm1994_vm14, 1.0, %v3734_v2 }
0x14b6   : > { %v1965_v41 = vadd.f32 %v2949_v16, %v1961_v14  ;;  %v2958_v16 = vsel %vm1998_vm15, 1.0, %v3734_v2 }
0x14b8   : > { %v1969_v15 = vadd.f32 %v2950_v31, %v1965_v41  ;;  %v2959_v31 = vsel %vm2002_vm0, 1.0, %v3734_v2 }
0x14ba   : > { %v1973_v35 = vadd.f32 %v2951_v18, %v1969_v15  ;;  %v2960_v18 = vsel %vm2006_vm2, 1.0, %v3734_v2 }
0x14bc   : > { %v1977_v32 = vadd.f32 %v2952_v45, %v1973_v35  ;;  %v2961_v45 = vsel %vm2010_vm4, 1.0, %v3734_v2 }
0x14be   : > { %v1981_v9 = vadd.f32 %v2953_v1, %v1977_v32 }
0x14c0   : > { %v1985_v4 = vadd.f32 %v2954_v3, %v1981_v9 }
0x14c2   : > { %v1989_v6 = vadd.f32 %v2955_v5, %v1985_v4  ;;  %v2019_v5 = vpop.permute.xlu1 %2018 }
0x14c4   : > { %v1993_v19 = vadd.f32 %v2956_v13, %v1989_v6 }
0x14c6   : > { %v1997_v14 = vadd.f32 %v2957_v37, %v1993_v19 }
0x14c8   : > { %v2001_v41 = vadd.f32 %v2958_v16, %v1997_v14 }
0x14ca   : > { %v2005_v15 = vadd.f32 %v2959_v31, %v2001_v41 }
0x14cc   : > { %v2009_v35 = vadd.f32 %v2960_v18, %v2005_v15 }
0x14ce   : > { %v2013_v32 = vadd.f32 %v2961_v45, %v2009_v35 }
0x14d0   : > { %v2014_v1 = vmul.f32 %v4830_v20, %v2013_v32 }
0x14d2   : > { %v2015_v9 = vadd.f32 %v4836_v8, %v2014_v1 }
0x14d4   : > { %2023 = vrot.lane.b32.xlu0 %v2015_v9, %s3736_s19  ;;  %v2021_v6 = vmul.f32 %v2019_v5, %v2015_v9 }
0x1546   : > { %v2024_v3 = vpop.permute.xlu0 %2023 }
0x1547   : > { %v2026_v4 = vmul.f32 %v2024_v3, %v2015_v9 }
0x1549   : > { %2028 = vrot.lane.b32.xlu0 %v2026_v4, %s3737_s21 }
0x15bb   : > { %v2029_v13 = vpop.permute.xlu0 %2028 }
0x15bc   : > { %v2031_v11 = vadd.f32 %v2029_v13, %v2021_v6 }
0x15be   : > { %3478 = vtanh.f32 %v2031_v11 }
0x15c8   : > { %v3479_v19 = vpop.eup %3478 }
0x15c9   : > { %2034 = vrot.lane.b32.xlu1 %v3479_v19, %s3736_s19 }
0x15cd   : > { %2086 = vrot.lane.b32.xlu1 %v2031_v11, %s3738_s12 }
0x163b   : > { %v2035_v37 = vpop.permute.xlu1 %2034 }
0x163c   : > { %v2037_v14 = vmul.f32 %v2035_v37, %v2015_v9 }
0x163e   : > { %v2038_v16 = vpack.c.bf16 %v2037_v14, %v2037_v14 }
0x163f   : > { %v2087_v41 = vpop.permute.xlu1 %2086 }
0x1640   : > { %2089 = vst.msk [vmem:[#allocation3] sm:$0xff] %vm802_vm3, %v2087_v41  ;;  %2040 = vrot.lane.b32.xlu0 %v2038_v16, %s3737_s21 }
0x1647   : > { %v2264_v31 = vld [vmem:[#allocation3] sm:$0xff] }
0x1648   : > { %2266 = vrot.lane.b32.xlu1 %v2264_v31, %s3737_s21 }
0x16b2   : > { %v2041_v15 = vpop.permute.xlu0 %2040 }
0x16b3   : > { %3303 = vmatmul.mubr.msk.bf16.vlgmr.msra.gmra.mrb[20].mxu0 %vm802_vm3, %v2041_v15 }
0x16b4   : > { %3307 = vmatpush3.bf16.msra.mxu0 %v4557_v49  ;;  %3322 = vmatprep.mubr.msk.bf16.mxu0 %vm3735_vm1, %v3734_v2 }
0x16b5   : > { %3308 = vmatprep.subr.bf16.mxu0 %v3734_v2 }
0x16b8   : > { %3309 = vmatpush3.bf16.msra.mxu0 %v4563_v52 }
0x16b9   : > { %3310 = vmatprep.subr.bf16.mxu0 %v3734_v2 }
0x16bc   : > { %3311 = vmatpush3.bf16.msra.mxu0 %v4567_v54 }
0x16bd   : > { %3312 = vmatprep.subr.bf16.mxu0 %v3734_v2 }
0x16c0   : > { %3313 = vmatpush3.bf16.msra.mxu0 %v4571_v58 }
0x16c1   : > { %3314 = vmatprep.subr.bf16.mxu0 %v3734_v2 }
0x16c4   : > { %3315 = vmatpush3.bf16.msra.mxu0 %v4575_v57 }
0x16c5   : > { %3316 = vmatprep.subr.bf16.mxu0 %v3734_v2 }
0x16c8   : > { %3317 = vmatpush3.bf16.msra.mxu0 %v4579_v60  ;;  %v2964_v60 = vld [vmem:[%s3992_s24 + $0x30] sm:$0xff] }
0x16c9   : > { %3318 = vmatprep.subr.bf16.mxu0 %v3734_v2 }
0x16cc   : > { %3319 = vmatpush3.bf16.msra.mxu0 %v4583_v0 }
0x16cd   : > { %3320 = vmatprep.subr.bf16.mxu0 %v3734_v2 }
0x16d0   : > { %3321 = vmatpush3.bf16.msra.mxu0 %v4587_v25 }
0x16d1   : > { %3354 = vmatprep.subr.bf16.mxu0 %v3734_v2 }
0x1786   : > { %v2079_v49 = vpop.f32.mrb[20].mxu0 }
0x1787   : > { %v2080_v52 = vadd.f32 %v4868_v63, %v2079_v49  ;;  %v3304_v54 = vpop.f32.mrb[21].mxu0 }
0x1788   : > { %v2082_v58 = vpop.f32.mrb[22].mxu0 }
0x1789   : > { %2963 = vst [vmem:[%s4006_s13 + $0x28] sm:$0xff] %v2080_v52  ;;  %v3305_v57 = vpop.f32.mrb[23].mxu0  ;;  %v2094_v18 = vpack.c.bf16 %v2080_v52, %v2080_v52 }
0x178b   : > { %3323 = vmatmul.mubr.bf16.vlgmr.msra.gmra.mrb[24].mxu0 %v2094_v18 }
0x178c   : > { %3355 = vmatpush3.bf16.msra.mxu0 %v4872_v7  ;;  %3358 = vmatprep.mubr.msk.bf16.mxu0 %vm3735_vm1, %v3734_v2 }
0x178d   : > { %3356 = vmatprep.subr.bf16.mxu0 %v3734_v2 }
0x1790   : > { %3357 = vmatpush3.bf16.msra.mxu0 %v4878_v28 }
0x185e   : > { %v2131_v0 = vpop.f32.mrb[24].mxu0 }
0x185f   : > { %v5014_v25 = vadd.f32 %v2964_v60, %v2131_v0  ;;  %v3324_v35 = vpop.f32.mrb[25].mxu0 }
0x1860   : > { %v2134_v45 = vpop.f32.mrb[26].mxu0 }
0x1861   : > { %v3325_v32 = vpop.f32.mrb[27].mxu0  ;;  %vm2138_vm5 = vcmp.ge.f32.partialorder %v5014_v25, %v4062_v21  ;;  %vm2142_vm6 = vcmp.ge.f32.partialorder %v5014_v25, %v4065_v22  ;;  %vm2146_vm7 = vcmp.ge.f32.partialorder %v5014_v25, %v4068_v23  ;;  %vm2150_vm8 = vcmp.ge.f32.partialorder %v5014_v25, %v4073_v27 }
0x1862   : > { %v2965_v7 = vsel %vm2138_vm5, 1.0, %v3734_v2  ;;  %v2966_v28 = vsel %vm2142_vm6, 1.0, %v3734_v2  ;;  %v2967_v9 = vsel %vm2146_vm7, 1.0, %v3734_v2  ;;  %vm2154_vm9 = vcmp.ge.f32.partialorder %v5014_v25, %v4078_v30 }
0x1863   : > { %v2145_v1 = vadd.f32 %v2966_v28, %v2965_v7  ;;  %v2968_v4 = vsel %vm2150_vm8, 1.0, %v3734_v2  ;;  %vm2158_vm10 = vcmp.ge.f32.partialorder %v5014_v25, %v4093_v36  ;;  %v2969_v6 = vsel %vm2154_vm9, 1.0, %v3734_v2 }
0x1864   : > { %vm2162_vm11 = vcmp.ge.f32.partialorder %v5014_v25, %v4101_v40  ;;  %v2970_v11 = vsel %vm2158_vm10, 1.0, %v3734_v2  ;;  %vm2166_vm12 = vcmp.ge.f32.partialorder %v5014_v25, %v4107_v44  ;;  %vm2170_vm13 = vcmp.ge.f32.partialorder %v5014_v25, %v4113_v47 }
0x1865   : > { %v2149_v3 = vadd.f32 %v2967_v9, %v2145_v1  ;;  %v2971_v37 = vsel %vm2162_vm11, 1.0, %v3734_v2  ;;  %v2972_v16 = vsel %vm2166_vm12, 1.0, %v3734_v2  ;;  %vm2174_vm14 = vcmp.ge.f32.partialorder %v5014_v25, %v4119_v50 }
0x1866   : > { %v2973_v31 = vsel %vm2170_vm13, 1.0, %v3734_v2  ;;  %vm2178_vm15 = vcmp.ge.f32.partialorder %v5014_v25, %v4125_v53  ;;  %v2974_v49 = vsel %vm2174_vm14, 1.0, %v3734_v2  ;;  %vm2182_vm0 = vcmp.ge.f32.partialorder %v5014_v25, %v4131_v56 }
0x1867   : > { %v2153_v5 = vadd.f32 %v2968_v4, %v2149_v3  ;;  %v2975_v54 = vsel %vm2178_vm15, 1.0, %v3734_v2  ;;  %vm2186_vm2 = vcmp.ge.f32.partialorder %v5014_v25, %v4137_v59  ;;  %v2976_v57 = vsel %vm2182_vm0, 1.0, %v3734_v2 }
0x1868   : > { %vm2190_vm4 = vcmp.ge.f32.partialorder %v5014_v25, %v4143_v62  ;;  %v2977_v60 = vsel %vm2186_vm2, 1.0, %v3734_v2  ;;  %vm2194_vm5 = vcmp.ge.f32.partialorder %v5014_v25, %v4149_v10  ;;  %vm2198_vm6 = vcmp.ge.f32.partialorder %v5014_v25, %v4155_v17 }
0x1869   : > { %v2157_v13 = vadd.f32 %v2969_v6, %v2153_v5  ;;  %v2978_v35 = vsel %vm2190_vm4, 1.0, %v3734_v2  ;;  %v2979_v32 = vsel %vm2194_vm5, 1.0, %v3734_v2  ;;  %vm2202_vm7 = vcmp.ge.f32.partialorder %v5014_v25, %v4161_v26 }
0x186a   : > { %v2980_v28 = vsel %vm2198_vm6, 1.0, %v3734_v2  ;;  %vm2206_vm8 = vcmp.ge.f32.partialorder %v5014_v25, %v4167_v33  ;;  %v2981_v9 = vsel %vm2202_vm7, 1.0, %v3734_v2  ;;  %vm2210_vm9 = vcmp.ge.f32.partialorder %v5014_v25, %v4173_v38 }
0x186b   : > { %v2161_v19 = vadd.f32 %v2970_v11, %v2157_v13  ;;  %v2982_v4 = vsel %vm2206_vm8, 1.0, %v3734_v2  ;;  %vm2214_vm10 = vcmp.ge.f32.partialorder %v5014_v25, %v4179_v42  ;;  %v2983_v6 = vsel %vm2210_vm9, 1.0, %v3734_v2 }
0x186c   : > { %vm2218_vm11 = vcmp.ge.f32.partialorder %v5014_v25, %v4185_v46  ;;  %v2984_v11 = vsel %vm2214_vm10, 1.0, %v3734_v2  ;;  %vm2222_vm12 = vcmp.ge.f32.partialorder %v5014_v25, %v4191_v51  ;;  %vm2226_vm13 = vcmp.ge.f32.partialorder %v5014_v25, %v4197_v55 }
0x186d   : > { %v2165_v14 = vadd.f32 %v2971_v37, %v2161_v19  ;;  %v2985_v37 = vsel %vm2218_vm11, 1.0, %v3734_v2  ;;  %vm2230_vm14 = vcmp.ge.f32.partialorder %v5014_v25, %v4203_v61  ;;  %vm2234_vm15 = vcmp.ge.f32.partialorder %v5014_v25, %v4209_v12 }
0x186e   : > { %vm2238_vm0 = vcmp.ge.f32.partialorder %v5014_v25, %v4215_v24  ;;  %vm2242_vm2 = vcmp.ge.f32.partialorder %v5014_v25, %v4221_v29  ;;  %vm2246_vm4 = vcmp.ge.f32.partialorder %v5014_v25, %v4227_v34  ;;  %vm2250_vm5 = vcmp.ge.f32.partialorder %v5014_v25, %v4233_v39 }
0x186f   : > { %v2169_v41 = vadd.f32 %v2972_v16, %v2165_v14  ;;  %v2986_v16 = vsel %vm2222_vm12, 1.0, %v3734_v2  ;;  %vm2254_vm6 = vcmp.ge.f32.partialorder %v5014_v25, %v4239_v43  ;;  %vm2258_vm7 = vcmp.ge.f32.partialorder %v5014_v25, %v4245_v48 }
0x1871   : > { %v2173_v15 = vadd.f32 %v2973_v31, %v2169_v41  ;;  %v2987_v31 = vsel %vm2226_vm13, 1.0, %v3734_v2 }
0x1873   : > { %v2177_v52 = vadd.f32 %v2974_v49, %v2173_v15  ;;  %v2988_v49 = vsel %vm2230_vm14, 1.0, %v3734_v2 }
0x1875   : > { %v2181_v58 = vadd.f32 %v2975_v54, %v2177_v52  ;;  %v2989_v54 = vsel %vm2234_vm15, 1.0, %v3734_v2 }
0x1877   : > { %v2185_v18 = vadd.f32 %v2976_v57, %v2181_v58  ;;  %v2990_v57 = vsel %vm2238_vm0, 1.0, %v3734_v2 }
0x1879   : > { %v2189_v0 = vadd.f32 %v2977_v60, %v2185_v18  ;;  %v2991_v60 = vsel %vm2242_vm2, 1.0, %v3734_v2 }
0x187b   : > { %v2193_v45 = vadd.f32 %v2978_v35, %v2189_v0  ;;  %v2992_v35 = vsel %vm2246_vm4, 1.0, %v3734_v2 }
0x187d   : > { %v2197_v7 = vadd.f32 %v2979_v32, %v2193_v45  ;;  %v2993_v32 = vsel %vm2250_vm5, 1.0, %v3734_v2 }
0x187f   : > { %v2201_v1 = vadd.f32 %v2980_v28, %v2197_v7  ;;  %v2994_v28 = vsel %vm2254_vm6, 1.0, %v3734_v2 }
0x1881   : > { %v2205_v3 = vadd.f32 %v2981_v9, %v2201_v1  ;;  %v2995_v9 = vsel %vm2258_vm7, 1.0, %v3734_v2 }
0x1883   : > { %v2209_v5 = vadd.f32 %v2982_v4, %v2205_v3 }
0x1885   : > { %v2213_v13 = vadd.f32 %v2983_v6, %v2209_v5 }
0x1887   : > { %v2217_v19 = vadd.f32 %v2984_v11, %v2213_v13  ;;  %v2267_v11 = vpop.permute.xlu1 %2266 }
0x1889   : > { %v2221_v14 = vadd.f32 %v2985_v37, %v2217_v19 }
0x188b   : > { %v2225_v41 = vadd.f32 %v2986_v16, %v2221_v14 }
0x188d   : > { %v2229_v15 = vadd.f32 %v2987_v31, %v2225_v41 }
0x188f   : > { %v2233_v52 = vadd.f32 %v2988_v49, %v2229_v15 }
0x1891   : > { %v2237_v58 = vadd.f32 %v2989_v54, %v2233_v52  ;;  %v3497_v54 = vld [vmem:[#allocation7] sm:$0xff]  }
0x1893   : > { %v2241_v18 = vadd.f32 %v2990_v57, %v2237_v58  ;;  %v3498_v58 = vld [vmem:[#allocation7 + $0x8] sm:$0xff]   ;;  %v3499_v57 = vld [vmem:[#allocation7 + $0x10] sm:$0xff]  }
0x1895   : > { %v2245_v0 = vadd.f32 %v2991_v60, %v2241_v18  ;;  %v3500_v18 = vld [vmem:[#allocation7 + $0x18] sm:$0xff]   ;;  %v3501_v60 = vld [vmem:[#allocation7 + $0x20] sm:$0xff]  }
0x1897   : > { %v2249_v45 = vadd.f32 %v2992_v35, %v2245_v0  ;;  %v3502_v0 = vld [vmem:[#allocation7 + $0x28] sm:$0xff]   ;;  %v3503_v35 = vld [vmem:[#allocation7 + $0x30] sm:$0xff]  }
0x1899   : > { %v2253_v7 = vadd.f32 %v2993_v32, %v2249_v45  ;;  %v3504_v45 = vld [vmem:[#allocation7 + $0x38] sm:$0xff]  }
0x189b   : > { %v2257_v1 = vadd.f32 %v2994_v28, %v2253_v7 }
0x189d   : > { %v2261_v3 = vadd.f32 %v2995_v9, %v2257_v1 }
0x189f   : > { %v2262_v4 = vmul.f32 %v4830_v20, %v2261_v3 }
0x18a1   : > { %v2263_v5 = vadd.f32 %v4836_v8, %v2262_v4  ;;  %v2998_v4 = vld [vmem:[%s3992_s24 + $0x38] sm:$0xff] }
0x18a3   : > { %2271 = vrot.lane.b32.xlu0 %v2263_v5, %s3736_s19  ;;  %v2269_v19 = vmul.f32 %v2267_v11, %v2263_v5 }
0x1915   : > { %v2272_v6 = vpop.permute.xlu0 %2271 }
0x1916   : > { %v2274_v13 = vmul.f32 %v2272_v6, %v2263_v5 }
0x1918   : > { %2276 = vrot.lane.b32.xlu0 %v2274_v13, %s3737_s21 }
0x198a   : > { %v2277_v37 = vpop.permute.xlu0 %2276 }
0x198b   : > { %v2279_v25 = vadd.f32 %v2277_v37, %v2269_v19 }
0x198d   : > { %3480 = vtanh.f32 %v2279_v25 }
0x1997   : > { %v3481_v14 = vpop.eup %3480 }
0x1998   : > { %2282 = vrot.lane.b32.xlu1 %v3481_v14, %s3736_s19 }
0x199c   : > { %2334 = vrot.lane.b32.xlu1 %v2279_v25, %s3738_s12 }
0x1a0a   : > { %v2283_v16 = vpop.permute.xlu1 %2282 }
0x1a0b   : > { %v2285_v41 = vmul.f32 %v2283_v16, %v2263_v5 }
0x1a0d   : > { %v2286_v31 = vpack.c.bf16 %v2285_v41, %v2285_v41 }
0x1a0e   : > { %v2335_v15 = vpop.permute.xlu1 %2334 }
0x1a0f   : > { %2337 = vst.msk [vmem:[#allocation3] sm:$0xff] %vm802_vm3, %v2335_v15  ;;  %2288 = vrot.lane.b32.xlu0 %v2286_v31, %s3737_s21 }
0x1a16   : > { %v2512_v49 = vld [vmem:[#allocation3] sm:$0xff] }
0x1a17   : > { %2514 = vrot.lane.b32.xlu1 %v2512_v49, %s3737_s21 }
0x1a81   : > { %v2289_v52 = vpop.permute.xlu0 %2288 }
0x1a82   : > { %3331 = vmatmul.mubr.msk.bf16.vlgmr.msra.gmra.mrb[24].mxu1 %vm802_vm3, %v2289_v52 }
0x1a83   : > { %3335 = vmatpush3.bf16.msra.mxu1 %v3497_v54  ;;  %3350 = vmatprep.mubr.msk.bf16.mxu1 %vm3735_vm1, %v3734_v2 }
0x1a84   : > { %3336 = vmatprep.subr.bf16.mxu1 %v3734_v2 }
0x1a87   : > { %3337 = vmatpush3.bf16.msra.mxu1 %v3498_v58 }
0x1a88   : > { %3338 = vmatprep.subr.bf16.mxu1 %v3734_v2 }
0x1a8b   : > { %3339 = vmatpush3.bf16.msra.mxu1 %v3499_v57 }
0x1a8c   : > { %3340 = vmatprep.subr.bf16.mxu1 %v3734_v2 }
0x1a8f   : > { %3341 = vmatpush3.bf16.msra.mxu1 %v3500_v18 }
0x1a90   : > { %3342 = vmatprep.subr.bf16.mxu1 %v3734_v2 }
0x1a93   : > { %3343 = vmatpush3.bf16.msra.mxu1 %v3501_v60 }
0x1a94   : > { %3344 = vmatprep.subr.bf16.mxu1 %v3734_v2 }
0x1a97   : > { %3345 = vmatpush3.bf16.msra.mxu1 %v3502_v0 }
0x1a98   : > { %3346 = vmatprep.subr.bf16.mxu1 %v3734_v2 }
0x1a9b   : > { %3347 = vmatpush3.bf16.msra.mxu1 %v3503_v35 }
0x1a9c   : > { %3348 = vmatprep.subr.bf16.mxu1 %v3734_v2 }
0x1a9f   : > { %3349 = vmatpush3.bf16.msra.mxu1 %v3504_v45 }
0x1b55   : > { %v2327_v32 = vpop.f32.mrb[24].mxu1 }
0x1b56   : > { %v2328_v7 = vadd.f32 %v4868_v63, %v2327_v32  ;;  %v3332_v28 = vpop.f32.mrb[25].mxu1 }
0x1b57   : > { %v2330_v1 = vpop.f32.mrb[26].mxu1 }
0x1b58   : > { %2997 = vst [vmem:[%s4006_s13 + $0x30] sm:$0xff] %v2328_v7  ;;  %v3333_v9 = vpop.f32.mrb[27].mxu1  ;;  %v2342_v3 = vpack.c.bf16 %v2328_v7, %v2328_v7 }
0x1b5a   : > { %3351 = vmatmul.mubr.bf16.vlgmr.msra.gmra.mrb[28].mxu1 %v2342_v3 }
0x1c2d   : > { %v2379_v5 = vpop.f32.mrb[28].mxu1 }
0x1c2e   : > { %v5131_v6 = vadd.f32 %v2998_v4, %v2379_v5  ;;  %v3352_v13 = vpop.f32.mrb[29].mxu1 }
0x1c2f   : > { %v2382_v11 = vpop.f32.mrb[30].mxu1 }
0x1c30   : > { %v3353_v19 = vpop.f32.mrb[31].mxu1  ;;  %vm2386_vm1 = vcmp.ge.f32.partialorder %v5131_v6, %v4062_v21  ;;  %vm2390_vm8 = vcmp.ge.f32.partialorder %v5131_v6, %v4065_v22  ;;  %vm2394_vm9 = vcmp.ge.f32.partialorder %v5131_v6, %v4068_v23  ;;  %vm2398_vm10 = vcmp.ge.f32.partialorder %v5131_v6, %v4073_v27 }
0x1c31   : > { %v2999_v37 = vsel %vm2386_vm1, 1.0, %v3734_v2  ;;  %v3000_v25 = vsel %vm2390_vm8, 1.0, %v3734_v2  ;;  %v3001_v16 = vsel %vm2394_vm9, 1.0, %v3734_v2  ;;  %vm2402_vm11 = vcmp.ge.f32.partialorder %v5131_v6, %v4078_v30 }
0x1c32   : > { %v2393_v14 = vadd.f32 %v3000_v25, %v2999_v37  ;;  %v3002_v21 = vsel %vm2398_vm10, 1.0, %v3734_v2  ;;  %vm2406_vm12 = vcmp.ge.f32.partialorder %v5131_v6, %v4093_v36  ;;  %v3003_v23 = vsel %vm2402_vm11, 1.0, %v3734_v2 }
0x1c33   : > { %vm2410_vm13 = vcmp.ge.f32.partialorder %v5131_v6, %v4101_v40  ;;  %v3004_v27 = vsel %vm2406_vm12, 1.0, %v3734_v2  ;;  %vm2414_vm14 = vcmp.ge.f32.partialorder %v5131_v6, %v4107_v44  ;;  %vm2418_vm15 = vcmp.ge.f32.partialorder %v5131_v6, %v4113_v47 }
0x1c34   : > { %v2397_v41 = vadd.f32 %v3001_v16, %v2393_v14  ;;  %v3005_v30 = vsel %vm2410_vm13, 1.0, %v3734_v2  ;;  %v3006_v36 = vsel %vm2414_vm14, 1.0, %v3734_v2  ;;  %vm2422_vm0 = vcmp.ge.f32.partialorder %v5131_v6, %v4119_v50 }
0x1c35   : > { %v3007_v40 = vsel %vm2418_vm15, 1.0, %v3734_v2  ;;  %vm2426_vm2 = vcmp.ge.f32.partialorder %v5131_v6, %v4125_v53  ;;  %v3008_v44 = vsel %vm2422_vm0, 1.0, %v3734_v2  ;;  %vm2430_vm4 = vcmp.ge.f32.partialorder %v5131_v6, %v4131_v56 }
0x1c36   : > { %v2401_v22 = vadd.f32 %v3002_v21, %v2397_v41  ;;  %v3009_v47 = vsel %vm2426_vm2, 1.0, %v3734_v2  ;;  %vm2434_vm5 = vcmp.ge.f32.partialorder %v5131_v6, %v4137_v59  ;;  %v3010_v50 = vsel %vm2430_vm4, 1.0, %v3734_v2 }
0x1c37   : > { %vm2438_vm6 = vcmp.ge.f32.partialorder %v5131_v6, %v4143_v62  ;;  %v3011_v53 = vsel %vm2434_vm5, 1.0, %v3734_v2  ;;  %vm2442_vm7 = vcmp.ge.f32.partialorder %v5131_v6, %v4149_v10  ;;  %vm2446_vm1 = vcmp.ge.f32.partialorder %v5131_v6, %v4155_v17 }
0x1c38   : > { %v2405_v31 = vadd.f32 %v3003_v23, %v2401_v22  ;;  %v3012_v56 = vsel %vm2438_vm6, 1.0, %v3734_v2  ;;  %v3013_v59 = vsel %vm2442_vm7, 1.0, %v3734_v2  ;;  %vm2450_vm8 = vcmp.ge.f32.partialorder %v5131_v6, %v4161_v26  ;;  %v2515_v23 = vpop.permute.xlu1 %2514 }
0x1c39   : > { %v3014_v62 = vsel %vm2446_vm1, 1.0, %v3734_v2  ;;  %vm2454_vm9 = vcmp.ge.f32.partialorder %v5131_v6, %v4167_v33  ;;  %v3015_v10 = vsel %vm2450_vm8, 1.0, %v3734_v2  ;;  %vm2458_vm10 = vcmp.ge.f32.partialorder %v5131_v6, %v4173_v38 }
0x1c3a   : > { %v2409_v15 = vadd.f32 %v3004_v27, %v2405_v31  ;;  %v3016_v17 = vsel %vm2454_vm9, 1.0, %v3734_v2  ;;  %vm2462_vm11 = vcmp.ge.f32.partialorder %v5131_v6, %v4179_v42  ;;  %v3017_v26 = vsel %vm2458_vm10, 1.0, %v3734_v2 }
0x1c3b   : > { %vm2466_vm12 = vcmp.ge.f32.partialorder %v5131_v6, %v4185_v46  ;;  %v3018_v33 = vsel %vm2462_vm11, 1.0, %v3734_v2  ;;  %vm2470_vm13 = vcmp.ge.f32.partialorder %v5131_v6, %v4191_v51  ;;  %vm2474_vm14 = vcmp.ge.f32.partialorder %v5131_v6, %v4197_v55 }
0x1c3c   : > { %v2413_v49 = vadd.f32 %v3005_v30, %v2409_v15  ;;  %v3019_v38 = vsel %vm2466_vm12, 1.0, %v3734_v2  ;;  %v3020_v42 = vsel %vm2470_vm13, 1.0, %v3734_v2  ;;  %vm2478_vm15 = vcmp.ge.f32.partialorder %v5131_v6, %v4203_v61 }
0x1c3d   : > { %v3021_v46 = vsel %vm2474_vm14, 1.0, %v3734_v2  ;;  %vm2482_vm0 = vcmp.ge.f32.partialorder %v5131_v6, %v4209_v12  ;;  %v3022_v51 = vsel %vm2478_vm15, 1.0, %v3734_v2  ;;  %vm2486_vm2 = vcmp.ge.f32.partialorder %v5131_v6, %v4215_v24 }
0x1c3e   : > { %v2417_v52 = vadd.f32 %v3006_v36, %v2413_v49  ;;  %v3023_v55 = vsel %vm2482_vm0, 1.0, %v3734_v2  ;;  %vm2490_vm4 = vcmp.ge.f32.partialorder %v5131_v6, %v4221_v29  ;;  %v3024_v61 = vsel %vm2486_vm2, 1.0, %v3734_v2 }
0x1c3f   : > { %vm2494_vm5 = vcmp.ge.f32.partialorder %v5131_v6, %v4227_v34  ;;  %v3025_v12 = vsel %vm2490_vm4, 1.0, %v3734_v2  ;;  %vm2498_vm6 = vcmp.ge.f32.partialorder %v5131_v6, %v4233_v39  ;;  %vm2502_vm7 = vcmp.ge.f32.partialorder %v5131_v6, %v4239_v43 }
0x1c40   : > { %v2421_v54 = vadd.f32 %v3007_v40, %v2417_v52  ;;  %v3026_v24 = vsel %vm2494_vm5, 1.0, %v3734_v2  ;;  %v3027_v29 = vsel %vm2498_vm6, 1.0, %v3734_v2  ;;  %vm2506_vm1 = vcmp.ge.f32.partialorder %v5131_v6, %v4245_v48 }
0x1c41   : > { %v3028_v34 = vsel %vm2502_vm7, 1.0, %v3734_v2  ;;  %v3029_v16 = vsel %vm2506_vm1, 1.0, %v3734_v2 }
0x1c42   : > { %v2425_v58 = vadd.f32 %v3008_v44, %v2421_v54 }
0x1c44   : > { %v2429_v57 = vadd.f32 %v3009_v47, %v2425_v58 }
0x1c46   : > { %v2433_v18 = vadd.f32 %v3010_v50, %v2429_v57 }
0x1c48   : > { %v2437_v60 = vadd.f32 %v3011_v53, %v2433_v18 }
0x1c4a   : > { %v2441_v0 = vadd.f32 %v3012_v56, %v2437_v60 }
0x1c4c   : > { %v2445_v35 = vadd.f32 %v3013_v59, %v2441_v0 }
0x1c4e   : > { %v2449_v45 = vadd.f32 %v3014_v62, %v2445_v35 }
0x1c50   : > { %v2453_v32 = vadd.f32 %v3015_v10, %v2449_v45 }
0x1c52   : > { %v2457_v7 = vadd.f32 %v3016_v17, %v2453_v32 }
0x1c54   : > { %v2461_v28 = vadd.f32 %v3017_v26, %v2457_v7 }
0x1c56   : > { %v2465_v1 = vadd.f32 %v3018_v33, %v2461_v28 }
0x1c58   : > { %v2469_v9 = vadd.f32 %v3019_v38, %v2465_v1 }
0x1c5a   : > { %v2473_v3 = vadd.f32 %v3020_v42, %v2469_v9 }
0x1c5c   : > { %v2477_v4 = vadd.f32 %v3021_v46, %v2473_v3 }
0x1c5e   : > { %v2481_v5 = vadd.f32 %v3022_v51, %v2477_v4 }
0x1c60   : > { %v2485_v13 = vadd.f32 %v3023_v55, %v2481_v5 }
0x1c62   : > { %v2489_v11 = vadd.f32 %v3024_v61, %v2485_v13 }
0x1c64   : > { %v2493_v19 = vadd.f32 %v3025_v12, %v2489_v11 }
0x1c66   : > { %v2497_v37 = vadd.f32 %v3026_v24, %v2493_v19 }
0x1c68   : > { %v2501_v25 = vadd.f32 %v3027_v29, %v2497_v37 }
0x1c6a   : > { %v2505_v14 = vadd.f32 %v3028_v34, %v2501_v25 }
0x1c6c   : > { %v2509_v41 = vadd.f32 %v3029_v16, %v2505_v14 }
0x1c6e   : > { %v2510_v39 = vmul.f32 %v4830_v20, %v2509_v41 }
0x1c70   : > { %v2511_v21 = vadd.f32 %v4836_v8, %v2510_v39 }
0x1c72   : > { %2519 = vrot.lane.b32.xlu0 %v2511_v21, %s3736_s19  ;;  %v2517_v31 = vmul.f32 %v2515_v23, %v2511_v21 }
0x1ce4   : > { %v2520_v22 = vpop.permute.xlu0 %2519 }
0x1ce5   : > { %v2522_v43 = vmul.f32 %v2520_v22, %v2511_v21 }
0x1ce7   : > { %2524 = vrot.lane.b32.xlu0 %v2522_v43, %s3737_s21 }
0x1d59   : > { %v2525_v27 = vpop.permute.xlu0 %2524 }
0x1d5a   : > { %v2527_v48 = vadd.f32 %v2525_v27, %v2517_v31 }
0x1d5c   : > { %3482 = vtanh.f32 %v2527_v48 }
0x1d66   : > { %v3483_v6 = vpop.eup %3482 }
0x1d67   : > { %2530 = vrot.lane.b32.xlu1 %v3483_v6, %s3736_s19 }
0x1d6b   : > { %2582 = vrot.lane.b32.xlu1 %v2527_v48, %s3738_s12 }
0x1dd9   : > { %v2531_v2 = vpop.permute.xlu1 %2530 }
0x1dda   : > { %v2533_v20 = vmul.f32 %v2531_v2, %v2511_v21 }
0x1ddc   : > { %v2534_v8 = vpack.c.bf16 %v2533_v20, %v2533_v20 }
0x1ddd   : > { %v2583_v15 = vpop.permute.xlu1 %2582 }
0x1dde   : > { %2585 = vst.msk [vmem:[#allocation3] sm:$0xff] %vm802_vm3, %v2583_v15  ;;  %2536 = vrot.lane.b32.xlu0 %v2534_v8, %s3737_s21 }
0x1de5   : > { %v2593_v44 = vld [vmem:[#allocation3] sm:$0xff] (!%p3032_p11) }
0x1de6   : > { %2594 = vst.msk [vmem:[#allocation13] sm:$0xff] (!%p3032_p11), %vm802_vm3, %v2593_v44 }
0x1e50   : > { %v2537_v30 = vpop.permute.xlu0 %2536 }
0x1e51   : > { %3359 = vmatmul.mubr.msk.bf16.vlgmr.msra.gmra.mrb[28].mxu0 %vm802_vm3, %v2537_v30 }
0x1f21   : > { %2592 = sbr.rel (%p3032_p11) target bundleno = 7976 (0x1f28), region = 72 }
0x1f24   : > { %v2575_v49 = vpop.f32.mrb[28].mxu0 }
0x1f25   : > { %v2576_v36 = vadd.f32 %v4868_v63, %v2575_v49  ;;  %v3360_v52 = vpop.f32.mrb[29].mxu0 }
0x1f26   : > { %v2578_v40 = vpop.f32.mrb[30].mxu0 }
0x1f27   : > { %2586 = vst [vmem:[#allocation2] sm:$0xff] %v2576_v36  ;;  %3031 = vst [vmem:[%s4006_s13 + $0x38] sm:$0xff] %v2576_v36  ;;  %v3361_v54 = vpop.f32.mrb[31].mxu0 }
0x1f28 PF: > { %s3041_s24 = sshll.u32 %s3809_s9, 10  ;;  %s2609_s12 = sshll.u32 %s4006_s13, 4  ;;  %s5246_s12 = int_to_ptr.vmem [resolvable:$true] %s2609_s12 }
0x1f29   : > { %s5243_s21 = scalar_lea.hbm %s5319_s7, %s3041_s24  ;;  %s2596_s25 = scalar_lea.sflag [#allocation6], %s3988_s22 }
0x1f2a   : > { %s3619_s20 = scalar_lea.vmem %s5246_s12, 1024  ;;  %s3739_s14 = smov [#allocation12]  }
0x1f2b   : > { %p3620_p7 = scmp.ne.s32.totalorder %s5246_s12, %s3619_s20  ;;  %s3623_s10 = sshll.u32 %s3739_s14, 4  ;;  %s3624_s10 = int_to_ptr.vmem [resolvable:$false] %s3623_s10 }
0x1f2c   : > { %s3625_s15 = scalar_lea.vmem %s3624_s10, 2048  ;;  %p3626_p1 = scmp.lt.s32.totalorder %s5246_s12, %s3624_s10 }
0x1f2d   : > { %p3621_p13 = pnand %p3620_p7, %p3937_p5  ;;  %p3627_p4 = scmp.lt.s32.totalorder %s3625_s15, %s3619_s20 }
0x1f2f   : > { %p3622_p2 = pneg %p3621_p13  ;;  %p3628_p10 = por %p3627_p4, %p3626_p1 }
0x1f31   : > { %p3629_p3 = pnand %p3628_p10, %p3622_p2 }
0x1f33   : > { %3632 = shalt.err (!%p3629_p3)
}
0x1f34   : > { %s3633_s13 = scalar_lea.hbm %s5243_s21, 1024  ;;  %s3637_s26 = scalar_lea.hbm %s5319_s7, 2048 }
0x1f35   : > { %p3634_p12 = scmp.ne.s32.totalorder %s5243_s21, %s3633_s13  ;;  %p3638_p6 = scmp.lt.u32.totalorder %s5243_s21, %s5319_s7 }
0x1f36   : > { %p3639_p8 = scmp.lt.u32.totalorder %s3637_s26, %s3633_s13  ;;  %p3641_p7 = scmp.lt.u32.totalorder %s3633_s13, %s5243_s21 }
0x1f37   : > { %p3635_p9 = pnand %p3634_p12, %p3937_p5 }
0x1f38   : > { %p3640_p11 = por %p3639_p8, %p3638_p6 }
0x1f39   : > { %p3636_p0 = pneg %p3635_p9 }
0x1f3a   : > { %p3642_p13 = por %p3641_p7, %p3640_p11 }
0x1f3c   : > { %p3643_p2 = pnand %p3642_p13, %p3636_p0 }
0x1f3e   : > { %3646 = shalt.err (!%p3643_p2)
}
0x1f3f   : > { %s3740_s19 = smov 128   ;;  %s3741_s20 = smov 8  }
0x1f40   : > { %3376 = dma.vmem_to_hbm [thread:$0]  (%p3937_p5), %s5246_s12, 1024, %s5243_s21, %s2596_s25, %s3740_s19, %s3740_s19, %s3741_s20  }
0x1f41   : > { %s3742_s14 = smov [#allocation13]   ;;  %p5343_p4 = scmp.eq.s32.totalorder %s3809_s9, 1 }
0x1f42   : > { %s2623_s10 = sshll.u32 %s3742_s14, 4  ;;  %s2624_s10 = int_to_ptr.vmem [resolvable:$true] %s2623_s10 }
0x1f43   : > { %s3647_s15 = scalar_lea.vmem %s2624_s10, 128  ;;  %p3654_p12 = scmp.lt.s32.totalorder %s2624_s10, %s2624_s10 }
0x1f44   : > { %p3648_p1 = scmp.ne.s32.totalorder %s2624_s10, %s3647_s15  ;;  %p3655_p9 = scmp.lt.s32.totalorder %s3647_s15, %s3647_s15 }
0x1f46   : > { %p3649_p10 = pnand %p3648_p1, %p5343_p4  ;;  %p3656_p0 = por %p3655_p9, %p3654_p12 }
0x1f48   : > { %p3650_p3 = pneg %p3649_p10 }
0x1f4a   : > { %p3657_p6 = pnand %p3656_p0, %p3650_p3 }
0x1f4c   : > { %3660 = shalt.err (!%p3657_p6)
}
0x1f4d   : > { %s3661_s16 = scalar_lea.hbm %s5320_s8, 128  ;;  %p5344_p8 = pmov %p5343_p4 }
0x1f4e   : > { %p3662_p5 = scmp.ne.s32.totalorder %s5320_s8, %s3661_s16  ;;  %p3667_p13 = scmp.lt.u32.totalorder %s3661_s16, %s5320_s8 }
0x1f50   : > { %p3663_p11 = pnand %p3662_p5, %p5344_p8 }
0x1f52   : > { %p3664_p7 = pneg %p3663_p11 }
0x1f54   : > { %p3669_p2 = pnand %p3667_p13, %p3664_p7 }
0x1f56   : > { %3672 = shalt.err (!%p3669_p2)
}
0x1f57   : > { %p5345_p1 = pmov %p5343_p4 }
0x1f59   : > { %3378 = dma.vmem_to_hbm [thread:$0]  (%p5345_p1), %s2624_s10, 128, %s5320_s8, [#allocation14]  }
0x1f5a   : > { %p5346_p4 = pmov %p5345_p1 }
0x1f5b   : > { %p5347_p10 = pmov %p5345_p1 }
0x1f5c   : > { %3702 = dma.done.wait (%p5346_p4), [#allocation14], 128  }
0x1f5d   : > { %3704 = vsyncadd (%p5347_p10), [#allocation14], 4294967168 }
0x1f5e PF: > { %s5348_s24 = sld [smem:[#allocation20_spill]]  ;;  %s5349_s17 = sld [smem:[#allocation21_spill]] }
0x1f5f   : > { %p5351_p12 = scmp.ge.s32.totalorder %s3723_s30, 2 }
0x1f64   : > { %s2639_s19 = sand.u32 1, %s5348_s24   ;;  %p5350_p3 = scmp.ne.s32.totalorder %s5349_s17, 0 }
0x1f65   : > { %s2640_s20 = scalar_lea.sflag [#allocation6], %s2639_s19 }
0x1f66   : > { %p3397_p9 = pnand %p5351_p12, %p5350_p3 }
0x1f68   : > { %3706 = dma.done.wait (!%p3397_p9), %s2640_s20, 1024  }
0x1f69   : > { %3708 = vsyncadd (!%p3397_p9), %s2640_s20, 4294966272  ;;  %s5352_s14 = smov %s3923_s27  ;;  %p25_p0 = scmp.ge.s32.totalorder %s3923_s27, 4  }
0x1f6a   : > { %s5353_s27 = smov %s3715_s28  ;;  %s5354_s28 = smov %s3719_s29 }
0x1f6b   : > { %s5355_s29 = smov %s3933_s23  ;;  %s5356_s30 = smov %s5352_s14 }
0x1f6c   :  { %27 = sbr.rel (!%p25_p0) target bundleno = 8 (0x8), region = 135 }
0x1f73   :  { %2645 = vsyncpa [#allocation5], 1 }
0x1f74   :  { %2647 = vsyncpa [#allocation5 + $0x1], 1 }
0x1f75   :  { %2648 = vsyncpa [#allocation8], 1 }
0x1f76   :  { %2649 = vsyncpa [#allocation11], 1 }
0x1f77   :  { %2650 = vsyncpa [#allocation6], 1 }
0x1f78   :  { %2652 = vsyncpa [#allocation6 + $0x1], 1 }
0x1f79   :  { %2653 = vsyncpa [#allocation14], 1 }

</bundles_post_ra>
